<compile_context>
chip_gen: v6e
topology: v6e:2x2x1
jax: 0.10.0
libtpu: 0.0.40
codegen_flags: <defaults>
</compile_context>

<pallas_src>
import math
import functools

import numpy as np
import jax
import jax.numpy as jnp
from jax import lax
from jax.experimental import pallas as pl
from jax.experimental.pallas import tpu as pltpu


# ----------------------------- kernel helpers ------------------------------ #
def _softmax_lastdim(x):
    m = jnp.max(x, axis=-1, keepdims=True)
    e = jnp.exp(x - m)
    return e * pl.reciprocal(jnp.sum(e, axis=-1, keepdims=True), approx=True)


def _layernorm(x, g, b, eps=1e-5):
    mu = jnp.mean(x, axis=-1, keepdims=True)
    var = jnp.mean((x - mu) ** 2, axis=-1, keepdims=True)
    return (x - mu) * lax.rsqrt(var + eps) * g + b


def _gelu_exact(x):
    # nn.GELU() default is the exact erf form; keep it for semantic fidelity.
    return 0.5 * x * (1.0 + lax.erf(x * (1.0 / math.sqrt(2.0))))


# --------------------------------- kernel ---------------------------------- #
def _cl4kt_kernel(apply_pos, want_attn, H, dk,
                  mask_ref, pos_ref, rem_ref, gneg_ref,
                  q_ref, k_ref, v_ref,
                  wq_ref, bq_ref, wk_ref, bk_ref, wv_ref, bv_ref,
                  wo_ref, bo_ref,
                  ln1g_ref, ln1b_ref,
                  w1_ref, b1_ref, w2_ref, b2_ref,
                  ln2g_ref, ln2b_ref,
                  out_ref, attn_ref=None):
    Bt, S, D = q_ref.shape
    scale = 1.0 / math.sqrt(dk)
    NEG = jnp.float32(-1e32)

    # Fold batch into the MXU row dimension.
    xq2d = q_ref[...].reshape(Bt * S, D)        # f32, kept for the residual path
    xk2d = k_ref[...].reshape(Bt * S, D)
    xv2d = v_ref[...].reshape(Bt * S, D)

    # Full-width projections: (Bt*S, D) @ (D, D), bf16 operands, f32 accumulation.
    qf = jnp.dot(xq2d.astype(jnp.bfloat16), wq_ref[...],
                 preferred_element_type=jnp.float32) + bq_ref[...]
    kf = jnp.dot(xk2d.astype(jnp.bfloat16), wk_ref[...],
                 preferred_element_type=jnp.float32) + bk_ref[...]
    vf = jnp.dot(xv2d.astype(jnp.bfloat16), wv_ref[...],
                 preferred_element_type=jnp.float32) + bv_ref[...]

    q3 = qf.reshape(Bt, S, D).astype(jnp.bfloat16)
    k3 = kf.reshape(Bt, S, D).astype(jnp.bfloat16)
    v3 = vf.reshape(Bt, S, D).astype(jnp.bfloat16)

    # Grid-invariant constants, kept 2-D (broadcast happens inside the ops).
    mask_ok = mask_ref[...] != 0.0              # (S, S) bool
    posf = pos_ref[...]                         # (S, S) f32, |i - j|
    rem_b = rem_ref[...]                        # (S, S) bf16, rem[k, j] = 1 if k > j

    dims_qk = (((2,), (2,)), ((0,), (0,)))      # 'bqd,bkd->bqk'
    dims_pv = (((2,), (1,)), ((0,), (0,)))      # 'bqk,bkd->bqd'
    dims_rm = (((2,), (0,)), ((), ()))          # 'bqk,kj->bqj'

    head_outs = []
    # TODO(synk): for large H move this to lax.fori_loop / a grid axis so the
    #             per-head (Bt,S,S) temporaries don't stay live simultaneously.
    for h in range(H):
        sl = slice(h * dk, (h + 1) * dk)
        qh = q3[:, :, sl]
        kh = k3[:, :, sl]
        vh = v3[:, :, sl]

        scores = lax.dot_general(qh, kh, dims_qk,
                                 preferred_element_type=jnp.float32) * scale

        # "no-grad" distance-decay branch; (disttotal - distcum) is fused into a
        # single matmul against the strictly-lower-triangular remaining-mass matrix.
        # The reference multiplies s_ by the mask afterwards; masked entries are
        # already exactly 0 (exp underflow) and fully-masked rows wash out through
        # the final masked softmax, so the multiply is dropped.
        s_ = _softmax_lastdim(jnp.where(mask_ok, scores, NEG))
        remaining = lax.dot_general(s_.astype(jnp.bfloat16), rem_b, dims_rm,
                                    preferred_element_type=jnp.float32)
        dist = jnp.sqrt(jnp.maximum(remaining * posf, 0.0))
        # gneg = -softplus(gamma_h) <= 0 and dist >= 0, so exp(...) <= 1 and the
        # reference's upper clip at 1e5 never binds.
        total_effect = jnp.maximum(jnp.exp(dist * gneg_ref[h]), 1e-5)

        p = _softmax_lastdim(jnp.where(mask_ok, scores * total_effect, NEG))
        if want_attn:
            attn_ref[:, h] = p.astype(attn_ref.dtype)

        head_outs.append(lax.dot_general(p.astype(jnp.bfloat16), vh, dims_pv,
                                         preferred_element_type=jnp.float32))

    # Concatenate heads back into the lane dim and run the out-projection as a
    # single full-width (Bt*S, D) @ (D, D) matmul.
    concat = jnp.concatenate(head_outs, axis=-1).reshape(Bt * S, D)
    attn_out = jnp.dot(concat.astype(jnp.bfloat16), wo_ref[...],
                       preferred_element_type=jnp.float32) + bo_ref[...]

    x = _layernorm(xq2d + attn_out, ln1g_ref[...], ln1b_ref[...])

    if apply_pos:
        h1 = jnp.dot(x.astype(jnp.bfloat16), w1_ref[...],
                     preferred_element_type=jnp.float32) + b1_ref[...]
        h1 = _gelu_exact(h1)
        ffn = jnp.dot(h1.astype(jnp.bfloat16), w2_ref[...],
                      preferred_element_type=jnp.float32) + b2_ref[...]
        x = _layernorm(x + ffn, ln2g_ref[...], ln2b_ref[...])

    out_ref[...] = x.reshape(Bt, S, D)


# -------------------------------- wrapper ----------------------------------- #
def _build_mask(mask_int, S):
    # Mirrors:  nopeek = np.triu(ones, k=mask); src_mask = (nopeek == 0)
    if mask_int in (0, 1):
        nopeek = np.triu(np.ones((S, S), dtype=np.float32), k=mask_int)
        return jnp.asarray((nopeek == 0).astype(np.float32))
    return jnp.ones((S, S), dtype=jnp.float32)              # "bert_mask"


def _vmem_limit_bytes():
    cap = None
    try:
        info = pltpu.get_tpu_info()
        cap = getattr(info, "vmem_capacity_bytes", None)
    except Exception:
        cap = None
    if not cap:
        cap = 64 << 20          # conservative: assume v7x-class 64 MiB per core
    # Leave ~25% headroom for compiler scratch / spills; cap at 96 MiB on
    # 128 MiB parts (v5e / v6e).
    return int(min(cap * 3 // 4, 96 << 20))


def _pick_batch_tile(bs, S, D, H, F, budget_bytes):
    # Per-batch-element VMEM estimate (bytes):
    #   q/k/v/out f32 blocks, double-buffered ............  8 * 4*S*D
    #   attn bf16 output block, double-buffered ..........  4 * H*S*S
    #   full-width projections (f32 + bf16 copies) .......  ~9 * 4*S*D
    #   live (S,S) attention temporaries per head pass ...  ~6 * 4*S*S
    #   FFN hidden slab (f32 + bf16) .....................  ~6 * S*F
    per_b = (8 * 4 * S * D
             + 4 * H * S * S
             + 9 * 4 * S * D
             + 6 * 4 * S * S
             + 6 * S * F)
    bt = max(1, min(bs, budget_bytes // max(per_b, 1), max(1, 1024 // max(S, 1))))
    if bs >= 2:
        # >= 2 grid steps so both v7x TensorCores get work under ("parallel",).
        bt = min(bt, max(1, bs // 2))
    bt = max(1, bt)
    while bs % bt:
        bt -= 1
    return bt


def cl4kt_transformer_layer(mask_int, query, key, values, params,
                            apply_pos=True, want_attn=True):
    bs, S, D = query.shape
    H = params["n_heads"]
    F = params["d_ff"]
    dk = D // H

    vmem_limit = _vmem_limit_bytes()
    weight_bytes = (2 * (4 * D * D + 2 * D * F)       # bf16 weights (single-buffered)
                    + 4 * 2 * S * S + 2 * S * S       # mask/pos f32 + rem bf16
                    + 4 * (8 * D + 2 * F))            # biases / LN params
    batch_budget = max(1 << 20, vmem_limit // 2 - weight_bytes)
    Bt = _pick_batch_tile(bs, S, D, H, F, batch_budget)

    # Grid-invariant constants, precomputed once.
    mask = _build_mask(mask_int, S)                                          # (S,S)
    idx = np.arange(S)
    pos_eff = jnp.asarray(np.abs(idx[None, :] - idx[:, None]), jnp.float32)  # |j - i|
    rem_mat = jnp.asarray((idx[:, None] > idx[None, :]), jnp.bfloat16)       # sum_{k>j}
    neg_gamma = (-jax.nn.softplus(params["gammas"])).astype(jnp.float32)     # (H,)

    bf = jnp.bfloat16
    wq = params["wq"].astype(bf)
    wk = params["wk"].astype(bf)
    wv = params["wv"].astype(bf)
    wo = params["wo"].astype(bf)
    w1 = params["w1"].astype(bf)
    w2 = params["w2"].astype(bf)

    kernel = functools.partial(_cl4kt_kernel, apply_pos, want_attn, H, dk)

    def batched_spec(shape):
        n = len(shape)
        return pl.BlockSpec(shape, lambda b, n=n: (b,) + (0,) * (n - 1))

    def const_spec(shape, single_buffer):
        n = len(shape)
        idx_map = lambda b, n=n: (0,) * n
        if single_buffer and hasattr(pl, "Buffered"):
            try:
                return pl.BlockSpec(shape, idx_map, pipeline_mode=pl.Buffered(1))
            except TypeError:
                pass
        return pl.BlockSpec(shape, idx_map)

    def run(single_buffer):
        cs = lambda shape: const_spec(shape, single_buffer)
        in_specs = [
            cs((S, S)),                                                  # mask
            cs((S, S)),                                                  # |i - j|
            cs((S, S)),                                                  # remaining-mass matrix
            pl.BlockSpec((H,), lambda b: (0,),
                         memory_space=pltpu.MemorySpace.SMEM),           # -softplus(gamma)
            batched_spec((Bt, S, D)), batched_spec((Bt, S, D)),
            batched_spec((Bt, S, D)),                                    # q, k, v
            cs((D, D)), cs((1, D)),                                      # Wq, bq
            cs((D, D)), cs((1, D)),                                      # Wk, bk
            cs((D, D)), cs((1, D)),                                      # Wv, bv
            cs((D, D)), cs((1, D)),                                      # Wo, bo
            cs((1, D)), cs((1, D)),                                      # LN1 g, b
            cs((D, F)), cs((1, F)),                                      # W1, b1
            cs((F, D)), cs((1, D)),                                      # W2, b2
            cs((1, D)), cs((1, D)),                                      # LN2 g, b
        ]
        if want_attn:
            out_specs = (batched_spec((Bt, S, D)), batched_spec((Bt, H, S, S)))
            out_shape = (jax.ShapeDtypeStruct((bs, S, D), jnp.float32),
                         jax.ShapeDtypeStruct((bs, H, S, S), jnp.bfloat16))
        else:
            out_specs = batched_spec((Bt, S, D))
            out_shape = jax.ShapeDtypeStruct((bs, S, D), jnp.float32)

        res = pl.pallas_call(
            kernel,
            grid=(bs // Bt,),
            in_specs=in_specs,
            out_specs=out_specs,
            out_shape=out_shape,
            compiler_params=pltpu.CompilerParams(
                dimension_semantics=("parallel",),
                vmem_limit_bytes=vmem_limit,
            ),
        )(mask, pos_eff, rem_mat, neg_gamma,
          query, key, values,
          wq, params["bq"], wk, params["bk"], wv, params["bv"],
          wo, params["bo"],
          params["ln1_g"], params["ln1_b"],
          w1, params["b1"], w2, params["b2"],
          params["ln2_g"], params["ln2_b"])
        return jax.block_until_ready(res)

    try:
        return run(True)
    except Exception:
        # Fallback: older jax without single-buffered pipeline_mode support.
        return run(False)


# ---------------------------- pure-JAX reference ---------------------------- #
def reference_forward(mask_int, query, key, values, params, apply_pos=True):
    bs, S, D = query.shape
    H = params["n_heads"]
    dk = D // H
    mask4 = _build_mask(mask_int, S)[None, None]
    NEG = jnp.float32(-1e32)

    def proj(x, w, b):
        return (x @ w + b).reshape(bs, S, H, dk).transpose(0, 2, 1, 3)

    q = proj(query, params["wq"], params["bq"])
    k = proj(key, params["wk"], params["bk"])
    v = proj(values, params["wv"], params["bv"])

    scores = jnp.einsum("bhqd,bhkd->bhqk", q, k) / math.sqrt(dk)
    s_ = jax.nn.softmax(jnp.where(mask4 == 0, NEG, scores), axis=-1) * mask4
    distcum = jnp.cumsum(s_, axis=-1)
    disttotal = jnp.sum(s_, axis=-1, keepdims=True)
    pos = jnp.abs(jnp.arange(S)[None, :] -
                  jnp.arange(S)[:, None]).astype(jnp.float32)[None, None]
    dist = jnp.sqrt(jnp.maximum((disttotal - distcum) * pos, 0.0))
    gamma = -jax.nn.softplus(params["gammas"]).reshape(1, H, 1, 1)
    total_effect = jnp.clip(jnp.exp(dist * gamma), 1e-5, 1e5)
    scores = jnp.where(mask4 == 0, NEG, scores * total_effect)
    attn = jax.nn.softmax(scores, axis=-1)
    out = jnp.einsum("bhqk,bhkd->bhqd", attn, v)
    concat = out.transpose(0, 2, 1, 3).reshape(bs, S, D)
    attn_out = concat @ params["wo"] + params["bo"]

    def ln(x, g, b, eps=1e-5):
        mu = x.mean(-1, keepdims=True)
        var = ((x - mu) ** 2).mean(-1, keepdims=True)
        return (x - mu) / jnp.sqrt(var + eps) * g + b

    x = ln(query + attn_out, params["ln1_g"], params["ln1_b"])
    if apply_pos:
        h1 = x @ params["w1"] + params["b1"]
        h1 = 0.5 * h1 * (1.0 + jax.lax.erf(h1 / math.sqrt(2.0)))
        ffn = h1 @ params["w2"] + params["b2"]
        x = ln(x + ffn, params["ln2_g"], params["ln2_b"])
    return x, attn


# ------------------------------ parameter init ------------------------------ #
def init_params(key, d_model, d_ff, n_heads, kq_same=True):
    def xavier(k, fan_in, fan_out, shape):
        bound = math.sqrt(6.0 / (fan_in + fan_out))
        return jax.random.uniform(k, shape, jnp.float32, -bound, bound)

    ks = jax.random.split(key, 7)
    wk = xavier(ks[0], d_model, d_model, (d_model, d_model))
    wv = xavier(ks[1], d_model, d_model, (d_model, d_model))
    wq = wk if kq_same else xavier(ks[2], d_model, d_model, (d_model, d_model))
    wo = xavier(ks[3], d_model, d_model, (d_model, d_model))
    w1 = xavier(ks[4], d_model, d_ff, (d_model, d_ff))
    w2 = xavier(ks[5], d_ff, d_model, (d_ff, d_model))
    gammas = xavier(ks[6], 1, n_heads, (n_heads,))   # nn.Parameter(zeros(h,1,1)) + xavier init
    zeros_d = jnp.zeros((1, d_model), jnp.float32)
    return dict(
        n_heads=n_heads, d_ff=d_ff,
        wq=wq, bq=zeros_d, wk=wk, bk=zeros_d, wv=wv, bv=zeros_d,
        wo=wo, bo=zeros_d,
        ln1_g=jnp.ones((1, d_model), jnp.float32), ln1_b=zeros_d,
        w1=w1, b1=jnp.zeros((1, d_ff), jnp.float32),
        w2=w2, b2=zeros_d,
        ln2_g=jnp.ones((1, d_model), jnp.float32), ln2_b=zeros_d,
        gammas=gammas,
    )


# ---------------------------------- main ------------------------------------ #
if __name__ == "__main__":
    d_model, d_ff, n_heads, seqlen, bs = 32, 64, 2, 8, 2

    root = jax.random.PRNGKey(0)
    kp, kq, kk, kv = jax.random.split(root, 4)
    params = init_params(kp, d_model, d_ff, n_heads, kq_same=True)

    query = jax.random.normal(kq, (bs, seqlen, d_model), jnp.float32)
    key_in = jax.random.normal(kk, (bs, seqlen, d_model), jnp.float32)
    values = jax.random.normal(kv, (bs, seqlen, d_model), jnp.float32)

    out, attn = cl4kt_transformer_layer(1, query, key_in, values, params,
                                        apply_pos=True, want_attn=True)
    out, attn = jax.block_until_ready((out, attn))

    ref_out, ref_attn = reference_forward(1, query, key_in, values, params, apply_pos=True)
    # bf16 MXU operands (f32 accumulation) + bf16 attn output vs. pure-f32 reference
    # => looser tolerance.
    assert np.allclose(np.asarray(out), np.asarray(ref_out), atol=3e-2, rtol=3e-2)
    assert np.allclose(np.asarray(attn.astype(jnp.float32)),
                       np.asarray(ref_attn), atol=3e-2, rtol=3e-2)

    print("KERNEL_OK")
</pallas_src>

<mosaic_0001>
module attributes {stable_mosaic.version = 11 : i64} {
  func.func @_cl4kt_kernel(%arg0: i32, %arg1: memref<8x8xf32, #tpu.memory_space<vmem>>, %arg2: memref<8x8xf32, #tpu.memory_space<vmem>>, %arg3: memref<8x8xbf16, #tpu.memory_space<vmem>>, %arg4: memref<2xf32, #tpu.memory_space<smem>>, %arg5: memref<1x8x32xf32, #tpu.memory_space<vmem>>, %arg6: memref<1x8x32xf32, #tpu.memory_space<vmem>>, %arg7: memref<1x8x32xf32, #tpu.memory_space<vmem>>, %arg8: memref<32x32xbf16, #tpu.memory_space<vmem>>, %arg9: memref<1x32xf32, #tpu.memory_space<vmem>>, %arg10: memref<32x32xbf16, #tpu.memory_space<vmem>>, %arg11: memref<1x32xf32, #tpu.memory_space<vmem>>, %arg12: memref<32x32xbf16, #tpu.memory_space<vmem>>, %arg13: memref<1x32xf32, #tpu.memory_space<vmem>>, %arg14: memref<32x32xbf16, #tpu.memory_space<vmem>>, %arg15: memref<1x32xf32, #tpu.memory_space<vmem>>, %arg16: memref<1x32xf32, #tpu.memory_space<vmem>>, %arg17: memref<1x32xf32, #tpu.memory_space<vmem>>, %arg18: memref<32x64xbf16, #tpu.memory_space<vmem>>, %arg19: memref<1x64xf32, #tpu.memory_space<vmem>>, %arg20: memref<64x32xbf16, #tpu.memory_space<vmem>>, %arg21: memref<1x32xf32, #tpu.memory_space<vmem>>, %arg22: memref<1x32xf32, #tpu.memory_space<vmem>>, %arg23: memref<1x32xf32, #tpu.memory_space<vmem>>, %arg24: memref<1x8x32xf32, #tpu.memory_space<vmem>>, %arg25: memref<1x2x8x8xbf16, #tpu.memory_space<vmem>>) attributes {dimension_semantics = [#tpu.dimension_semantics<parallel>], iteration_bounds = array<i64: 2>, scalar_prefetch = 0 : i64, scratch_operands = 0 : i64, tpu.core_type = #tpu.core_type<tc>, window_params = [{pipeline_mode = #tpu.pipeline_mode<synchronous>, transform_indices = @transform_0, window_bounds = array<i64: 8, 8>}, {pipeline_mode = #tpu.pipeline_mode<synchronous>, transform_indices = @transform_1, window_bounds = array<i64: 8, 8>}, {pipeline_mode = #tpu.pipeline_mode<synchronous>, transform_indices = @transform_2, window_bounds = array<i64: 8, 8>}, {transform_indices = @transform_3, window_bounds = array<i64: 2>}, {transform_indices = @transform_4, window_bounds = array<i64: 1, 8, 32>}, {transform_indices = @transform_5, window_bounds = array<i64: 1, 8, 32>}, {transform_indices = @transform_6, window_bounds = array<i64: 1, 8, 32>}, {pipeline_mode = #tpu.pipeline_mode<synchronous>, transform_indices = @transform_7, window_bounds = array<i64: 32, 32>}, {pipeline_mode = #tpu.pipeline_mode<synchronous>, transform_indices = @transform_8, window_bounds = array<i64: 1, 32>}, {pipeline_mode = #tpu.pipeline_mode<synchronous>, transform_indices = @transform_9, window_bounds = array<i64: 32, 32>}, {pipeline_mode = #tpu.pipeline_mode<synchronous>, transform_indices = @transform_10, window_bounds = array<i64: 1, 32>}, {pipeline_mode = #tpu.pipeline_mode<synchronous>, transform_indices = @transform_11, window_bounds = array<i64: 32, 32>}, {pipeline_mode = #tpu.pipeline_mode<synchronous>, transform_indices = @transform_12, window_bounds = array<i64: 1, 32>}, {pipeline_mode = #tpu.pipeline_mode<synchronous>, transform_indices = @transform_13, window_bounds = array<i64: 32, 32>}, {pipeline_mode = #tpu.pipeline_mode<synchronous>, transform_indices = @transform_14, window_bounds = array<i64: 1, 32>}, {pipeline_mode = #tpu.pipeline_mode<synchronous>, transform_indices = @transform_15, window_bounds = array<i64: 1, 32>}, {pipeline_mode = #tpu.pipeline_mode<synchronous>, transform_indices = @transform_16, window_bounds = array<i64: 1, 32>}, {pipeline_mode = #tpu.pipeline_mode<synchronous>, transform_indices = @transform_17, window_bounds = array<i64: 32, 64>}, {pipeline_mode = #tpu.pipeline_mode<synchronous>, transform_indices = @transform_18, window_bounds = array<i64: 1, 64>}, {pipeline_mode = #tpu.pipeline_mode<synchronous>, transform_indices = @transform_19, window_bounds = array<i64: 64, 32>}, {pipeline_mode = #tpu.pipeline_mode<synchronous>, transform_indices = @transform_20, window_bounds = array<i64: 1, 32>}, {pipeline_mode = #tpu.pipeline_mode<synchronous>, transform_indices = @transform_21, window_bounds = array<i64: 1, 32>}, {pipeline_mode = #tpu.pipeline_mode<synchronous>, transform_indices = @transform_22, window_bounds = array<i64: 1, 32>}, {transform_indices = @transform_23, window_bounds = array<i64: 1, 8, 32>}, {transform_indices = @transform_24, window_bounds = array<i64: 1, 2, 8, 8>}]} {
    %c0 = arith.constant 0 : index
    %c0_0 = arith.constant 0 : index
    %c0_1 = arith.constant 0 : index
    %0 = vector.load %arg5[%c0, %c0_0, %c0_1] : memref<1x8x32xf32, #tpu.memory_space<vmem>>, vector<1x8x32xf32>
    %1 = vector.shape_cast %0 : vector<1x8x32xf32> to vector<8x32xf32>
    %c0_2 = arith.constant 0 : index
    %c0_3 = arith.constant 0 : index
    %c0_4 = arith.constant 0 : index
    %2 = vector.load %arg6[%c0_2, %c0_3, %c0_4] : memref<1x8x32xf32, #tpu.memory_space<vmem>>, vector<1x8x32xf32>
    %3 = vector.shape_cast %2 : vector<1x8x32xf32> to vector<8x32xf32>
    %c0_5 = arith.constant 0 : index
    %c0_6 = arith.constant 0 : index
    %c0_7 = arith.constant 0 : index
    %4 = vector.load %arg7[%c0_5, %c0_6, %c0_7] : memref<1x8x32xf32, #tpu.memory_space<vmem>>, vector<1x8x32xf32>
    %5 = vector.shape_cast %4 : vector<1x8x32xf32> to vector<8x32xf32>
    %6 = arith.truncf %1 : vector<8x32xf32> to vector<8x32xbf16>
    %c0_8 = arith.constant 0 : index
    %c0_9 = arith.constant 0 : index
    %7 = vector.load %arg8[%c0_8, %c0_9] : memref<32x32xbf16, #tpu.memory_space<vmem>>, vector<32x32xbf16>
    %cst = arith.constant dense<0.000000e+00> : vector<8x32xf32>
    %8 = tpu.matmul %6, %7, %cst {dimension_numbers = #tpu.dot_dimension_numbers<[1], [0], [0], [1], [0, 0, 1, 1], [], []>} : vector<8x32xbf16>, vector<32x32xbf16>, vector<8x32xf32> -> vector<8x32xf32>
    %c0_10 = arith.constant 0 : index
    %c0_11 = arith.constant 0 : index
    %9 = vector.load %arg9[%c0_10, %c0_11] : memref<1x32xf32, #tpu.memory_space<vmem>>, vector<1x32xf32>
    %10 = vector.broadcast %9 : vector<1x32xf32> to vector<8x32xf32>
    %11 = arith.addf %8, %10 : vector<8x32xf32>
    %12 = arith.truncf %3 : vector<8x32xf32> to vector<8x32xbf16>
    %c0_12 = arith.constant 0 : index
    %c0_13 = arith.constant 0 : index
    %13 = vector.load %arg10[%c0_12, %c0_13] : memref<32x32xbf16, #tpu.memory_space<vmem>>, vector<32x32xbf16>
    %cst_14 = arith.constant dense<0.000000e+00> : vector<8x32xf32>
    %14 = tpu.matmul %12, %13, %cst_14 {dimension_numbers = #tpu.dot_dimension_numbers<[1], [0], [0], [1], [0, 0, 1, 1], [], []>} : vector<8x32xbf16>, vector<32x32xbf16>, vector<8x32xf32> -> vector<8x32xf32>
    %c0_15 = arith.constant 0 : index
    %c0_16 = arith.constant 0 : index
    %15 = vector.load %arg11[%c0_15, %c0_16] : memref<1x32xf32, #tpu.memory_space<vmem>>, vector<1x32xf32>
    %16 = vector.broadcast %15 : vector<1x32xf32> to vector<8x32xf32>
    %17 = arith.addf %14, %16 : vector<8x32xf32>
    %18 = arith.truncf %5 : vector<8x32xf32> to vector<8x32xbf16>
    %c0_17 = arith.constant 0 : index
    %c0_18 = arith.constant 0 : index
    %19 = vector.load %arg12[%c0_17, %c0_18] : memref<32x32xbf16, #tpu.memory_space<vmem>>, vector<32x32xbf16>
    %cst_19 = arith.constant dense<0.000000e+00> : vector<8x32xf32>
    %20 = tpu.matmul %18, %19, %cst_19 {dimension_numbers = #tpu.dot_dimension_numbers<[1], [0], [0], [1], [0, 0, 1, 1], [], []>} : vector<8x32xbf16>, vector<32x32xbf16>, vector<8x32xf32> -> vector<8x32xf32>
    %c0_20 = arith.constant 0 : index
    %c0_21 = arith.constant 0 : index
    %21 = vector.load %arg13[%c0_20, %c0_21] : memref<1x32xf32, #tpu.memory_space<vmem>>, vector<1x32xf32>
    %22 = vector.broadcast %21 : vector<1x32xf32> to vector<8x32xf32>
    %23 = arith.addf %20, %22 : vector<8x32xf32>
    %24 = vector.shape_cast %11 : vector<8x32xf32> to vector<1x8x32xf32>
    %25 = arith.truncf %24 : vector<1x8x32xf32> to vector<1x8x32xbf16>
    %26 = vector.shape_cast %17 : vector<8x32xf32> to vector<1x8x32xf32>
    %27 = arith.truncf %26 : vector<1x8x32xf32> to vector<1x8x32xbf16>
    %28 = vector.shape_cast %23 : vector<8x32xf32> to vector<1x8x32xf32>
    %29 = arith.truncf %28 : vector<1x8x32xf32> to vector<1x8x32xbf16>
    %c0_22 = arith.constant 0 : index
    %c0_23 = arith.constant 0 : index
    %30 = vector.load %arg1[%c0_22, %c0_23] : memref<8x8xf32, #tpu.memory_space<vmem>>, vector<8x8xf32>
    %cst_24 = arith.constant 0.000000e+00 : f32
    %31 = vector.broadcast %cst_24 : f32 to vector<8x8xf32>
    %32 = arith.cmpf one, %30, %31 : vector<8x8xf32>
    %c0_25 = arith.constant 0 : index
    %c0_26 = arith.constant 0 : index
    %33 = vector.load %arg2[%c0_25, %c0_26] : memref<8x8xf32, #tpu.memory_space<vmem>>, vector<8x8xf32>
    %c0_27 = arith.constant 0 : index
    %c0_28 = arith.constant 0 : index
    %34 = vector.load %arg3[%c0_27, %c0_28] : memref<8x8xbf16, #tpu.memory_space<vmem>>, vector<8x8xbf16>
    %35 = vector.extract_strided_slice %25 {offsets = [0, 0, 0], sizes = [1, 8, 16], strides = [1, 1, 1]} : vector<1x8x32xbf16> to vector<1x8x16xbf16>
    %36 = vector.extract_strided_slice %27 {offsets = [0, 0, 0], sizes = [1, 8, 16], strides = [1, 1, 1]} : vector<1x8x32xbf16> to vector<1x8x16xbf16>
    %37 = vector.extract_strided_slice %29 {offsets = [0, 0, 0], sizes = [1, 8, 16], strides = [1, 1, 1]} : vector<1x8x32xbf16> to vector<1x8x16xbf16>
    %cst_29 = arith.constant dense<0.000000e+00> : vector<1x8x8xf32>
    %38 = tpu.matmul %35, %36, %cst_29 {dimension_numbers = #tpu.dot_dimension_numbers<[2], [2], [1], [1], [0, 0, 0, 1, 1, 1], [0], [0]>} : vector<1x8x16xbf16>, vector<1x8x16xbf16>, vector<1x8x8xf32> -> vector<1x8x8xf32>
    %cst_30 = arith.constant 2.500000e-01 : f32
    %39 = vector.broadcast %cst_30 : f32 to vector<1x8x8xf32>
    %40 = arith.mulf %38, %39 : vector<1x8x8xf32>
    %cst_31 = arith.constant -1.000000e+32 : f32
    %41 = vector.shape_cast %32 : vector<8x8xi1> to vector<1x8x8xi1>
    %42 = vector.broadcast %cst_31 : f32 to vector<1x8x8xf32>
    %43 = arith.select %41, %40, %42 : vector<1x8x8xi1>, vector<1x8x8xf32>
    %cst_32 = arith.constant dense<0xFF800000> : vector<1x8xf32>
    %44 = vector.multi_reduction <maximumf>, %43, %cst_32 [2] : vector<1x8x8xf32> to vector<1x8xf32>
    %45 = vector.shape_cast %44 : vector<1x8xf32> to vector<1x8x1xf32>
    %46 = vector.broadcast %45 : vector<1x8x1xf32> to vector<1x8x8xf32>
    %47 = arith.subf %43, %46 : vector<1x8x8xf32>
    %48 = math.exp %47 : vector<1x8x8xf32>
    %cst_33 = arith.constant dense<0.000000e+00> : vector<1x8xf32>
    %49 = vector.multi_reduction <add>, %48, %cst_33 [2] : vector<1x8x8xf32> to vector<1x8xf32>
    %50 = vector.shape_cast %49 : vector<1x8xf32> to vector<1x8x1xf32>
    %51 = tpu.reciprocal %50 {approx = true} : vector<1x8x1xf32> -> vector<1x8x1xf32>
    %52 = vector.broadcast %51 : vector<1x8x1xf32> to vector<1x8x8xf32>
    %53 = arith.mulf %48, %52 : vector<1x8x8xf32>
    %54 = arith.truncf %53 : vector<1x8x8xf32> to vector<1x8x8xbf16>
    %cst_34 = arith.constant dense<0.000000e+00> : vector<1x8x8xf32>
    %55 = tpu.matmul %54, %34, %cst_34 {dimension_numbers = #tpu.dot_dimension_numbers<[2], [0], [0, 1], [1], [0, 0, 0, 1, 1, 1], [], []>} : vector<1x8x8xbf16>, vector<8x8xbf16>, vector<1x8x8xf32> -> vector<1x8x8xf32>
    %56 = vector.shape_cast %33 : vector<8x8xf32> to vector<1x8x8xf32>
    %57 = arith.mulf %55, %56 : vector<1x8x8xf32>
    %cst_35 = arith.constant 0.000000e+00 : f32
    %58 = vector.broadcast %cst_35 : f32 to vector<1x8x8xf32>
    %59 = arith.maximumf %57, %58 : vector<1x8x8xf32>
    %60 = math.sqrt %59 : vector<1x8x8xf32>
    %c0_36 = arith.constant 0 : index
    %61 = memref.load %arg4[%c0_36] : memref<2xf32, #tpu.memory_space<smem>>
    %62 = vector.broadcast %61 : f32 to vector<1x8x8xf32>
    %63 = arith.mulf %60, %62 : vector<1x8x8xf32>
    %64 = math.exp %63 : vector<1x8x8xf32>
    %cst_37 = arith.constant 9.99999974E-6 : f32
    %65 = vector.broadcast %cst_37 : f32 to vector<1x8x8xf32>
    %66 = arith.maximumf %64, %65 : vector<1x8x8xf32>
    %67 = arith.mulf %40, %66 : vector<1x8x8xf32>
    %cst_38 = arith.constant -1.000000e+32 : f32
    %68 = vector.shape_cast %32 : vector<8x8xi1> to vector<1x8x8xi1>
    %69 = vector.broadcast %cst_38 : f32 to vector<1x8x8xf32>
    %70 = arith.select %68, %67, %69 : vector<1x8x8xi1>, vector<1x8x8xf32>
    %cst_39 = arith.constant dense<0xFF800000> : vector<1x8xf32>
    %71 = vector.multi_reduction <maximumf>, %70, %cst_39 [2] : vector<1x8x8xf32> to vector<1x8xf32>
    %72 = vector.shape_cast %71 : vector<1x8xf32> to vector<1x8x1xf32>
    %73 = vector.broadcast %72 : vector<1x8x1xf32> to vector<1x8x8xf32>
    %74 = arith.subf %70, %73 : vector<1x8x8xf32>
    %75 = math.exp %74 : vector<1x8x8xf32>
    %cst_40 = arith.constant dense<0.000000e+00> : vector<1x8xf32>
    %76 = vector.multi_reduction <add>, %75, %cst_40 [2] : vector<1x8x8xf32> to vector<1x8xf32>
    %77 = vector.shape_cast %76 : vector<1x8xf32> to vector<1x8x1xf32>
    %78 = tpu.reciprocal %77 {approx = true} : vector<1x8x1xf32> -> vector<1x8x1xf32>
    %79 = vector.broadcast %78 : vector<1x8x1xf32> to vector<1x8x8xf32>
    %80 = arith.mulf %75, %79 : vector<1x8x8xf32>
    %81 = arith.truncf %80 : vector<1x8x8xf32> to vector<1x8x8xbf16>
    %c0_41 = arith.constant 0 : index
    %c0_42 = arith.constant 0 : index
    %c0_43 = arith.constant 0 : index
    %c0_44 = arith.constant 0 : index
    %82 = vector.load %arg25[%c0_41, %c0_42, %c0_43, %c0_44] : memref<1x2x8x8xbf16, #tpu.memory_space<vmem>>, vector<1x1x8x8xbf16>
    %83 = vector.shape_cast %82 : vector<1x1x8x8xbf16> to vector<1x8x8xbf16>
    %84 = vector.shape_cast %81 : vector<1x8x8xbf16> to vector<1x1x8x8xbf16>
    tpu.vector_store %arg25[%c0_41, %c0_42, %c0_43, %c0_44], %84 {strides = array<i32>} : memref<1x2x8x8xbf16, #tpu.memory_space<vmem>>, vector<1x1x8x8xbf16>,
    %85 = arith.truncf %80 : vector<1x8x8xf32> to vector<1x8x8xbf16>
    %cst_45 = arith.constant dense<0.000000e+00> : vector<1x8x16xf32>
    %86 = tpu.matmul %85, %37, %cst_45 {dimension_numbers = #tpu.dot_dimension_numbers<[2], [1], [1], [2], [0, 0, 0, 1, 1, 2], [0], [0]>} : vector<1x8x8xbf16>, vector<1x8x16xbf16>, vector<1x8x16xf32> -> vector<1x8x16xf32>
    %87 = vector.extract_strided_slice %25 {offsets = [0, 0, 16], sizes = [1, 8, 16], strides = [1, 1, 1]} : vector<1x8x32xbf16> to vector<1x8x16xbf16>
    %88 = vector.extract_strided_slice %27 {offsets = [0, 0, 16], sizes = [1, 8, 16], strides = [1, 1, 1]} : vector<1x8x32xbf16> to vector<1x8x16xbf16>
    %89 = vector.extract_strided_slice %29 {offsets = [0, 0, 16], sizes = [1, 8, 16], strides = [1, 1, 1]} : vector<1x8x32xbf16> to vector<1x8x16xbf16>
    %cst_46 = arith.constant dense<0.000000e+00> : vector<1x8x8xf32>
    %90 = tpu.matmul %87, %88, %cst_46 {dimension_numbers = #tpu.dot_dimension_numbers<[2], [2], [1], [1], [0, 0, 0, 1, 1, 1], [0], [0]>} : vector<1x8x16xbf16>, vector<1x8x16xbf16>, vector<1x8x8xf32> -> vector<1x8x8xf32>
    %cst_47 = arith.constant 2.500000e-01 : f32
    %91 = vector.broadcast %cst_47 : f32 to vector<1x8x8xf32>
    %92 = arith.mulf %90, %91 : vector<1x8x8xf32>
    %cst_48 = arith.constant -1.000000e+32 : f32
    %93 = vector.shape_cast %32 : vector<8x8xi1> to vector<1x8x8xi1>
    %94 = vector.broadcast %cst_48 : f32 to vector<1x8x8xf32>
    %95 = arith.select %93, %92, %94 : vector<1x8x8xi1>, vector<1x8x8xf32>
    %cst_49 = arith.constant dense<0xFF800000> : vector<1x8xf32>
    %96 = vector.multi_reduction <maximumf>, %95, %cst_49 [2] : vector<1x8x8xf32> to vector<1x8xf32>
    %97 = vector.shape_cast %96 : vector<1x8xf32> to vector<1x8x1xf32>
    %98 = vector.broadcast %97 : vector<1x8x1xf32> to vector<1x8x8xf32>
    %99 = arith.subf %95, %98 : vector<1x8x8xf32>
    %100 = math.exp %99 : vector<1x8x8xf32>
    %cst_50 = arith.constant dense<0.000000e+00> : vector<1x8xf32>
    %101 = vector.multi_reduction <add>, %100, %cst_50 [2] : vector<1x8x8xf32> to vector<1x8xf32>
    %102 = vector.shape_cast %101 : vector<1x8xf32> to vector<1x8x1xf32>
    %103 = tpu.reciprocal %102 {approx = true} : vector<1x8x1xf32> -> vector<1x8x1xf32>
    %104 = vector.broadcast %103 : vector<1x8x1xf32> to vector<1x8x8xf32>
    %105 = arith.mulf %100, %104 : vector<1x8x8xf32>
    %106 = arith.truncf %105 : vector<1x8x8xf32> to vector<1x8x8xbf16>
    %cst_51 = arith.constant dense<0.000000e+00> : vector<1x8x8xf32>
    %107 = tpu.matmul %106, %34, %cst_51 {dimension_numbers = #tpu.dot_dimension_numbers<[2], [0], [0, 1], [1], [0, 0, 0, 1, 1, 1], [], []>} : vector<1x8x8xbf16>, vector<8x8xbf16>, vector<1x8x8xf32> -> vector<1x8x8xf32>
    %108 = vector.shape_cast %33 : vector<8x8xf32> to vector<1x8x8xf32>
    %109 = arith.mulf %107, %108 : vector<1x8x8xf32>
    %cst_52 = arith.constant 0.000000e+00 : f32
    %110 = vector.broadcast %cst_52 : f32 to vector<1x8x8xf32>
    %111 = arith.maximumf %109, %110 : vector<1x8x8xf32>
    %112 = math.sqrt %111 : vector<1x8x8xf32>
    %c1 = arith.constant 1 : index
    %113 = memref.load %arg4[%c1] : memref<2xf32, #tpu.memory_space<smem>>
    %114 = vector.broadcast %113 : f32 to vector<1x8x8xf32>
    %115 = arith.mulf %112, %114 : vector<1x8x8xf32>
    %116 = math.exp %115 : vector<1x8x8xf32>
    %cst_53 = arith.constant 9.99999974E-6 : f32
    %117 = vector.broadcast %cst_53 : f32 to vector<1x8x8xf32>
    %118 = arith.maximumf %116, %117 : vector<1x8x8xf32>
    %119 = arith.mulf %92, %118 : vector<1x8x8xf32>
    %cst_54 = arith.constant -1.000000e+32 : f32
    %120 = vector.shape_cast %32 : vector<8x8xi1> to vector<1x8x8xi1>
    %121 = vector.broadcast %cst_54 : f32 to vector<1x8x8xf32>
    %122 = arith.select %120, %119, %121 : vector<1x8x8xi1>, vector<1x8x8xf32>
    %cst_55 = arith.constant dense<0xFF800000> : vector<1x8xf32>
    %123 = vector.multi_reduction <maximumf>, %122, %cst_55 [2] : vector<1x8x8xf32> to vector<1x8xf32>
    %124 = vector.shape_cast %123 : vector<1x8xf32> to vector<1x8x1xf32>
    %125 = vector.broadcast %124 : vector<1x8x1xf32> to vector<1x8x8xf32>
    %126 = arith.subf %122, %125 : vector<1x8x8xf32>
    %127 = math.exp %126 : vector<1x8x8xf32>
    %cst_56 = arith.constant dense<0.000000e+00> : vector<1x8xf32>
    %128 = vector.multi_reduction <add>, %127, %cst_56 [2] : vector<1x8x8xf32> to vector<1x8xf32>
    %129 = vector.shape_cast %128 : vector<1x8xf32> to vector<1x8x1xf32>
    %130 = tpu.reciprocal %129 {approx = true} : vector<1x8x1xf32> -> vector<1x8x1xf32>
    %131 = vector.broadcast %130 : vector<1x8x1xf32> to vector<1x8x8xf32>
    %132 = arith.mulf %127, %131 : vector<1x8x8xf32>
    %133 = arith.truncf %132 : vector<1x8x8xf32> to vector<1x8x8xbf16>
    %c0_57 = arith.constant 0 : index
    %c1_58 = arith.constant 1 : index
    %c0_59 = arith.constant 0 : index
    %c0_60 = arith.constant 0 : index
    %134 = vector.load %arg25[%c0_57, %c1_58, %c0_59, %c0_60] : memref<1x2x8x8xbf16, #tpu.memory_space<vmem>>, vector<1x1x8x8xbf16>
    %135 = vector.shape_cast %134 : vector<1x1x8x8xbf16> to vector<1x8x8xbf16>
    %136 = vector.shape_cast %133 : vector<1x8x8xbf16> to vector<1x1x8x8xbf16>
    tpu.vector_store %arg25[%c0_57, %c1_58, %c0_59, %c0_60], %136 {strides = array<i32>} : memref<1x2x8x8xbf16, #tpu.memory_space<vmem>>, vector<1x1x8x8xbf16>,
    %137 = arith.truncf %132 : vector<1x8x8xf32> to vector<1x8x8xbf16>
    %cst_61 = arith.constant dense<0.000000e+00> : vector<1x8x16xf32>
    %138 = tpu.matmul %137, %89, %cst_61 {dimension_numbers = #tpu.dot_dimension_numbers<[2], [1], [1], [2], [0, 0, 0, 1, 1, 2], [0], [0]>} : vector<1x8x8xbf16>, vector<1x8x16xbf16>, vector<1x8x16xf32> -> vector<1x8x16xf32>
    %139 = tpu.concatenate %86, %138 in 2 : vector<1x8x16xf32>, vector<1x8x16xf32> -> vector<1x8x32xf32>
    %140 = vector.shape_cast %139 : vector<1x8x32xf32> to vector<8x32xf32>
    %141 = arith.truncf %140 : vector<8x32xf32> to vector<8x32xbf16>
    %c0_62 = arith.constant 0 : index
    %c0_63 = arith.constant 0 : index
    %142 = vector.load %arg14[%c0_62, %c0_63] : memref<32x32xbf16, #tpu.memory_space<vmem>>, vector<32x32xbf16>
    %cst_64 = arith.constant dense<0.000000e+00> : vector<8x32xf32>
    %143 = tpu.matmul %141, %142, %cst_64 {dimension_numbers = #tpu.dot_dimension_numbers<[1], [0], [0], [1], [0, 0, 1, 1], [], []>} : vector<8x32xbf16>, vector<32x32xbf16>, vector<8x32xf32> -> vector<8x32xf32>
    %c0_65 = arith.constant 0 : index
    %c0_66 = arith.constant 0 : index
    %144 = vector.load %arg15[%c0_65, %c0_66] : memref<1x32xf32, #tpu.memory_space<vmem>>, vector<1x32xf32>
    %145 = vector.broadcast %144 : vector<1x32xf32> to vector<8x32xf32>
    %146 = arith.addf %143, %145 : vector<8x32xf32>
    %147 = arith.addf %1, %146 : vector<8x32xf32>
    %c0_67 = arith.constant 0 : index
    %c0_68 = arith.constant 0 : index
    %148 = vector.load %arg16[%c0_67, %c0_68] : memref<1x32xf32, #tpu.memory_space<vmem>>, vector<1x32xf32>
    %c0_69 = arith.constant 0 : index
    %c0_70 = arith.constant 0 : index
    %149 = vector.load %arg17[%c0_69, %c0_70] : memref<1x32xf32, #tpu.memory_space<vmem>>, vector<1x32xf32>
    %cst_71 = arith.constant dense<0.000000e+00> : vector<8xf32>
    %150 = vector.multi_reduction <add>, %147, %cst_71 [1] : vector<8x32xf32> to vector<8xf32>
    %151 = vector.shape_cast %150 : vector<8xf32> to vector<8x1xf32>
    %cst_72 = arith.constant 3.200000e+01 : f32
    %152 = vector.broadcast %cst_72 : f32 to vector<8x1xf32>
    %153 = arith.divf %151, %152 : vector<8x1xf32>
    %154 = vector.broadcast %153 : vector<8x1xf32> to vector<8x32xf32>
    %155 = arith.subf %147, %154 : vector<8x32xf32>
    %156 = arith.mulf %155, %155 : vector<8x32xf32>
    %cst_73 = arith.constant dense<0.000000e+00> : vector<8xf32>
    %157 = vector.multi_reduction <add>, %156, %cst_73 [1] : vector<8x32xf32> to vector<8xf32>
    %158 = vector.shape_cast %157 : vector<8xf32> to vector<8x1xf32>
    %cst_74 = arith.constant 3.200000e+01 : f32
    %159 = vector.broadcast %cst_74 : f32 to vector<8x1xf32>
    %160 = arith.divf %158, %159 : vector<8x1xf32>
    %161 = vector.broadcast %153 : vector<8x1xf32> to vector<8x32xf32>
    %162 = arith.subf %147, %161 : vector<8x32xf32>
    %cst_75 = arith.constant 9.99999974E-6 : f32
    %163 = vector.broadcast %cst_75 : f32 to vector<8x1xf32>
    %164 = arith.addf %160, %163 : vector<8x1xf32>
    %165 = math.rsqrt %164 : vector<8x1xf32>
    %166 = vector.broadcast %165 : vector<8x1xf32> to vector<8x32xf32>
    %167 = arith.mulf %162, %166 : vector<8x32xf32>
    %168 = vector.broadcast %148 : vector<1x32xf32> to vector<8x32xf32>
    %169 = arith.mulf %167, %168 : vector<8x32xf32>
    %170 = vector.broadcast %149 : vector<1x32xf32> to vector<8x32xf32>
    %171 = arith.addf %169, %170 : vector<8x32xf32>
    %172 = arith.truncf %171 : vector<8x32xf32> to vector<8x32xbf16>
    %c0_76 = arith.constant 0 : index
    %c0_77 = arith.constant 0 : index
    %173 = vector.load %arg18[%c0_76, %c0_77] : memref<32x64xbf16, #tpu.memory_space<vmem>>, vector<32x64xbf16>
    %cst_78 = arith.constant dense<0.000000e+00> : vector<8x64xf32>
    %174 = tpu.matmul %172, %173, %cst_78 {dimension_numbers = #tpu.dot_dimension_numbers<[1], [0], [0], [1], [0, 0, 1, 1], [], []>} : vector<8x32xbf16>, vector<32x64xbf16>, vector<8x64xf32> -> vector<8x64xf32>
    %c0_79 = arith.constant 0 : index
    %c0_80 = arith.constant 0 : index
    %175 = vector.load %arg19[%c0_79, %c0_80] : memref<1x64xf32, #tpu.memory_space<vmem>>, vector<1x64xf32>
    %176 = vector.broadcast %175 : vector<1x64xf32> to vector<8x64xf32>
    %177 = arith.addf %174, %176 : vector<8x64xf32>
    %cst_81 = arith.constant 5.000000e-01 : f32
    %178 = vector.broadcast %cst_81 : f32 to vector<8x64xf32>
    %179 = arith.mulf %178, %177 : vector<8x64xf32>
    %cst_82 = arith.constant 0.707106769 : f32
    %180 = vector.broadcast %cst_82 : f32 to vector<8x64xf32>
    %181 = arith.mulf %177, %180 : vector<8x64xf32>
    %182 = math.erf %181 : vector<8x64xf32>
    %cst_83 = arith.constant 1.000000e+00 : f32
    %183 = vector.broadcast %cst_83 : f32 to vector<8x64xf32>
    %184 = arith.addf %183, %182 : vector<8x64xf32>
    %185 = arith.mulf %179, %184 : vector<8x64xf32>
    %186 = arith.truncf %185 : vector<8x64xf32> to vector<8x64xbf16>
    %c0_84 = arith.constant 0 : index
    %c0_85 = arith.constant 0 : index
    %187 = vector.load %arg20[%c0_84, %c0_85] : memref<64x32xbf16, #tpu.memory_space<vmem>>, vector<64x32xbf16>
    %cst_86 = arith.constant dense<0.000000e+00> : vector<8x32xf32>
    %188 = tpu.matmul %186, %187, %cst_86 {dimension_numbers = #tpu.dot_dimension_numbers<[1], [0], [0], [1], [0, 0, 1, 1], [], []>} : vector<8x64xbf16>, vector<64x32xbf16>, vector<8x32xf32> -> vector<8x32xf32>
    %c0_87 = arith.constant 0 : index
    %c0_88 = arith.constant 0 : index
    %189 = vector.load %arg21[%c0_87, %c0_88] : memref<1x32xf32, #tpu.memory_space<vmem>>, vector<1x32xf32>
    %190 = vector.broadcast %189 : vector<1x32xf32> to vector<8x32xf32>
    %191 = arith.addf %188, %190 : vector<8x32xf32>
    %192 = arith.addf %171, %191 : vector<8x32xf32>
    %c0_89 = arith.constant 0 : index
    %c0_90 = arith.constant 0 : index
    %193 = vector.load %arg22[%c0_89, %c0_90] : memref<1x32xf32, #tpu.memory_space<vmem>>, vector<1x32xf32>
    %c0_91 = arith.constant 0 : index
    %c0_92 = arith.constant 0 : index
    %194 = vector.load %arg23[%c0_91, %c0_92] : memref<1x32xf32, #tpu.memory_space<vmem>>, vector<1x32xf32>
    %cst_93 = arith.constant dense<0.000000e+00> : vector<8xf32>
    %195 = vector.multi_reduction <add>, %192, %cst_93 [1] : vector<8x32xf32> to vector<8xf32>
    %196 = vector.shape_cast %195 : vector<8xf32> to vector<8x1xf32>
    %cst_94 = arith.constant 3.200000e+01 : f32
    %197 = vector.broadcast %cst_94 : f32 to vector<8x1xf32>
    %198 = arith.divf %196, %197 : vector<8x1xf32>
    %199 = vector.broadcast %198 : vector<8x1xf32> to vector<8x32xf32>
    %200 = arith.subf %192, %199 : vector<8x32xf32>
    %201 = arith.mulf %200, %200 : vector<8x32xf32>
    %cst_95 = arith.constant dense<0.000000e+00> : vector<8xf32>
    %202 = vector.multi_reduction <add>, %201, %cst_95 [1] : vector<8x32xf32> to vector<8xf32>
    %203 = vector.shape_cast %202 : vector<8xf32> to vector<8x1xf32>
    %cst_96 = arith.constant 3.200000e+01 : f32
    %204 = vector.broadcast %cst_96 : f32 to vector<8x1xf32>
    %205 = arith.divf %203, %204 : vector<8x1xf32>
    %206 = vector.broadcast %198 : vector<8x1xf32> to vector<8x32xf32>
    %207 = arith.subf %192, %206 : vector<8x32xf32>
    %cst_97 = arith.constant 9.99999974E-6 : f32
    %208 = vector.broadcast %cst_97 : f32 to vector<8x1xf32>
    %209 = arith.addf %205, %208 : vector<8x1xf32>
    %210 = math.rsqrt %209 : vector<8x1xf32>
    %211 = vector.broadcast %210 : vector<8x1xf32> to vector<8x32xf32>
    %212 = arith.mulf %207, %211 : vector<8x32xf32>
    %213 = vector.broadcast %193 : vector<1x32xf32> to vector<8x32xf32>
    %214 = arith.mulf %212, %213 : vector<8x32xf32>
    %215 = vector.broadcast %194 : vector<1x32xf32> to vector<8x32xf32>
    %216 = arith.addf %214, %215 : vector<8x32xf32>
    %217 = vector.shape_cast %216 : vector<8x32xf32> to vector<1x8x32xf32>
    %c0_98 = arith.constant 0 : index
    %c0_99 = arith.constant 0 : index
    %c0_100 = arith.constant 0 : index
    %218 = vector.load %arg24[%c0_98, %c0_99, %c0_100] : memref<1x8x32xf32, #tpu.memory_space<vmem>>, vector<1x8x32xf32>
    tpu.vector_store %arg24[%c0_98, %c0_99, %c0_100], %217 {strides = array<i32>} : memref<1x8x32xf32, #tpu.memory_space<vmem>>, vector<1x8x32xf32>,
    return
  }
  func.func @transform_0(%arg0: i32) -> (i32, i32) {
    %c0_i32 = arith.constant 0 : i32
    %c0_i32_0 = arith.constant 0 : i32
    %c0_i32_1 = arith.constant 0 : i32
    return %c0_i32, %c0_i32_0 : i32, i32
  }
  func.func @transform_1(%arg0: i32) -> (i32, i32) {
    %c0_i32 = arith.constant 0 : i32
    %c0_i32_0 = arith.constant 0 : i32
    %c0_i32_1 = arith.constant 0 : i32
    return %c0_i32, %c0_i32_0 : i32, i32
  }
  func.func @transform_2(%arg0: i32) -> (i32, i32) {
    %c0_i32 = arith.constant 0 : i32
    %c0_i32_0 = arith.constant 0 : i32
    %c0_i32_1 = arith.constant 0 : i32
    return %c0_i32, %c0_i32_0 : i32, i32
  }
  func.func @transform_3(%arg0: i32) -> i32 {
    %c0_i32 = arith.constant 0 : i32
    %c0_i32_0 = arith.constant 0 : i32
    return %c0_i32 : i32
  }
  func.func @transform_4(%arg0: i32) -> (i32, i32, i32) {
    %c0_i32 = arith.constant 0 : i32
    %c0_i32_0 = arith.constant 0 : i32
    %c0_i32_1 = arith.constant 0 : i32
    return %arg0, %c0_i32, %c0_i32_0 : i32, i32, i32
  }
  func.func @transform_5(%arg0: i32) -> (i32, i32, i32) {
    %c0_i32 = arith.constant 0 : i32
    %c0_i32_0 = arith.constant 0 : i32
    %c0_i32_1 = arith.constant 0 : i32
    return %arg0, %c0_i32, %c0_i32_0 : i32, i32, i32
  }
  func.func @transform_6(%arg0: i32) -> (i32, i32, i32) {
    %c0_i32 = arith.constant 0 : i32
    %c0_i32_0 = arith.constant 0 : i32
    %c0_i32_1 = arith.constant 0 : i32
    return %arg0, %c0_i32, %c0_i32_0 : i32, i32, i32
  }
  func.func @transform_7(%arg0: i32) -> (i32, i32) {
    %c0_i32 = arith.constant 0 : i32
    %c0_i32_0 = arith.constant 0 : i32
    %c0_i32_1 = arith.constant 0 : i32
    return %c0_i32, %c0_i32_0 : i32, i32
  }
  func.func @transform_8(%arg0: i32) -> (i32, i32) {
    %c0_i32 = arith.constant 0 : i32
    %c0_i32_0 = arith.constant 0 : i32
    %c0_i32_1 = arith.constant 0 : i32
    return %c0_i32, %c0_i32_0 : i32, i32
  }
  func.func @transform_9(%arg0: i32) -> (i32, i32) {
    %c0_i32 = arith.constant 0 : i32
    %c0_i32_0 = arith.constant 0 : i32
    %c0_i32_1 = arith.constant 0 : i32
    return %c0_i32, %c0_i32_0 : i32, i32
  }
  func.func @transform_10(%arg0: i32) -> (i32, i32) {
    %c0_i32 = arith.constant 0 : i32
    %c0_i32_0 = arith.constant 0 : i32
    %c0_i32_1 = arith.constant 0 : i32
    return %c0_i32, %c0_i32_0 : i32, i32
  }
  func.func @transform_11(%arg0: i32) -> (i32, i32) {
    %c0_i32 = arith.constant 0 : i32
    %c0_i32_0 = arith.constant 0 : i32
    %c0_i32_1 = arith.constant 0 : i32
    return %c0_i32, %c0_i32_0 : i32, i32
  }
  func.func @transform_12(%arg0: i32) -> (i32, i32) {
    %c0_i32 = arith.constant 0 : i32
    %c0_i32_0 = arith.constant 0 : i32
    %c0_i32_1 = arith.constant 0 : i32
    return %c0_i32, %c0_i32_0 : i32, i32
  }
  func.func @transform_13(%arg0: i32) -> (i32, i32) {
    %c0_i32 = arith.constant 0 : i32
    %c0_i32_0 = arith.constant 0 : i32
    %c0_i32_1 = arith.constant 0 : i32
    return %c0_i32, %c0_i32_0 : i32, i32
  }
  func.func @transform_14(%arg0: i32) -> (i32, i32) {
    %c0_i32 = arith.constant 0 : i32
    %c0_i32_0 = arith.constant 0 : i32
    %c0_i32_1 = arith.constant 0 : i32
    return %c0_i32, %c0_i32_0 : i32, i32
  }
  func.func @transform_15(%arg0: i32) -> (i32, i32) {
    %c0_i32 = arith.constant 0 : i32
    %c0_i32_0 = arith.constant 0 : i32
    %c0_i32_1 = arith.constant 0 : i32
    return %c0_i32, %c0_i32_0 : i32, i32
  }
  func.func @transform_16(%arg0: i32) -> (i32, i32) {
    %c0_i32 = arith.constant 0 : i32
    %c0_i32_0 = arith.constant 0 : i32
    %c0_i32_1 = arith.constant 0 : i32
    return %c0_i32, %c0_i32_0 : i32, i32
  }
  func.func @transform_17(%arg0: i32) -> (i32, i32) {
    %c0_i32 = arith.constant 0 : i32
    %c0_i32_0 = arith.constant 0 : i32
    %c0_i32_1 = arith.constant 0 : i32
    return %c0_i32, %c0_i32_0 : i32, i32
  }
  func.func @transform_18(%arg0: i32) -> (i32, i32) {
    %c0_i32 = arith.constant 0 : i32
    %c0_i32_0 = arith.constant 0 : i32
    %c0_i32_1 = arith.constant 0 : i32
    return %c0_i32, %c0_i32_0 : i32, i32
  }
  func.func @transform_19(%arg0: i32) -> (i32, i32) {
    %c0_i32 = arith.constant 0 : i32
    %c0_i32_0 = arith.constant 0 : i32
    %c0_i32_1 = arith.constant 0 : i32
    return %c0_i32, %c0_i32_0 : i32, i32
  }
  func.func @transform_20(%arg0: i32) -> (i32, i32) {
    %c0_i32 = arith.constant 0 : i32
    %c0_i32_0 = arith.constant 0 : i32
    %c0_i32_1 = arith.constant 0 : i32
    return %c0_i32, %c0_i32_0 : i32, i32
  }
  func.func @transform_21(%arg0: i32) -> (i32, i32) {
    %c0_i32 = arith.constant 0 : i32
    %c0_i32_0 = arith.constant 0 : i32
    %c0_i32_1 = arith.constant 0 : i32
    return %c0_i32, %c0_i32_0 : i32, i32
  }
  func.func @transform_22(%arg0: i32) -> (i32, i32) {
    %c0_i32 = arith.constant 0 : i32
    %c0_i32_0 = arith.constant 0 : i32
    %c0_i32_1 = arith.constant 0 : i32
    return %c0_i32, %c0_i32_0 : i32, i32
  }
  func.func @transform_23(%arg0: i32) -> (i32, i32, i32) {
    %c0_i32 = arith.constant 0 : i32
    %c0_i32_0 = arith.constant 0 : i32
    %c0_i32_1 = arith.constant 0 : i32
    return %arg0, %c0_i32, %c0_i32_0 : i32, i32, i32
  }
  func.func @transform_24(%arg0: i32) -> (i32, i32, i32, i32) {
    %c0_i32 = arith.constant 0 : i32
    %c0_i32_0 = arith.constant 0 : i32
    %c0_i32_1 = arith.constant 0 : i32
    %c0_i32_2 = arith.constant 0 : i32
    return %arg0, %c0_i32, %c0_i32_0, %c0_i32_1 : i32, i32, i32, i32
  }
}

module attributes {stable_mosaic.version = 11 : i64} {
  func.func @_cl4kt_kernel(%arg0: i32, %arg1: memref<8x8xf32, #tpu.memory_space<vmem>>, %arg2: memref<8x8xf32, #tpu.memory_space<vmem>>, %arg3: memref<8x8xbf16, #tpu.memory_space<vmem>>, %arg4: memref<2xf32, #tpu.memory_space<smem>>, %arg5: memref<1x8x32xf32, #tpu.memory_space<vmem>>, %arg6: memref<1x8x32xf32, #tpu.memory_space<vmem>>, %arg7: memref<1x8x32xf32, #tpu.memory_space<vmem>>, %arg8: memref<32x32xbf16, #tpu.memory_space<vmem>>, %arg9: memref<1x32xf32, #tpu.memory_space<vmem>>, %arg10: memref<32x32xbf16, #tpu.memory_space<vmem>>, %arg11: memref<1x32xf32, #tpu.memory_space<vmem>>, %arg12: memref<32x32xbf16, #tpu.memory_space<vmem>>, %arg13: memref<1x32xf32, #tpu.memory_space<vmem>>, %arg14: memref<32x32xbf16, #tpu.memory_space<vmem>>, %arg15: memref<1x32xf32, #tpu.memory_space<vmem>>, %arg16: memref<1x32xf32, #tpu.memory_space<vmem>>, %arg17: memref<1x32xf32, #tpu.memory_space<vmem>>, %arg18: memref<32x64xbf16, #tpu.memory_space<vmem>>, %arg19: memref<1x64xf32, #tpu.memory_space<vmem>>, %arg20: memref<64x32xbf16, #tpu.memory_space<vmem>>, %arg21: memref<1x32xf32, #tpu.memory_space<vmem>>, %arg22: memref<1x32xf32, #tpu.memory_space<vmem>>, %arg23: memref<1x32xf32, #tpu.memory_space<vmem>>, %arg24: memref<1x8x32xf32, #tpu.memory_space<vmem>>, %arg25: memref<1x2x8x8xbf16, #tpu.memory_space<vmem>>) attributes {dimension_semantics = [#tpu.dimension_semantics<parallel>], iteration_bounds = array<i64: 2>, scalar_prefetch = 0 : i64, scratch_operands = 0 : i64, tpu.core_type = #tpu.core_type<tc>, window_params = [{pipeline_mode = #tpu.pipeline_mode<synchronous>, transform_indices = @transform_0, window_bounds = array<i64: 8, 8>}, {pipeline_mode = #tpu.pipeline_mode<synchronous>, transform_indices = @transform_1, window_bounds = array<i64: 8, 8>}, {pipeline_mode = #tpu.pipeline_mode<synchronous>, transform_indices = @transform_2, window_bounds = array<i64: 8, 8>}, {transform_indices = @transform_3, window_bounds = array<i64: 2>}, {transform_indices = @transform_4, window_bounds = array<i64: 1, 8, 32>}, {transform_indices = @transform_5, window_bounds = array<i64: 1, 8, 32>}, {transform_indices = @transform_6, window_bounds = array<i64: 1, 8, 32>}, {pipeline_mode = #tpu.pipeline_mode<synchronous>, transform_indices = @transform_7, window_bounds = array<i64: 32, 32>}, {pipeline_mode = #tpu.pipeline_mode<synchronous>, transform_indices = @transform_8, window_bounds = array<i64: 1, 32>}, {pipeline_mode = #tpu.pipeline_mode<synchronous>, transform_indices = @transform_9, window_bounds = array<i64: 32, 32>}, {pipeline_mode = #tpu.pipeline_mode<synchronous>, transform_indices = @transform_10, window_bounds = array<i64: 1, 32>}, {pipeline_mode = #tpu.pipeline_mode<synchronous>, transform_indices = @transform_11, window_bounds = array<i64: 32, 32>}, {pipeline_mode = #tpu.pipeline_mode<synchronous>, transform_indices = @transform_12, window_bounds = array<i64: 1, 32>}, {pipeline_mode = #tpu.pipeline_mode<synchronous>, transform_indices = @transform_13, window_bounds = array<i64: 32, 32>}, {pipeline_mode = #tpu.pipeline_mode<synchronous>, transform_indices = @transform_14, window_bounds = array<i64: 1, 32>}, {pipeline_mode = #tpu.pipeline_mode<synchronous>, transform_indices = @transform_15, window_bounds = array<i64: 1, 32>}, {pipeline_mode = #tpu.pipeline_mode<synchronous>, transform_indices = @transform_16, window_bounds = array<i64: 1, 32>}, {pipeline_mode = #tpu.pipeline_mode<synchronous>, transform_indices = @transform_17, window_bounds = array<i64: 32, 64>}, {pipeline_mode = #tpu.pipeline_mode<synchronous>, transform_indices = @transform_18, window_bounds = array<i64: 1, 64>}, {pipeline_mode = #tpu.pipeline_mode<synchronous>, transform_indices = @transform_19, window_bounds = array<i64: 64, 32>}, {pipeline_mode = #tpu.pipeline_mode<synchronous>, transform_indices = @transform_20, window_bounds = array<i64: 1, 32>}, {pipeline_mode = #tpu.pipeline_mode<synchronous>, transform_indices = @transform_21, window_bounds = array<i64: 1, 32>}, {pipeline_mode = #tpu.pipeline_mode<synchronous>, transform_indices = @transform_22, window_bounds = array<i64: 1, 32>}, {transform_indices = @transform_23, window_bounds = array<i64: 1, 8, 32>}, {transform_indices = @transform_24, window_bounds = array<i64: 1, 2, 8, 8>}]} {
    %c0 = arith.constant 0 : index
    %c0_0 = arith.constant 0 : index
    %c0_1 = arith.constant 0 : index
    %0 = vector.load %arg5[%c0, %c0_0, %c0_1] : memref<1x8x32xf32, #tpu.memory_space<vmem>>, vector<1x8x32xf32>
    %1 = vector.shape_cast %0 : vector<1x8x32xf32> to vector<8x32xf32>
    %c0_2 = arith.constant 0 : index
    %c0_3 = arith.constant 0 : index
    %c0_4 = arith.constant 0 : index
    %2 = vector.load %arg6[%c0_2, %c0_3, %c0_4] : memref<1x8x32xf32, #tpu.memory_space<vmem>>, vector<1x8x32xf32>
    %3 = vector.shape_cast %2 : vector<1x8x32xf32> to vector<8x32xf32>
    %c0_5 = arith.constant 0 : index
    %c0_6 = arith.constant 0 : index
    %c0_7 = arith.constant 0 : index
    %4 = vector.load %arg7[%c0_5, %c0_6, %c0_7] : memref<1x8x32xf32, #tpu.memory_space<vmem>>, vector<1x8x32xf32>
    %5 = vector.shape_cast %4 : vector<1x8x32xf32> to vector<8x32xf32>
    %6 = arith.truncf %1 : vector<8x32xf32> to vector<8x32xbf16>
    %c0_8 = arith.constant 0 : index
    %c0_9 = arith.constant 0 : index
    %7 = vector.load %arg8[%c0_8, %c0_9] : memref<32x32xbf16, #tpu.memory_space<vmem>>, vector<32x32xbf16>
    %cst = arith.constant dense<0.000000e+00> : vector<8x32xf32>
    %8 = tpu.matmul %6, %7, %cst {dimension_numbers = #tpu.dot_dimension_numbers<[1], [0], [0], [1], [0, 0, 1, 1], [], []>} : vector<8x32xbf16>, vector<32x32xbf16>, vector<8x32xf32> -> vector<8x32xf32>
    %c0_10 = arith.constant 0 : index
    %c0_11 = arith.constant 0 : index
    %9 = vector.load %arg9[%c0_10, %c0_11] : memref<1x32xf32, #tpu.memory_space<vmem>>, vector<1x32xf32>
    %10 = vector.broadcast %9 : vector<1x32xf32> to vector<8x32xf32>
    %11 = arith.addf %8, %10 : vector<8x32xf32>
    %12 = arith.truncf %3 : vector<8x32xf32> to vector<8x32xbf16>
    %c0_12 = arith.constant 0 : index
    %c0_13 = arith.constant 0 : index
    %13 = vector.load %arg10[%c0_12, %c0_13] : memref<32x32xbf16, #tpu.memory_space<vmem>>, vector<32x32xbf16>
    %cst_14 = arith.constant dense<0.000000e+00> : vector<8x32xf32>
    %14 = tpu.matmul %12, %13, %cst_14 {dimension_numbers = #tpu.dot_dimension_numbers<[1], [0], [0], [1], [0, 0, 1, 1], [], []>} : vector<8x32xbf16>, vector<32x32xbf16>, vector<8x32xf32> -> vector<8x32xf32>
    %c0_15 = arith.constant 0 : index
    %c0_16 = arith.constant 0 : index
    %15 = vector.load %arg11[%c0_15, %c0_16] : memref<1x32xf32, #tpu.memory_space<vmem>>, vector<1x32xf32>
    %16 = vector.broadcast %15 : vector<1x32xf32> to vector<8x32xf32>
    %17 = arith.addf %14, %16 : vector<8x32xf32>
    %18 = arith.truncf %5 : vector<8x32xf32> to vector<8x32xbf16>
    %c0_17 = arith.constant 0 : index
    %c0_18 = arith.constant 0 : index
    %19 = vector.load %arg12[%c0_17, %c0_18] : memref<32x32xbf16, #tpu.memory_space<vmem>>, vector<32x32xbf16>
    %cst_19 = arith.constant dense<0.000000e+00> : vector<8x32xf32>
    %20 = tpu.matmul %18, %19, %cst_19 {dimension_numbers = #tpu.dot_dimension_numbers<[1], [0], [0], [1], [0, 0, 1, 1], [], []>} : vector<8x32xbf16>, vector<32x32xbf16>, vector<8x32xf32> -> vector<8x32xf32>
    %c0_20 = arith.constant 0 : index
    %c0_21 = arith.constant 0 : index
    %21 = vector.load %arg13[%c0_20, %c0_21] : memref<1x32xf32, #tpu.memory_space<vmem>>, vector<1x32xf32>
    %22 = vector.broadcast %21 : vector<1x32xf32> to vector<8x32xf32>
    %23 = arith.addf %20, %22 : vector<8x32xf32>
    %24 = vector.shape_cast %11 : vector<8x32xf32> to vector<1x8x32xf32>
    %25 = arith.truncf %24 : vector<1x8x32xf32> to vector<1x8x32xbf16>
    %26 = vector.shape_cast %17 : vector<8x32xf32> to vector<1x8x32xf32>
    %27 = arith.truncf %26 : vector<1x8x32xf32> to vector<1x8x32xbf16>
    %28 = vector.shape_cast %23 : vector<8x32xf32> to vector<1x8x32xf32>
    %29 = arith.truncf %28 : vector<1x8x32xf32> to vector<1x8x32xbf16>
    %c0_22 = arith.constant 0 : index
    %c0_23 = arith.constant 0 : index
    %30 = vector.load %arg1[%c0_22, %c0_23] : memref<8x8xf32, #tpu.memory_space<vmem>>, vector<8x8xf32>
    %cst_24 = arith.constant 0.000000e+00 : f32
    %31 = vector.broadcast %cst_24 : f32 to vector<8x8xf32>
    %32 = arith.cmpf one, %30, %31 : vector<8x8xf32>
    %c0_25 = arith.constant 0 : index
    %c0_26 = arith.constant 0 : index
    %33 = vector.load %arg2[%c0_25, %c0_26] : memref<8x8xf32, #tpu.memory_space<vmem>>, vector<8x8xf32>
    %c0_27 = arith.constant 0 : index
    %c0_28 = arith.constant 0 : index
    %34 = vector.load %arg3[%c0_27, %c0_28] : memref<8x8xbf16, #tpu.memory_space<vmem>>, vector<8x8xbf16>
    %35 = vector.extract_strided_slice %25 {offsets = [0, 0, 0], sizes = [1, 8, 16], strides = [1, 1, 1]} : vector<1x8x32xbf16> to vector<1x8x16xbf16>
    %36 = vector.extract_strided_slice %27 {offsets = [0, 0, 0], sizes = [1, 8, 16], strides = [1, 1, 1]} : vector<1x8x32xbf16> to vector<1x8x16xbf16>
    %37 = vector.extract_strided_slice %29 {offsets = [0, 0, 0], sizes = [1, 8, 16], strides = [1, 1, 1]} : vector<1x8x32xbf16> to vector<1x8x16xbf16>
    %cst_29 = arith.constant dense<0.000000e+00> : vector<1x8x8xf32>
    %38 = tpu.matmul %35, %36, %cst_29 {dimension_numbers = #tpu.dot_dimension_numbers<[2], [2], [1], [1], [0, 0, 0, 1, 1, 1], [0], [0]>} : vector<1x8x16xbf16>, vector<1x8x16xbf16>, vector<1x8x8xf32> -> vector<1x8x8xf32>
    %cst_30 = arith.constant 2.500000e-01 : f32
    %39 = vector.broadcast %cst_30 : f32 to vector<1x8x8xf32>
    %40 = arith.mulf %38, %39 : vector<1x8x8xf32>
    %cst_31 = arith.constant -1.000000e+32 : f32
    %41 = vector.shape_cast %32 : vector<8x8xi1> to vector<1x8x8xi1>
    %42 = vector.broadcast %cst_31 : f32 to vector<1x8x8xf32>
    %43 = arith.select %41, %40, %42 : vector<1x8x8xi1>, vector<1x8x8xf32>
    %cst_32 = arith.constant dense<0xFF800000> : vector<1x8xf32>
    %44 = vector.multi_reduction <maximumf>, %43, %cst_32 [2] : vector<1x8x8xf32> to vector<1x8xf32>
    %45 = vector.shape_cast %44 : vector<1x8xf32> to vector<1x8x1xf32>
    %46 = vector.broadcast %45 : vector<1x8x1xf32> to vector<1x8x8xf32>
    %47 = arith.subf %43, %46 : vector<1x8x8xf32>
    %48 = math.exp %47 : vector<1x8x8xf32>
    %cst_33 = arith.constant dense<0.000000e+00> : vector<1x8xf32>
    %49 = vector.multi_reduction <add>, %48, %cst_33 [2] : vector<1x8x8xf32> to vector<1x8xf32>
    %50 = vector.shape_cast %49 : vector<1x8xf32> to vector<1x8x1xf32>
    %51 = tpu.reciprocal %50 {approx = true} : vector<1x8x1xf32> -> vector<1x8x1xf32>
    %52 = vector.broadcast %51 : vector<1x8x1xf32> to vector<1x8x8xf32>
    %53 = arith.mulf %48, %52 : vector<1x8x8xf32>
    %54 = arith.truncf %53 : vector<1x8x8xf32> to vector<1x8x8xbf16>
    %cst_34 = arith.constant dense<0.000000e+00> : vector<1x8x8xf32>
    %55 = tpu.matmul %54, %34, %cst_34 {dimension_numbers = #tpu.dot_dimension_numbers<[2], [0], [0, 1], [1], [0, 0, 0, 1, 1, 1], [], []>} : vector<1x8x8xbf16>, vector<8x8xbf16>, vector<1x8x8xf32> -> vector<1x8x8xf32>
    %56 = vector.shape_cast %33 : vector<8x8xf32> to vector<1x8x8xf32>
    %57 = arith.mulf %55, %56 : vector<1x8x8xf32>
    %cst_35 = arith.constant 0.000000e+00 : f32
    %58 = vector.broadcast %cst_35 : f32 to vector<1x8x8xf32>
    %59 = arith.maximumf %57, %58 : vector<1x8x8xf32>
    %60 = math.sqrt %59 : vector<1x8x8xf32>
    %c0_36 = arith.constant 0 : index
    %61 = memref.load %arg4[%c0_36] : memref<2xf32, #tpu.memory_space<smem>>
    %62 = vector.broadcast %61 : f32 to vector<1x8x8xf32>
    %63 = arith.mulf %60, %62 : vector<1x8x8xf32>
    %64 = math.exp %63 : vector<1x8x8xf32>
    %cst_37 = arith.constant 9.99999974E-6 : f32
    %65 = vector.broadcast %cst_37 : f32 to vector<1x8x8xf32>
    %66 = arith.maximumf %64, %65 : vector<1x8x8xf32>
    %67 = arith.mulf %40, %66 : vector<1x8x8xf32>
    %cst_38 = arith.constant -1.000000e+32 : f32
    %68 = vector.shape_cast %32 : vector<8x8xi1> to vector<1x8x8xi1>
    %69 = vector.broadcast %cst_38 : f32 to vector<1x8x8xf32>
    %70 = arith.select %68, %67, %69 : vector<1x8x8xi1>, vector<1x8x8xf32>
    %cst_39 = arith.constant dense<0xFF800000> : vector<1x8xf32>
    %71 = vector.multi_reduction <maximumf>, %70, %cst_39 [2] : vector<1x8x8xf32> to vector<1x8xf32>
    %72 = vector.shape_cast %71 : vector<1x8xf32> to vector<1x8x1xf32>
    %73 = vector.broadcast %72 : vector<1x8x1xf32> to vector<1x8x8xf32>
    %74 = arith.subf %70, %73 : vector<1x8x8xf32>
    %75 = math.exp %74 : vector<1x8x8xf32>
    %cst_40 = arith.constant dense<0.000000e+00> : vector<1x8xf32>
    %76 = vector.multi_reduction <add>, %75, %cst_40 [2] : vector<1x8x8xf32> to vector<1x8xf32>
    %77 = vector.shape_cast %76 : vector<1x8xf32> to vector<1x8x1xf32>
    %78 = tpu.reciprocal %77 {approx = true} : vector<1x8x1xf32> -> vector<1x8x1xf32>
    %79 = vector.broadcast %78 : vector<1x8x1xf32> to vector<1x8x8xf32>
    %80 = arith.mulf %75, %79 : vector<1x8x8xf32>
    %81 = arith.truncf %80 : vector<1x8x8xf32> to vector<1x8x8xbf16>
    %c0_41 = arith.constant 0 : index
    %c0_42 = arith.constant 0 : index
    %c0_43 = arith.constant 0 : index
    %c0_44 = arith.constant 0 : index
    %82 = vector.load %arg25[%c0_41, %c0_42, %c0_43, %c0_44] : memref<1x2x8x8xbf16, #tpu.memory_space<vmem>>, vector<1x1x8x8xbf16>
    %83 = vector.shape_cast %82 : vector<1x1x8x8xbf16> to vector<1x8x8xbf16>
    %84 = vector.shape_cast %81 : vector<1x8x8xbf16> to vector<1x1x8x8xbf16>
    tpu.vector_store %arg25[%c0_41, %c0_42, %c0_43, %c0_44], %84 {strides = array<i32>} : memref<1x2x8x8xbf16, #tpu.memory_space<vmem>>, vector<1x1x8x8xbf16>,
    %85 = arith.truncf %80 : vector<1x8x8xf32> to vector<1x8x8xbf16>
    %cst_45 = arith.constant dense<0.000000e+00> : vector<1x8x16xf32>
    %86 = tpu.matmul %85, %37, %cst_45 {dimension_numbers = #tpu.dot_dimension_numbers<[2], [1], [1], [2], [0, 0, 0, 1, 1, 2], [0], [0]>} : vector<1x8x8xbf16>, vector<1x8x16xbf16>, vector<1x8x16xf32> -> vector<1x8x16xf32>
    %87 = vector.extract_strided_slice %25 {offsets = [0, 0, 16], sizes = [1, 8, 16], strides = [1, 1, 1]} : vector<1x8x32xbf16> to vector<1x8x16xbf16>
    %88 = vector.extract_strided_slice %27 {offsets = [0, 0, 16], sizes = [1, 8, 16], strides = [1, 1, 1]} : vector<1x8x32xbf16> to vector<1x8x16xbf16>
    %89 = vector.extract_strided_slice %29 {offsets = [0, 0, 16], sizes = [1, 8, 16], strides = [1, 1, 1]} : vector<1x8x32xbf16> to vector<1x8x16xbf16>
    %cst_46 = arith.constant dense<0.000000e+00> : vector<1x8x8xf32>
    %90 = tpu.matmul %87, %88, %cst_46 {dimension_numbers = #tpu.dot_dimension_numbers<[2], [2], [1], [1], [0, 0, 0, 1, 1, 1], [0], [0]>} : vector<1x8x16xbf16>, vector<1x8x16xbf16>, vector<1x8x8xf32> -> vector<1x8x8xf32>
    %cst_47 = arith.constant 2.500000e-01 : f32
    %91 = vector.broadcast %cst_47 : f32 to vector<1x8x8xf32>
    %92 = arith.mulf %90, %91 : vector<1x8x8xf32>
    %cst_48 = arith.constant -1.000000e+32 : f32
    %93 = vector.shape_cast %32 : vector<8x8xi1> to vector<1x8x8xi1>
    %94 = vector.broadcast %cst_48 : f32 to vector<1x8x8xf32>
    %95 = arith.select %93, %92, %94 : vector<1x8x8xi1>, vector<1x8x8xf32>
    %cst_49 = arith.constant dense<0xFF800000> : vector<1x8xf32>
    %96 = vector.multi_reduction <maximumf>, %95, %cst_49 [2] : vector<1x8x8xf32> to vector<1x8xf32>
    %97 = vector.shape_cast %96 : vector<1x8xf32> to vector<1x8x1xf32>
    %98 = vector.broadcast %97 : vector<1x8x1xf32> to vector<1x8x8xf32>
    %99 = arith.subf %95, %98 : vector<1x8x8xf32>
    %100 = math.exp %99 : vector<1x8x8xf32>
    %cst_50 = arith.constant dense<0.000000e+00> : vector<1x8xf32>
    %101 = vector.multi_reduction <add>, %100, %cst_50 [2] : vector<1x8x8xf32> to vector<1x8xf32>
    %102 = vector.shape_cast %101 : vector<1x8xf32> to vector<1x8x1xf32>
    %103 = tpu.reciprocal %102 {approx = true} : vector<1x8x1xf32> -> vector<1x8x1xf32>
    %104 = vector.broadcast %103 : vector<1x8x1xf32> to vector<1x8x8xf32>
    %105 = arith.mulf %100, %104 : vector<1x8x8xf32>
    %106 = arith.truncf %105 : vector<1x8x8xf32> to vector<1x8x8xbf16>
    %cst_51 = arith.constant dense<0.000000e+00> : vector<1x8x8xf32>
    %107 = tpu.matmul %106, %34, %cst_51 {dimension_numbers = #tpu.dot_dimension_numbers<[2], [0], [0, 1], [1], [0, 0, 0, 1, 1, 1], [], []>} : vector<1x8x8xbf16>, vector<8x8xbf16>, vector<1x8x8xf32> -> vector<1x8x8xf32>
    %108 = vector.shape_cast %33 : vector<8x8xf32> to vector<1x8x8xf32>
    %109 = arith.mulf %107, %108 : vector<1x8x8xf32>
    %cst_52 = arith.constant 0.000000e+00 : f32
    %110 = vector.broadcast %cst_52 : f32 to vector<1x8x8xf32>
    %111 = arith.maximumf %109, %110 : vector<1x8x8xf32>
    %112 = math.sqrt %111 : vector<1x8x8xf32>
    %c1 = arith.constant 1 : index
    %113 = memref.load %arg4[%c1] : memref<2xf32, #tpu.memory_space<smem>>
    %114 = vector.broadcast %113 : f32 to vector<1x8x8xf32>
    %115 = arith.mulf %112, %114 : vector<1x8x8xf32>
    %116 = math.exp %115 : vector<1x8x8xf32>
    %cst_53 = arith.constant 9.99999974E-6 : f32
    %117 = vector.broadcast %cst_53 : f32 to vector<1x8x8xf32>
    %118 = arith.maximumf %116, %117 : vector<1x8x8xf32>
    %119 = arith.mulf %92, %118 : vector<1x8x8xf32>
    %cst_54 = arith.constant -1.000000e+32 : f32
    %120 = vector.shape_cast %32 : vector<8x8xi1> to vector<1x8x8xi1>
    %121 = vector.broadcast %cst_54 : f32 to vector<1x8x8xf32>
    %122 = arith.select %120, %119, %121 : vector<1x8x8xi1>, vector<1x8x8xf32>
    %cst_55 = arith.constant dense<0xFF800000> : vector<1x8xf32>
    %123 = vector.multi_reduction <maximumf>, %122, %cst_55 [2] : vector<1x8x8xf32> to vector<1x8xf32>
    %124 = vector.shape_cast %123 : vector<1x8xf32> to vector<1x8x1xf32>
    %125 = vector.broadcast %124 : vector<1x8x1xf32> to vector<1x8x8xf32>
    %126 = arith.subf %122, %125 : vector<1x8x8xf32>
    %127 = math.exp %126 : vector<1x8x8xf32>
    %cst_56 = arith.constant dense<0.000000e+00> : vector<1x8xf32>
    %128 = vector.multi_reduction <add>, %127, %cst_56 [2] : vector<1x8x8xf32> to vector<1x8xf32>
    %129 = vector.shape_cast %128 : vector<1x8xf32> to vector<1x8x1xf32>
    %130 = tpu.reciprocal %129 {approx = true} : vector<1x8x1xf32> -> vector<1x8x1xf32>
    %131 = vector.broadcast %130 : vector<1x8x1xf32> to vector<1x8x8xf32>
    %132 = arith.mulf %127, %131 : vector<1x8x8xf32>
    %133 = arith.truncf %132 : vector<1x8x8xf32> to vector<1x8x8xbf16>
    %c0_57 = arith.constant 0 : index
    %c1_58 = arith.constant 1 : index
    %c0_59 = arith.constant 0 : index
    %c0_60 = arith.constant 0 : index
    %134 = vector.load %arg25[%c0_57, %c1_58, %c0_59, %c0_60] : memref<1x2x8x8xbf16, #tpu.memory_space<vmem>>, vector<1x1x8x8xbf16>
    %135 = vector.shape_cast %134 : vector<1x1x8x8xbf16> to vector<1x8x8xbf16>
    %136 = vector.shape_cast %133 : vector<1x8x8xbf16> to vector<1x1x8x8xbf16>
    tpu.vector_store %arg25[%c0_57, %c1_58, %c0_59, %c0_60], %136 {strides = array<i32>} : memref<1x2x8x8xbf16, #tpu.memory_space<vmem>>, vector<1x1x8x8xbf16>,
    %137 = arith.truncf %132 : vector<1x8x8xf32> to vector<1x8x8xbf16>
    %cst_61 = arith.constant dense<0.000000e+00> : vector<1x8x16xf32>
    %138 = tpu.matmul %137, %89, %cst_61 {dimension_numbers = #tpu.dot_dimension_numbers<[2], [1], [1], [2], [0, 0, 0, 1, 1, 2], [0], [0]>} : vector<1x8x8xbf16>, vector<1x8x16xbf16>, vector<1x8x16xf32> -> vector<1x8x16xf32>
    %139 = tpu.concatenate %86, %138 in 2 : vector<1x8x16xf32>, vector<1x8x16xf32> -> vector<1x8x32xf32>
    %140 = vector.shape_cast %139 : vector<1x8x32xf32> to vector<8x32xf32>
    %141 = arith.truncf %140 : vector<8x32xf32> to vector<8x32xbf16>
    %c0_62 = arith.constant 0 : index
    %c0_63 = arith.constant 0 : index
    %142 = vector.load %arg14[%c0_62, %c0_63] : memref<32x32xbf16, #tpu.memory_space<vmem>>, vector<32x32xbf16>
    %cst_64 = arith.constant dense<0.000000e+00> : vector<8x32xf32>
    %143 = tpu.matmul %141, %142, %cst_64 {dimension_numbers = #tpu.dot_dimension_numbers<[1], [0], [0], [1], [0, 0, 1, 1], [], []>} : vector<8x32xbf16>, vector<32x32xbf16>, vector<8x32xf32> -> vector<8x32xf32>
    %c0_65 = arith.constant 0 : index
    %c0_66 = arith.constant 0 : index
    %144 = vector.load %arg15[%c0_65, %c0_66] : memref<1x32xf32, #tpu.memory_space<vmem>>, vector<1x32xf32>
    %145 = vector.broadcast %144 : vector<1x32xf32> to vector<8x32xf32>
    %146 = arith.addf %143, %145 : vector<8x32xf32>
    %147 = arith.addf %1, %146 : vector<8x32xf32>
    %c0_67 = arith.constant 0 : index
    %c0_68 = arith.constant 0 : index
    %148 = vector.load %arg16[%c0_67, %c0_68] : memref<1x32xf32, #tpu.memory_space<vmem>>, vector<1x32xf32>
    %c0_69 = arith.constant 0 : index
    %c0_70 = arith.constant 0 : index
    %149 = vector.load %arg17[%c0_69, %c0_70] : memref<1x32xf32, #tpu.memory_space<vmem>>, vector<1x32xf32>
    %cst_71 = arith.constant dense<0.000000e+00> : vector<8xf32>
    %150 = vector.multi_reduction <add>, %147, %cst_71 [1] : vector<8x32xf32> to vector<8xf32>
    %151 = vector.shape_cast %150 : vector<8xf32> to vector<8x1xf32>
    %cst_72 = arith.constant 3.200000e+01 : f32
    %152 = vector.broadcast %cst_72 : f32 to vector<8x1xf32>
    %153 = arith.divf %151, %152 : vector<8x1xf32>
    %154 = vector.broadcast %153 : vector<8x1xf32> to vector<8x32xf32>
    %155 = arith.subf %147, %154 : vector<8x32xf32>
    %156 = arith.mulf %155, %155 : vector<8x32xf32>
    %cst_73 = arith.constant dense<0.000000e+00> : vector<8xf32>
    %157 = vector.multi_reduction <add>, %156, %cst_73 [1] : vector<8x32xf32> to vector<8xf32>
    %158 = vector.shape_cast %157 : vector<8xf32> to vector<8x1xf32>
    %cst_74 = arith.constant 3.200000e+01 : f32
    %159 = vector.broadcast %cst_74 : f32 to vector<8x1xf32>
    %160 = arith.divf %158, %159 : vector<8x1xf32>
    %161 = vector.broadcast %153 : vector<8x1xf32> to vector<8x32xf32>
    %162 = arith.subf %147, %161 : vector<8x32xf32>
    %cst_75 = arith.constant 9.99999974E-6 : f32
    %163 = vector.broadcast %cst_75 : f32 to vector<8x1xf32>
    %164 = arith.addf %160, %163 : vector<8x1xf32>
    %165 = math.rsqrt %164 : vector<8x1xf32>
    %166 = vector.broadcast %165 : vector<8x1xf32> to vector<8x32xf32>
    %167 = arith.mulf %162, %166 : vector<8x32xf32>
    %168 = vector.broadcast %148 : vector<1x32xf32> to vector<8x32xf32>
    %169 = arith.mulf %167, %168 : vector<8x32xf32>
    %170 = vector.broadcast %149 : vector<1x32xf32> to vector<8x32xf32>
    %171 = arith.addf %169, %170 : vector<8x32xf32>
    %172 = arith.truncf %171 : vector<8x32xf32> to vector<8x32xbf16>
    %c0_76 = arith.constant 0 : index
    %c0_77 = arith.constant 0 : index
    %173 = vector.load %arg18[%c0_76, %c0_77] : memref<32x64xbf16, #tpu.memory_space<vmem>>, vector<32x64xbf16>
    %cst_78 = arith.constant dense<0.000000e+00> : vector<8x64xf32>
    %174 = tpu.matmul %172, %173, %cst_78 {dimension_numbers = #tpu.dot_dimension_numbers<[1], [0], [0], [1], [0, 0, 1, 1], [], []>} : vector<8x32xbf16>, vector<32x64xbf16>, vector<8x64xf32> -> vector<8x64xf32>
    %c0_79 = arith.constant 0 : index
    %c0_80 = arith.constant 0 : index
    %175 = vector.load %arg19[%c0_79, %c0_80] : memref<1x64xf32, #tpu.memory_space<vmem>>, vector<1x64xf32>
    %176 = vector.broadcast %175 : vector<1x64xf32> to vector<8x64xf32>
    %177 = arith.addf %174, %176 : vector<8x64xf32>
    %cst_81 = arith.constant 5.000000e-01 : f32
    %178 = vector.broadcast %cst_81 : f32 to vector<8x64xf32>
    %179 = arith.mulf %178, %177 : vector<8x64xf32>
    %cst_82 = arith.constant 0.707106769 : f32
    %180 = vector.broadcast %cst_82 : f32 to vector<8x64xf32>
    %181 = arith.mulf %177, %180 : vector<8x64xf32>
    %182 = math.erf %181 : vector<8x64xf32>
    %cst_83 = arith.constant 1.000000e+00 : f32
    %183 = vector.broadcast %cst_83 : f32 to vector<8x64xf32>
    %184 = arith.addf %183, %182 : vector<8x64xf32>
    %185 = arith.mulf %179, %184 : vector<8x64xf32>
    %186 = arith.truncf %185 : vector<8x64xf32> to vector<8x64xbf16>
    %c0_84 = arith.constant 0 : index
    %c0_85 = arith.constant 0 : index
    %187 = vector.load %arg20[%c0_84, %c0_85] : memref<64x32xbf16, #tpu.memory_space<vmem>>, vector<64x32xbf16>
    %cst_86 = arith.constant dense<0.000000e+00> : vector<8x32xf32>
    %188 = tpu.matmul %186, %187, %cst_86 {dimension_numbers = #tpu.dot_dimension_numbers<[1], [0], [0], [1], [0, 0, 1, 1], [], []>} : vector<8x64xbf16>, vector<64x32xbf16>, vector<8x32xf32> -> vector<8x32xf32>
    %c0_87 = arith.constant 0 : index
    %c0_88 = arith.constant 0 : index
    %189 = vector.load %arg21[%c0_87, %c0_88] : memref<1x32xf32, #tpu.memory_space<vmem>>, vector<1x32xf32>
    %190 = vector.broadcast %189 : vector<1x32xf32> to vector<8x32xf32>
    %191 = arith.addf %188, %190 : vector<8x32xf32>
    %192 = arith.addf %171, %191 : vector<8x32xf32>
    %c0_89 = arith.constant 0 : index
    %c0_90 = arith.constant 0 : index
    %193 = vector.load %arg22[%c0_89, %c0_90] : memref<1x32xf32, #tpu.memory_space<vmem>>, vector<1x32xf32>
    %c0_91 = arith.constant 0 : index
    %c0_92 = arith.constant 0 : index
    %194 = vector.load %arg23[%c0_91, %c0_92] : memref<1x32xf32, #tpu.memory_space<vmem>>, vector<1x32xf32>
    %cst_93 = arith.constant dense<0.000000e+00> : vector<8xf32>
    %195 = vector.multi_reduction <add>, %192, %cst_93 [1] : vector<8x32xf32> to vector<8xf32>
    %196 = vector.shape_cast %195 : vector<8xf32> to vector<8x1xf32>
    %cst_94 = arith.constant 3.200000e+01 : f32
    %197 = vector.broadcast %cst_94 : f32 to vector<8x1xf32>
    %198 = arith.divf %196, %197 : vector<8x1xf32>
    %199 = vector.broadcast %198 : vector<8x1xf32> to vector<8x32xf32>
    %200 = arith.subf %192, %199 : vector<8x32xf32>
    %201 = arith.mulf %200, %200 : vector<8x32xf32>
    %cst_95 = arith.constant dense<0.000000e+00> : vector<8xf32>
    %202 = vector.multi_reduction <add>, %201, %cst_95 [1] : vector<8x32xf32> to vector<8xf32>
    %203 = vector.shape_cast %202 : vector<8xf32> to vector<8x1xf32>
    %cst_96 = arith.constant 3.200000e+01 : f32
    %204 = vector.broadcast %cst_96 : f32 to vector<8x1xf32>
    %205 = arith.divf %203, %204 : vector<8x1xf32>
    %206 = vector.broadcast %198 : vector<8x1xf32> to vector<8x32xf32>
    %207 = arith.subf %192, %206 : vector<8x32xf32>
    %cst_97 = arith.constant 9.99999974E-6 : f32
    %208 = vector.broadcast %cst_97 : f32 to vector<8x1xf32>
    %209 = arith.addf %205, %208 : vector<8x1xf32>
    %210 = math.rsqrt %209 : vector<8x1xf32>
    %211 = vector.broadcast %210 : vector<8x1xf32> to vector<8x32xf32>
    %212 = arith.mulf %207, %211 : vector<8x32xf32>
    %213 = vector.broadcast %193 : vector<1x32xf32> to vector<8x32xf32>
    %214 = arith.mulf %212, %213 : vector<8x32xf32>
    %215 = vector.broadcast %194 : vector<1x32xf32> to vector<8x32xf32>
    %216 = arith.addf %214, %215 : vector<8x32xf32>
    %217 = vector.shape_cast %216 : vector<8x32xf32> to vector<1x8x32xf32>
    %c0_98 = arith.constant 0 : index
    %c0_99 = arith.constant 0 : index
    %c0_100 = arith.constant 0 : index
    %218 = vector.load %arg24[%c0_98, %c0_99, %c0_100] : memref<1x8x32xf32, #tpu.memory_space<vmem>>, vector<1x8x32xf32>
    tpu.vector_store %arg24[%c0_98, %c0_99, %c0_100], %217 {strides = array<i32>} : memref<1x8x32xf32, #tpu.memory_space<vmem>>, vector<1x8x32xf32>,
    return
  }
  func.func @transform_0(%arg0: i32) -> (i32, i32) {
    %c0_i32 = arith.constant 0 : i32
    %c0_i32_0 = arith.constant 0 : i32
    %c0_i32_1 = arith.constant 0 : i32
    return %c0_i32, %c0_i32_0 : i32, i32
  }
  func.func @transform_1(%arg0: i32) -> (i32, i32) {
    %c0_i32 = arith.constant 0 : i32
    %c0_i32_0 = arith.constant 0 : i32
    %c0_i32_1 = arith.constant 0 : i32
    return %c0_i32, %c0_i32_0 : i32, i32
  }
  func.func @transform_2(%arg0: i32) -> (i32, i32) {
    %c0_i32 = arith.constant 0 : i32
    %c0_i32_0 = arith.constant 0 : i32
    %c0_i32_1 = arith.constant 0 : i32
    return %c0_i32, %c0_i32_0 : i32, i32
  }
  func.func @transform_3(%arg0: i32) -> i32 {
    %c0_i32 = arith.constant 0 : i32
    %c0_i32_0 = arith.constant 0 : i32
    return %c0_i32 : i32
  }
  func.func @transform_4(%arg0: i32) -> (i32, i32, i32) {
    %c0_i32 = arith.constant 0 : i32
    %c0_i32_0 = arith.constant 0 : i32
    %c0_i32_1 = arith.constant 0 : i32
    return %arg0, %c0_i32, %c0_i32_0 : i32, i32, i32
  }
  func.func @transform_5(%arg0: i32) -> (i32, i32, i32) {
    %c0_i32 = arith.constant 0 : i32
    %c0_i32_0 = arith.constant 0 : i32
    %c0_i32_1 = arith.constant 0 : i32
    return %arg0, %c0_i32, %c0_i32_0 : i32, i32, i32
  }
  func.func @transform_6(%arg0: i32) -> (i32, i32, i32) {
    %c0_i32 = arith.constant 0 : i32
    %c0_i32_0 = arith.constant 0 : i32
    %c0_i32_1 = arith.constant 0 : i32
    return %arg0, %c0_i32, %c0_i32_0 : i32, i32, i32
  }
  func.func @transform_7(%arg0: i32) -> (i32, i32) {
    %c0_i32 = arith.constant 0 : i32
    %c0_i32_0 = arith.constant 0 : i32
    %c0_i32_1 = arith.constant 0 : i32
    return %c0_i32, %c0_i32_0 : i32, i32
  }
  func.func @transform_8(%arg0: i32) -> (i32, i32) {
    %c0_i32 = arith.constant 0 : i32
    %c0_i32_0 = arith.constant 0 : i32
    %c0_i32_1 = arith.constant 0 : i32
    return %c0_i32, %c0_i32_0 : i32, i32
  }
  func.func @transform_9(%arg0: i32) -> (i32, i32) {
    %c0_i32 = arith.constant 0 : i32
    %c0_i32_0 = arith.constant 0 : i32
    %c0_i32_1 = arith.constant 0 : i32
    return %c0_i32, %c0_i32_0 : i32, i32
  }
  func.func @transform_10(%arg0: i32) -> (i32, i32) {
    %c0_i32 = arith.constant 0 : i32
    %c0_i32_0 = arith.constant 0 : i32
    %c0_i32_1 = arith.constant 0 : i32
    return %c0_i32, %c0_i32_0 : i32, i32
  }
  func.func @transform_11(%arg0: i32) -> (i32, i32) {
    %c0_i32 = arith.constant 0 : i32
    %c0_i32_0 = arith.constant 0 : i32
    %c0_i32_1 = arith.constant 0 : i32
    return %c0_i32, %c0_i32_0 : i32, i32
  }
  func.func @transform_12(%arg0: i32) -> (i32, i32) {
    %c0_i32 = arith.constant 0 : i32
    %c0_i32_0 = arith.constant 0 : i32
    %c0_i32_1 = arith.constant 0 : i32
    return %c0_i32, %c0_i32_0 : i32, i32
  }
  func.func @transform_13(%arg0: i32) -> (i32, i32) {
    %c0_i32 = arith.constant 0 : i32
    %c0_i32_0 = arith.constant 0 : i32
    %c0_i32_1 = arith.constant 0 : i32
    return %c0_i32, %c0_i32_0 : i32, i32
  }
  func.func @transform_14(%arg0: i32) -> (i32, i32) {
    %c0_i32 = arith.constant 0 : i32
    %c0_i32_0 = arith.constant 0 : i32
    %c0_i32_1 = arith.constant 0 : i32
    return %c0_i32, %c0_i32_0 : i32, i32
  }
  func.func @transform_15(%arg0: i32) -> (i32, i32) {
    %c0_i32 = arith.constant 0 : i32
    %c0_i32_0 = arith.constant 0 : i32
    %c0_i32_1 = arith.constant 0 : i32
    return %c0_i32, %c0_i32_0 : i32, i32
  }
  func.func @transform_16(%arg0: i32) -> (i32, i32) {
    %c0_i32 = arith.constant 0 : i32
    %c0_i32_0 = arith.constant 0 : i32
    %c0_i32_1 = arith.constant 0 : i32
    return %c0_i32, %c0_i32_0 : i32, i32
  }
  func.func @transform_17(%arg0: i32) -> (i32, i32) {
    %c0_i32 = arith.constant 0 : i32
    %c0_i32_0 = arith.constant 0 : i32
    %c0_i32_1 = arith.constant 0 : i32
    return %c0_i32, %c0_i32_0 : i32, i32
  }
  func.func @transform_18(%arg0: i32) -> (i32, i32) {
    %c0_i32 = arith.constant 0 : i32
    %c0_i32_0 = arith.constant 0 : i32
    %c0_i32_1 = arith.constant 0 : i32
    return %c0_i32, %c0_i32_0 : i32, i32
  }
  func.func @transform_19(%arg0: i32) -> (i32, i32) {
    %c0_i32 = arith.constant 0 : i32
    %c0_i32_0 = arith.constant 0 : i32
    %c0_i32_1 = arith.constant 0 : i32
    return %c0_i32, %c0_i32_0 : i32, i32
  }
  func.func @transform_20(%arg0: i32) -> (i32, i32) {
    %c0_i32 = arith.constant 0 : i32
    %c0_i32_0 = arith.constant 0 : i32
    %c0_i32_1 = arith.constant 0 : i32
    return %c0_i32, %c0_i32_0 : i32, i32
  }
  func.func @transform_21(%arg0: i32) -> (i32, i32) {
    %c0_i32 = arith.constant 0 : i32
    %c0_i32_0 = arith.constant 0 : i32
    %c0_i32_1 = arith.constant 0 : i32
    return %c0_i32, %c0_i32_0 : i32, i32
  }
  func.func @transform_22(%arg0: i32) -> (i32, i32) {
    %c0_i32 = arith.constant 0 : i32
    %c0_i32_0 = arith.constant 0 : i32
    %c0_i32_1 = arith.constant 0 : i32
    return %c0_i32, %c0_i32_0 : i32, i32
  }
  func.func @transform_23(%arg0: i32) -> (i32, i32, i32) {
    %c0_i32 = arith.constant 0 : i32
    %c0_i32_0 = arith.constant 0 : i32
    %c0_i32_1 = arith.constant 0 : i32
    return %arg0, %c0_i32, %c0_i32_0 : i32, i32, i32
  }
  func.func @transform_24(%arg0: i32) -> (i32, i32, i32, i32) {
    %c0_i32 = arith.constant 0 : i32
    %c0_i32_0 = arith.constant 0 : i32
    %c0_i32_1 = arith.constant 0 : i32
    %c0_i32_2 = arith.constant 0 : i32
    return %arg0, %c0_i32, %c0_i32_0, %c0_i32_1 : i32, i32, i32, i32
  }
}

</mosaic_0001>

<bundles_post_ra>
// kernel: tpu_custom_call.1
= control target key start
LH: loop header
LB: loop body
LE: loop exit
PB: predicated region body
PF: predicated region fallthrough
CT: control target
= control target key end

     0   :  { %s3717_s0 = inlined_call_operand.hbm [shape: f32[8,8], index: 0, kind: input, shape index: {}]   ;;  %s3718_s1 = inlined_call_operand.hbm [shape: f32[8,8], index: 1, kind: input, shape index: {}]   ;;  %s3719_s2 = inlined_call_operand.hbm [shape: bf16[8,8], index: 2, kind: input, shape index: {}]   ;;  %s3720_s3 = inlined_call_operand.hbm [shape: f32[2], index: 3, kind: input, shape index: {}]   ;;  %s3721_s4 = inlined_call_operand.vmem [shape: f32[2,8,32], index: 4, kind: input, shape index: {}]   ;;  %s3722_s5 = inlined_call_operand.vmem [shape: f32[2,8,32], index: 5, kind: input, shape index: {}]   ;;  %s3723_s6 = inlined_call_operand.vmem [shape: f32[2,8,32], index: 6, kind: input, shape index: {}]   ;;  %s3724_s7 = inlined_call_operand.hbm [shape: bf16[32,32], index: 7, kind: input, shape index: {}]   ;;  %s3725_s8 = inlined_call_operand.hbm [shape: f32[1,32], index: 8, kind: input, shape index: {}]   ;;  %s3726_s9 = inlined_call_operand.vmem [shape: bf16[32,32], index: 9, kind: input, shape index: {}]   ;;  %s3727_s10 = inlined_call_operand.hbm [shape: f32[1,32], index: 10, kind: input, shape index: {}]   ;;  %s3728_s11 = inlined_call_operand.hbm [shape: bf16[32,32], index: 11, kind: input, shape index: {}]   ;;  %s3729_s12 = inlined_call_operand.hbm [shape: f32[1,32], index: 12, kind: input, shape index: {}]   ;;  %s3730_s13 = inlined_call_operand.hbm [shape: bf16[32,32], index: 13, kind: input, shape index: {}]   ;;  %s3731_s14 = inlined_call_operand.hbm [shape: f32[1,32], index: 14, kind: input, shape index: {}]   ;;  %s3732_s15 = inlined_call_operand.hbm [shape: f32[1,32], index: 15, kind: input, shape index: {}]   ;;  %s3733_s16 = inlined_call_operand.hbm [shape: f32[1,32], index: 16, kind: input, shape index: {}]   ;;  %s3734_s17 = inlined_call_operand.hbm [shape: bf16[32,64], index: 17, kind: input, shape index: {}]   ;;  %s3735_s18 = inlined_call_operand.hbm [shape: f32[1,64], index: 18, kind: input, shape index: {}]   ;;  %s3736_s19 = inlined_call_operand.vmem [shape: bf16[64,32], index: 19, kind: input, shape index: {}]   ;;  %s3737_s20 = inlined_call_operand.vmem [shape: f32[1,32], index: 20, kind: input, shape index: {}]   ;;  %s3738_s21 = inlined_call_operand.vmem [shape: f32[1,32], index: 21, kind: input, shape index: {}]   ;;  %s3739_s22 = inlined_call_operand.vmem [shape: f32[1,32], index: 22, kind: input, shape index: {}]   ;;  %s3740_s23 = inlined_call_operand.hbm [shape: f32[2,8,32], index: 23, kind: output, shape index: {0}]   ;;  %s3741_s24 = inlined_call_operand.hbm [shape: bf16[2,2,8,8], index: 24, kind: output, shape index: {1}]  }
   0x1   :  { %3756 = sst [smem:[#allocation47_spill]] %s3717_s0 }
   0x2   :  { %3757 = sst [smem:[#allocation48_spill]] %s3718_s1 }
   0x3   :  { %3758 = sst [smem:[#allocation49_spill]] %s3719_s2 }
   0x4   :  { %3759 = sst [smem:[#allocation50_spill]] %s3720_s3 }
   0x5   :  { %3760 = sst [smem:[#allocation51_spill]] %s3721_s4 }
   0x6   :  { %3761 = sst [smem:[#allocation52_spill]] %s3722_s5 }
   0x7   :  { %3762 = sst [smem:[#allocation53_spill]] %s3723_s6 }
   0x8   :  { %3763 = sst [smem:[#allocation54_spill]] %s3724_s7 }
   0x9   :  { %3764 = sst [smem:[#allocation55_spill]] %s3725_s8 }
   0xa   :  { %3765 = sst [smem:[#allocation56_spill]] %s3727_s10 }
   0xb   :  { %3766 = sst [smem:[#allocation57_spill]] %s3729_s12 }
   0xc   :  { %3767 = sst [smem:[#allocation58_spill]] %s3739_s22 }
   0xd   :  { %3768 = sst [smem:[#allocation59_spill]] %s3740_s23 }
   0xe   :  { %30 = vsyncpa [#allocation3], 0 }
   0xf   :  { %31 = vsyncpa [#allocation7], 0 }
  0x10   :  { %32 = vsyncpa [#allocation5], 0 }
  0x11   :  { %33 = vsyncpa [#allocation11], 0 }
  0x12   :  { %34 = vsyncpa [#allocation14], 0 }
  0x13   :  { %35 = vsyncpa [#allocation17], 0 }
  0x14   :  { %36 = vsyncpa [#allocation20], 0 }
  0x15   :  { %37 = vsyncpa [#allocation23], 0 }
  0x16   :  { %38 = vsyncpa [#allocation26], 0 }
  0x17   :  { %39 = vsyncpa [#allocation4], 0 }
  0x18   :  { %41 = vsyncpa [#allocation4 + $0x1], 0 }
  0x19   :  { %42 = vsyncpa [#allocation29], 0 }
  0x1a   :  { %44 = vsyncpa [#allocation29 + $0x1], 0  ;;  %s3255_s5 = smov 0   ;;  %s3257_s26 = smov 0  }
  0x1b   :  { %s3259_s27 = smov 0   ;;  %s3261_s28 = smov 0  }
  0x1c LB: > { %3769 = sst [smem:[#allocation41_spill]] %s3091_s5  ;;  %s3276_s6 = sadd.s32 4294967295, %s3103_s28   ;;  %s3103_s28 = sphi %s3261_s28, %s3819_s28   ;;  %s3099_s27 = sphi %s3259_s27, %s3821_s27   ;;  %s3095_s26 = sphi %s3257_s26, %s3823_s26   ;;  %s3091_s5 = sphi %s3255_s5, %s3822_s5  }
  0x1d   : > { %3770 = sst [smem:[#allocation42_spill]] %s3099_s27  ;;  %s2150_s2 = sadd.s32 4294967294, %s3103_s28  }
  0x1e   : > { %3771 = sst [smem:[#allocation43_spill]] %s3103_s28  ;;  %s3280_s29 = sadd.s32 1, %s3103_s28  }
  0x1f   : > { %3772 = sst [smem:[#allocation44_spill]] %s3280_s29  ;;  %s555_s0 = sadd.s32 1, %s3099_s27 }
  0x20   : > { %s552_s7 = ssub.s32 %s3103_s28, %s3280_s29  ;;  %p565_p0 = scmp.ne.s32.totalorder %s3099_s27, %s3095_s26 }
  0x21   : > { %p553_p1 = scmp.eq.s32.totalorder %s552_s7, 0  ;;  %p566_p2 = scmp.eq.s32.totalorder %s3276_s6, 1 }
  0x22   : > { %p571_p3 = scmp.ne.s32.totalorder %s3095_s26, %s3091_s5  ;;  %p572_p4 = scmp.eq.s32.totalorder %s2150_s2, 1 }
  0x23   : > { %s3291_s30 = scalar_select %p553_p1, %s3099_s27, %s555_s0  }
  0x24   : > { %p3293_p5 = por %p566_p2, %p565_p0  ;;  %p3297_p6 = por %p572_p4, %p571_p3 }
  0x25   : > { %3773 = sst [smem:[#allocation45_spill]] %s3291_s30  ;;  %p2151_p7 = scmp.ge.s32.totalorder %s3103_s28, 1 }
  0x26   : > { %s3774_s3 = scalar_select %p3293_p5, 1, 0 }
  0x27   : > { %s3775_s25 = scalar_select %p3297_p6, 1, 0 }
  0x28   : > { %p605_p8 = scmp.lt.s32.totalorder %s3103_s28, 3  ;;  %p3747_p9 = scmp.eq.s32.totalorder %s3276_s6, 0 }
  0x29   : > { %3776 = sst [smem:[#allocation46_spill]] %s3775_s25  ;;  %s3105_s4 = smov [#allocation6]  }
  0x2a   : > { %p3304_p10 = pnand %p2151_p7, %p605_p8  ;;  %s629_s1 = sshll.u32 %s3105_s4, 4  ;;  %s630_s1 = int_to_ptr.vmem [resolvable:$true] %s629_s1 }
  0x2b   : > { %s3106_s2 = smov [#allocation10]   ;;  %s3107_s30 = smov [#allocation13]  }
  0x2c   : > { %s3777_s8 = scalar_select %p3304_p10, 1, 0 }
  0x2d   : > { %p2419_p11 = pneg %p3304_p10  ;;  %s659_s0 = sshll.u32 %s3106_s2, 4  ;;  %s660_s0 = int_to_ptr.vmem [resolvable:$true] %s659_s0 }
  0x2e   : > { %s687_s27 = sshll.u32 %s3107_s30, 4  ;;  %s2613_s4 = scalar_lea.vmem %s630_s1, 128  ;;  %s688_s27 = int_to_ptr.vmem [resolvable:$true] %s687_s27 }
  0x2f   : > { %p3312_p12 = pnand %p3747_p9, %p2419_p11  ;;  %p2614_p0 = scmp.ne.s32.totalorder %s630_s1, %s2613_s4 }
  0x30   : > { %p2621_p3 = scmp.lt.s32.totalorder %s630_s1, %s630_s1  ;;  %p2622_p4 = scmp.lt.s32.totalorder %s2613_s4, %s2613_s4 }
  0x31   : > { %p3318_p13 = pneg %p3312_p12 }
  0x32   : > { %p2623_p7 = por %p2622_p4, %p2621_p3 }
  0x33   : > { %p2616_p1 = pnand %p2614_p0, %p3318_p13 }
  0x35   : > { %p2617_p2 = pneg %p2616_p1 }
  0x37   : > { %p2624_p8 = pnand %p2623_p7, %p2617_p2 }
  0x39   : > { %2627 = shalt.err (!%p2624_p8)
}
  0x3a   : > { %s3780_s25 = sld [smem:[#allocation48_spill]]  ;;  %s2639_s5 = scalar_lea.vmem %s660_s0, 256 }
  0x3b   : > { %p2640_p11 = scmp.ne.s32.totalorder %s660_s0, %s2639_s5  ;;  %p2647_p5 = scmp.lt.s32.totalorder %s660_s0, %s660_s0 }
  0x3c   : > { %p2648_p0 = scmp.lt.s32.totalorder %s2639_s5, %s2639_s5 }
  0x3d   : > { %p2642_p9 = pnand %p2640_p11, %p3318_p13 }
  0x3e   : > { %p2649_p1 = por %p2648_p0, %p2647_p5 }
  0x3f   : > { %p2643_p6 = pneg %p2642_p9 }
  0x40   : > { %2425 = dma.hbm_to_vmem [thread:$0]  (!%p3312_p12), %s3780_s25, 128, %s630_s1, [#allocation7]  }
  0x41   : > { %p2650_p10 = pnand %p2649_p1, %p2643_p6 }
  0x43   : > { %2653 = shalt.err (!%p2650_p10)
}
  0x44   : > { %s3752_s4 = smov 64   ;;  %s3754_s28 = smov 4  }
  0x45   : > { %s3781_s1 = sld [smem:[#allocation54_spill]]  ;;  %s2665_s30 = scalar_lea.vmem %s688_s27, 16 }
  0x46   : > { %p2666_p9 = scmp.ne.s32.totalorder %s688_s27, %s2665_s30  ;;  %s2672_s5 = scalar_lea.vmem %s688_s27, 32 }
  0x47   : > { %p2673_p6 = scmp.lt.s32.totalorder %s688_s27, %s688_s27  ;;  %p2674_p10 = scmp.lt.s32.totalorder %s2672_s5, %s2665_s30 }
  0x48   : > { %p2668_p2 = pnand %p2666_p9, %p3318_p13 }
  0x49   : > { %p2675_p3 = por %p2674_p10, %p2673_p6 }
  0x4a   : > { %p2669_p5 = pneg %p2668_p2 }
  0x4b   : > { %2434 = dma.hbm_to_vmem [thread:$0]  (!%p3312_p12), %s3781_s1, 256, %s660_s0, [#allocation11], %s3752_s4, %s3752_s4, %s3754_s28  }
  0x4c   : > { %p2676_p4 = pnand %p2675_p3, %p2669_p5 }
  0x4e   : > { %2679 = shalt.err (!%p2676_p4)
}
  0x4f   : > { %s3782_s10 = sld [smem:[#allocation56_spill]]  ;;  %s3110_s0 = smov [#allocation16]  }
  0x50   : > { %s711_s2 = sshll.u32 %s3110_s0, 4  ;;  %s3111_s25 = smov [#allocation19]   ;;  %s712_s2 = int_to_ptr.vmem [resolvable:$true] %s711_s2 }
  0x51   : > { %s735_s1 = sshll.u32 %s3111_s25, 4  ;;  %s2691_s4 = scalar_lea.vmem %s712_s2, 16  ;;  %s736_s1 = int_to_ptr.vmem [resolvable:$true] %s735_s1 }
  0x52   : > { %p2692_p7 = scmp.ne.s32.totalorder %s712_s2, %s2691_s4  ;;  %s2698_s30 = scalar_lea.vmem %s712_s2, 32 }
  0x53   : > { %p2699_p0 = scmp.lt.s32.totalorder %s712_s2, %s712_s2  ;;  %p2700_p1 = scmp.lt.s32.totalorder %s2698_s30, %s2691_s4 }
  0x54   : > { %p2694_p8 = pnand %p2692_p7, %p3318_p13 }
  0x55   : > { %2440 = dma.hbm_to_vmem [thread:$0]  (!%p3312_p12), %s3782_s10, 16, %s688_s27, [#allocation14]  }
  0x56   : > { %p2695_p11 = pneg %p2694_p8  ;;  %p2701_p9 = por %p2700_p1, %p2699_p0 }
  0x58   : > { %p2702_p2 = pnand %p2701_p9, %p2695_p11 }
  0x5a   : > { %2705 = shalt.err (!%p2702_p2)
}
  0x5b   : > { %s3783_s12 = sld [smem:[#allocation57_spill]]  ;;  %s2717_s27 = scalar_lea.vmem %s736_s1, 16 }
  0x5c   : > { %p2718_p5 = scmp.ne.s32.totalorder %s736_s1, %s2717_s27  ;;  %s2724_s5 = scalar_lea.vmem %s736_s1, 32 }
  0x5d   : > { %p2725_p3 = scmp.lt.s32.totalorder %s736_s1, %s736_s1  ;;  %p2726_p4 = scmp.lt.s32.totalorder %s2724_s5, %s2717_s27 }
  0x5e   : > { %p2720_p6 = pnand %p2718_p5, %p3318_p13 }
  0x5f   : > { %p2727_p7 = por %p2726_p4, %p2725_p3 }
  0x60   : > { %p2721_p10 = pneg %p2720_p6 }
  0x61   : > { %2446 = dma.hbm_to_vmem [thread:$0]  (!%p3312_p12), %s3783_s12, 16, %s712_s2, [#allocation17]  }
  0x62   : > { %p2728_p8 = pnand %p2727_p7, %p2721_p10 }
  0x64   : > { %2731 = shalt.err (!%p2728_p8)
}
  0x65   : > { %2452 = dma.hbm_to_vmem [thread:$0]  (!%p3312_p12), %s3731_s14, 16, %s736_s1, [#allocation20]  }
  0x66   : > { %s3112_s2 = smov [#allocation22]   ;;  %s3113_s30 = smov [#allocation2]  }
  0x67   : > { %s757_s25 = sshll.u32 %s3112_s2, 4  ;;  %s618_s22 = sshll.u32 %s3113_s30, 4  ;;  %s758_s25 = int_to_ptr.vmem [resolvable:$true] %s757_s25  ;;  %s619_s22 = int_to_ptr.vmem [resolvable:$true] %s618_s22 }
  0x68   : > { %s2743_s23 = scalar_lea.vmem %s758_s25, 16  ;;  %s2750_s27 = scalar_lea.vmem %s758_s25, 32 }
  0x69   : > { %p2744_p11 = scmp.ne.s32.totalorder %s758_s25, %s2743_s23  ;;  %p2751_p9 = scmp.lt.s32.totalorder %s758_s25, %s758_s25 }
  0x6a   : > { %p2752_p2 = scmp.lt.s32.totalorder %s2750_s27, %s2743_s23 }
  0x6b   : > { %p2746_p0 = pnand %p2744_p11, %p3318_p13 }
  0x6c   : > { %p2753_p5 = por %p2752_p2, %p2751_p9 }
  0x6d   : > { %p2747_p1 = pneg %p2746_p0 }
  0x6f   : > { %p2754_p6 = pnand %p2753_p5, %p2747_p1 }
  0x71   : > { %2757 = shalt.err (!%p2754_p6)
}
  0x72   : > { %2458 = dma.hbm_to_vmem [thread:$0]  (!%p3312_p12), %s3733_s16, 16, %s758_s25, [#allocation23]  }
  0x73   : > { %s2769_s4 = scalar_lea.vmem %s619_s22, 128  ;;  %p2777_p7 = scmp.lt.s32.totalorder %s619_s22, %s619_s22 }
  0x74   : > { %p2770_p10 = scmp.ne.s32.totalorder %s619_s22, %s2769_s4  ;;  %p2778_p8 = scmp.lt.s32.totalorder %s2769_s4, %s2769_s4 }
  0x76   : > { %p2772_p3 = pnand %p2770_p10, %p3318_p13  ;;  %p2779_p11 = por %p2778_p8, %p2777_p7 }
  0x78   : > { %p2773_p4 = pneg %p2772_p3 }
  0x7a   : > { %p2780_p0 = pnand %p2779_p11, %p2773_p4 }
  0x7c   : > { %2783 = shalt.err (!%p2780_p0)
}
  0x7d   : > { %s3784_s30 = sld [smem:[#allocation47_spill]]  ;;  %s3114_s23 = smov [#allocation8]  }
  0x7e   : > { %s640_s25 = sshll.u32 %s3114_s23, 4  ;;  %s641_s25 = int_to_ptr.vmem [resolvable:$true] %s640_s25 }
  0x7f   : > { %s2795_s27 = scalar_lea.vmem %s641_s25, 64  ;;  %p2803_p5 = scmp.lt.s32.totalorder %s641_s25, %s641_s25 }
  0x80   : > { %p2796_p1 = scmp.ne.s32.totalorder %s641_s25, %s2795_s27  ;;  %p2804_p6 = scmp.lt.s32.totalorder %s2795_s27, %s2795_s27 }
  0x82   : > { %p2798_p9 = pnand %p2796_p1, %p3318_p13  ;;  %p2805_p10 = por %p2804_p6, %p2803_p5 }
  0x83   : > { %2422 = dma.hbm_to_vmem [thread:$0]  (!%p3312_p12), %s3784_s30, 128, %s619_s22, [#allocation3]  }
  0x84   : > { %p2799_p2 = pneg %p2798_p9 }
  0x86   : > { %p2806_p3 = pnand %p2805_p10, %p2799_p2 }
  0x88   : > { %2809 = shalt.err (!%p2806_p3)
}
  0x89   : > { %s3785_s4 = sld [smem:[#allocation49_spill]]  ;;  %s3115_s22 = smov [#allocation9]  }
  0x8a   : > { %s3786_s30 = sld [smem:[#allocation50_spill]]  ;;  %s3116_s23 = smov [#allocation12]  }
  0x8b   : > { %s673_s28 = sshll.u32 %s3116_s23, 4  ;;  %s3117_s27 = smov [#allocation15]   ;;  %s674_s28 = int_to_ptr.vmem [resolvable:$true] %s673_s28 }
  0x8c   : > { %s697_s10 = sshll.u32 %s3117_s27, 4  ;;  %s2832_s12 = scalar_lea.vmem %s674_s28, 16  ;;  %s698_s10 = int_to_ptr.vmem [resolvable:$true] %s697_s10 }
  0x8d   : > { %p2833_p4 = scmp.ne.s32.totalorder %s674_s28, %s2832_s12  ;;  %s2839_s5 = scalar_lea.vmem %s674_s28, 32 }
  0x8e   : > { %p2840_p11 = scmp.lt.s32.totalorder %s674_s28, %s674_s28  ;;  %p2841_p0 = scmp.lt.s32.totalorder %s2839_s5, %s2832_s12 }
  0x8f   : > { %2428 = dma.hbm_to_vmem [thread:$0]  (!%p3312_p12), %s3785_s4, 64, %s641_s25, [#allocation7]  }
  0x90   : > { %2431 = dma.hbm_to_smem (!%p3312_p12), %s3786_s30, 16, %s3115_s22, [#allocation5]  }
  0x91   : > { %p2835_p7 = pnand %p2833_p4, %p3318_p13  ;;  %p2842_p1 = por %p2841_p0, %p2840_p11 }
  0x93   : > { %p2836_p8 = pneg %p2835_p7 }
  0x95   : > { %p2843_p9 = pnand %p2842_p1, %p2836_p8 }
  0x97   : > { %2846 = shalt.err (!%p2843_p9)
}
  0x98   : > { %s3787_s4 = sld [smem:[#allocation55_spill]]  ;;  %s2858_s22 = scalar_lea.vmem %s698_s10, 256 }
  0x99   : > { %p2859_p2 = scmp.ne.s32.totalorder %s698_s10, %s2858_s22  ;;  %p2866_p10 = scmp.lt.s32.totalorder %s698_s10, %s698_s10 }
  0x9a   : > { %p2867_p3 = scmp.lt.s32.totalorder %s2858_s22, %s2858_s22 }
  0x9b   : > { %p2861_p5 = pnand %p2859_p2, %p3318_p13 }
  0x9c   : > { %p2868_p4 = por %p2867_p3, %p2866_p10 }
  0x9d   : > { %p2862_p6 = pneg %p2861_p5 }
  0x9e   : > { %2437 = dma.hbm_to_vmem [thread:$0]  (!%p3312_p12), %s3787_s4, 16, %s674_s28, [#allocation11]  }
  0x9f   : > { %p2869_p7 = pnand %p2868_p4, %p2862_p6 }
  0xa1   : > { %2872 = shalt.err (!%p2869_p7)
}
  0xa2   : > { %s3788_s12 = smov 4   ;;  %s3789_s0 = smov 64  }
  0xa3   : > { %2443 = dma.hbm_to_vmem [thread:$0]  (!%p3312_p12), %s3728_s11, 256, %s698_s10, [#allocation14], %s3789_s0, %s3789_s0, %s3788_s12  }
  0xa4   : > { %s3118_s28 = smov [#allocation18]   ;;  %s3119_s27 = smov [#allocation21]  }
  0xa5   : > { %s721_s23 = sshll.u32 %s3118_s28, 4  ;;  %s746_s5 = sshll.u32 %s3119_s27, 4  ;;  %s722_s23 = int_to_ptr.vmem [resolvable:$true] %s721_s23  ;;  %s747_s5 = int_to_ptr.vmem [resolvable:$true] %s746_s5 }
  0xa6   : > { %s2884_s25 = scalar_lea.vmem %s722_s23, 256  ;;  %p2892_p1 = scmp.lt.s32.totalorder %s722_s23, %s722_s23 }
  0xa7   : > { %p2885_p8 = scmp.ne.s32.totalorder %s722_s23, %s2884_s25  ;;  %p2893_p9 = scmp.lt.s32.totalorder %s2884_s25, %s2884_s25 }
  0xa9   : > { %p2887_p11 = pnand %p2885_p8, %p3318_p13  ;;  %p2894_p2 = por %p2893_p9, %p2892_p1 }
  0xab   : > { %p2888_p0 = pneg %p2887_p11 }
  0xad   : > { %p2895_p5 = pnand %p2894_p2, %p2888_p0 }
  0xaf   : > { %2898 = shalt.err (!%p2895_p5)
}
  0xb0   : > { %2449 = dma.hbm_to_vmem [thread:$0]  (!%p3312_p12), %s3730_s13, 256, %s722_s23, [#allocation17], %s3789_s0, %s3789_s0, %s3788_s12  }
  0xb1   : > { %s2910_s4 = scalar_lea.vmem %s747_s5, 16  ;;  %s2917_s22 = scalar_lea.vmem %s747_s5, 32 }
  0xb2   : > { %p2911_p6 = scmp.ne.s32.totalorder %s747_s5, %s2910_s4  ;;  %p2918_p4 = scmp.lt.s32.totalorder %s747_s5, %s747_s5 }
  0xb3   : > { %p2919_p7 = scmp.lt.s32.totalorder %s2917_s22, %s2910_s4 }
  0xb4   : > { %p2913_p10 = pnand %p2911_p6, %p3318_p13 }
  0xb5   : > { %p2920_p8 = por %p2919_p7, %p2918_p4 }
  0xb6   : > { %p2914_p3 = pneg %p2913_p10 }
  0xb8   : > { %p2921_p11 = pnand %p2920_p8, %p2914_p3 }
  0xba   : > { %2924 = shalt.err (!%p2921_p11)
}
  0xbb   : > { %2455 = dma.hbm_to_vmem [thread:$0]  (!%p3312_p12), %s3732_s15, 16, %s747_s5, [#allocation20]  }
  0xbc   : > { %s3120_s28 = smov [#allocation24]   ;;  %s3121_s27 = smov [#allocation25]  }
  0xbd   : > { %s767_s23 = sshll.u32 %s3120_s28, 4  ;;  %s781_s25 = sshll.u32 %s3121_s27, 4  ;;  %s768_s23 = int_to_ptr.vmem [resolvable:$true] %s767_s23  ;;  %s782_s25 = int_to_ptr.vmem [resolvable:$true] %s781_s25 }
  0xbe   : > { %s2936_s10 = scalar_lea.vmem %s768_s23, 256  ;;  %p2944_p2 = scmp.lt.s32.totalorder %s768_s23, %s768_s23 }
  0xbf   : > { %p2937_p0 = scmp.ne.s32.totalorder %s768_s23, %s2936_s10  ;;  %p2945_p5 = scmp.lt.s32.totalorder %s2936_s10, %s2936_s10 }
  0xc1   : > { %p2939_p1 = pnand %p2937_p0, %p3318_p13  ;;  %p2946_p6 = por %p2945_p5, %p2944_p2 }
  0xc3   : > { %p2940_p9 = pneg %p2939_p1 }
  0xc5   : > { %p2947_p10 = pnand %p2946_p6, %p2940_p9 }
  0xc7   : > { %2950 = shalt.err (!%p2947_p10)
}
  0xc8   : > { %2461 = dma.hbm_to_vmem [thread:$0]  (!%p3312_p12), %s3734_s17, 256, %s768_s23, [#allocation23], %s3789_s0, %s3789_s0, %s3788_s12  }
  0xc9   : > { %s2962_s4 = scalar_lea.vmem %s782_s25, 16  ;;  %s2969_s22 = scalar_lea.vmem %s782_s25, 32 }
  0xca   : > { %p2963_p3 = scmp.ne.s32.totalorder %s782_s25, %s2962_s4  ;;  %p2970_p8 = scmp.lt.s32.totalorder %s782_s25, %s782_s25 }
  0xcb   : > { %p2971_p11 = scmp.lt.s32.totalorder %s2969_s22, %s2962_s4 }
  0xcc   : > { %p2965_p4 = pnand %p2963_p3, %p3318_p13 }
  0xcd   : > { %p2972_p0 = por %p2971_p11, %p2970_p8 }
  0xce   : > { %p2966_p7 = pneg %p2965_p4 }
  0xd0   : > { %p2973_p1 = pnand %p2972_p0, %p2966_p7 }
  0xd2   : > { %2976 = shalt.err (!%p2973_p1)
}
  0xd3   : > { %2464 = dma.hbm_to_vmem [thread:$0]  (!%p3312_p12), %s3735_s18, 16, %s782_s25, [#allocation26]  }
  0xd4   : > { %p3790_p9 = scmp.ne.s32.totalorder %s3777_s8, 0 }
  0xd5   : > { %p3791_p2 = scmp.eq.s32.totalorder (!%p3790_p9), %s3276_s6, 0 }
  0xd6   : > { %827 = sbr.rel (%p3790_p9) target bundleno = 3638 (0xe36), region = 112 }
  0xdb   : > { %3046 = dma.done.wait (%p3791_p2), [#allocation3], 128   ;;  %p3792_p13 = pmov %p3791_p2 }
  0xdc   : > { %p3793_p5 = pmov %p3791_p2 }
  0xdd   : > { %3048 = vsyncadd (%p3792_p13), [#allocation3], 4294967168 }
  0xde   : > { %3050 = dma.done.wait (%p3793_p5), [#allocation7], 192   ;;  %p3794_p6 = pmov %p3791_p2 }
  0xdf   : > { %p3795_p10 = pmov %p3791_p2 }
  0xe0   : > { %3052 = vsyncadd (%p3794_p6), [#allocation7], 4294967104 }
  0xe1   : > { %3054 = dma.done.wait (%p3795_p10), [#allocation5], 16   ;;  %p3796_p12 = pmov %p3791_p2 }
  0xe2   : > { %p3797_p3 = pmov %p3791_p2 }
  0xe3   : > { %3056 = vsyncadd (%p3796_p12), [#allocation5], 4294967280 }
  0xe4   : > { %3058 = dma.done.wait (%p3797_p3), [#allocation11], 272   ;;  %p3798_p4 = pmov %p3791_p2 }
  0xe5   : > { %p3799_p7 = pmov %p3791_p2 }
  0xe6   : > { %3060 = vsyncadd (%p3798_p4), [#allocation11], 4294967024 }
  0xe7   : > { %3062 = dma.done.wait (%p3799_p7), [#allocation14], 272   ;;  %p3800_p8 = pmov %p3791_p2 }
  0xe8   : > { %p3801_p11 = pmov %p3791_p2 }
  0xe9   : > { %3064 = vsyncadd (%p3800_p8), [#allocation14], 4294967024 }
  0xea   : > { %3066 = dma.done.wait (%p3801_p11), [#allocation17], 272   ;;  %p3802_p0 = pmov %p3791_p2 }
  0xec   : > { %3068 = vsyncadd (%p3802_p0), [#allocation17], 4294967024  ;;  %p3803_p1 = pmov %p3802_p0 }
  0xed   : > { %p3804_p9 = pmov %p3802_p0 }
  0xee   : > { %3070 = dma.done.wait (%p3803_p1), [#allocation20], 32  }
  0xef   : > { %3072 = vsyncadd (%p3804_p9), [#allocation20], 4294967264  ;;  %p3805_p2 = pmov %p3802_p0 }
  0xf0   : > { %p3806_p13 = pmov %p3802_p0 }
  0xf1   : > { %3074 = dma.done.wait (%p3805_p2), [#allocation23], 272  }
  0xf2   : > { %3076 = vsyncadd (%p3806_p13), [#allocation23], 4294967024  ;;  %p3807_p5 = pmov %p3802_p0 }
  0xf3   : > { %p3808_p6 = pmov %p3802_p0 }
  0xf4   : > { %3078 = dma.done.wait (%p3807_p5), [#allocation26], 16  }
  0xf5   : > { %3080 = vsyncadd (%p3808_p6), [#allocation26], 4294967280 }
  0xf6   : > { %889 = sfence }
  0xf7   : > { %v2558_v0 = vld [vmem:[%s3726_s9 + $0x8] sm:$0xff]   ;;  %v3122_v1 = vmov 0.0   ;;  %v2559_v2 = vld [vmem:[#allocation10 + $0x8] sm:$0xff]   ;;  %vm3123_vm0 = vmmov 0   ;;  %p962_p10 = scmp.lt.s32.totalorder %s3276_s6, 1  ;;  %v2561_v4 = vld [vmem:[#allocation10] sm:$0xff]  }
  0xf8   : > { %2275 = vmatprep.subr.bf16.mxu1 %v3122_v1  ;;  %2267 = vmatprep.subr.bf16.mxu0 %v3122_v1  ;;  %v2560_v3 = vld [vmem:[%s3726_s9] sm:$0xff]   ;;  %s3809_s25 = sld [smem:[#allocation52_spill]]  ;;  %vm1002_vm1 = vcmask 261120   ;;  %vm1187_vm2 = vcmask 130048   ;;  %s3124_s2 = smov 112   ;;  %vm1236_vm4 = vcmask 64512  }
  0xf9   : > { %2276 = vmatpush3.bf16.msra.mxu1 %v2558_v0  ;;  %2279 = vmatprep.mubr.msk.bf16.mxu1 %vm3123_vm0, %v3122_v1  ;;  %s963_s0 = scalar_select %p962_p10, %s3276_s6, 1  ;;  %v2193_v9 = vld [vmem:[#allocation13] ss:$0 sm:$0xff]  ;;  %v2189_v10 = vld [vmem:[#allocation12] ss:$0 sm:$0xff]  ;;  %v2562_v32 = vld [vmem:[#allocation15 + $0x8] sm:$0xff]  }
  0xfa   : > { %2268 = vmatpush3.bf16.msra.mxu0 %v2559_v2  ;;  %2277 = vmatprep.subr.bf16.mxu1 %v3122_v1  ;;  %s3810_s4 = sld [smem:[#allocation51_spill]]  ;;  %v3520_v24 = vld [vmem:[#allocation2] sm:$0xff]  ;;  %v2563_v38 = vld [vmem:[#allocation15] sm:$0xff]   ;;  %v1186_v39 = vld [vmem:[#allocation8] sm:$0xf]  ;;  %vm1252_vm5 = vcmask 1043456  }
  0xfb   : > { %2269 = vmatprep.subr.bf16.mxu0 %v3122_v1  ;;  %2271 = vmatprep.mubr.msk.bf16.mxu0 %vm3123_vm0, %v3122_v1  ;;  %s3491_s28 = sshll.u32 %s963_s0, 3  ;;  %vm1184_vm3 = vcmp.ne.f32.partialorder %v3520_v24, 0.0  ;;  %s3811_s8 = sld [smem:[#allocation53_spill]]  ;;  %v3537_v42 = vsel %vm1252_vm5, %v1186_v39, 0  ;;  %v2197_v50 = vld [vmem:[#allocation16] ss:$0 sm:$0xff] }
  0xfc   : > { %v3557_v58 = vld [vmem:[#allocation6] sm:$0xff]  ;;  %s1305_s12 = sld [smem:[#allocation9]]  ;;  %s3573_s0 = sand.u32 1, %s3095_s26   ;;  %vm1325_vm8 = vcmask 60416   ;;  %vm1777_vm11 = vcmask 523264  }
  0xfd   : > { %2278 = vmatpush3.bf16.msra.mxu1 %v2560_v3  ;;  %s2206_s27 = sld [smem:[#allocation9 + $0x1]]  ;;  %s1858_s1 = scalar_lea.sflag [#allocation29], %s3573_s0 }
  0xfe   : > { %2270 = vmatpush3.bf16.msra.mxu0 %v2561_v4  ;;  %s969_s10 = scalar_lea.vmem %s3809_s25, %s3491_s28  ;;  %2291 = vmatprep.subr.bf16.mxu1 %v3122_v1  ;;  %s3125_s25 = smov 16  }
  0xff   : > { %v976_v5 = vld [vmem:[%s969_s10] sm:$0xff]  ;;  %2283 = vmatprep.subr.bf16.mxu0 %v3122_v1  ;;  %p3812_p3 = scmp.ne.s32.totalorder %s3774_s3, 0 }
 0x100   : > { %s965_s22 = scalar_lea.vmem %s3810_s4, %s3491_s28  ;;  %v1046_v7 = vpack.c.bf16 %v976_v5, %v976_v5 }
 0x101   : > { %v3502_v6 = vld [vmem:[%s965_s22] sm:$0xff]  ;;  %s973_s7 = scalar_lea.vmem %s3811_s8, %s3491_s28  ;;  %s2184_s28 = sshll.u32 %s3573_s0, 3 }
 0x102   : > { %v978_v8 = vpack.c.bf16 %v3502_v6, %v3502_v6  ;;  %2280 = vmatmul.mubr.msk.bf16.vlgmr.msra.gmra.mxu1 %vm1002_vm1, %v1046_v7  ;;  %v977_v40 = vld [vmem:[%s973_s7] sm:$0xff]  ;;  %s3579_s23 = scalar_lea.vmem [#allocation28], %s2184_s28  ;;  %s3126_s22 = smov [#allocation28]  }
 0x103   : > { %2293 = vmatprep.mubr.msk.bf16.mxu1 %vm3123_vm0, %v3122_v1  ;;  %v1113_v41 = vpack.c.bf16 %v977_v40, %v977_v40  ;;  %s1884_s5 = sshll.u32 %s3579_s23, 4  ;;  %s3648_s5 = int_to_ptr.vmem [resolvable:$true] %s1884_s5 }
 0x104   : > { %2272 = vmatmul.mubr.msk.bf16.vlgmr.msra.gmra.mxu0 %vm1002_vm1, %v978_v8  ;;  %s2977_s4 = scalar_lea.vmem %s3648_s5, 128 }
 0x105   : > { %2287 = vmatprep.mubr.msk.bf16.mxu0 %vm3123_vm0, %v3122_v1  ;;  %2284 = vmatpush3.bf16.msra.mxu0 %v2562_v32  ;;  %p2978_p12 = scmp.ne.s32.totalorder %s3648_s5, %s2977_s4 }
 0x106   : > { %2285 = vmatprep.subr.bf16.mxu0 %v3122_v1 }
 0x107   : > { %p2979_p4 = pnand %p2978_p12, %p3812_p3 }
 0x109   : > { %2286 = vmatpush3.bf16.msra.mxu0 %v2563_v38  ;;  %p2980_p7 = pneg %p2979_p4 }
 0x10a   : > { %2297 = vmatprep.subr.bf16.mxu0 %v3122_v1 }
 0x10c   : > { %2288 = vmatmul.mubr.msk.bf16.vlgmr.msra.gmra.mxu0 %vm1002_vm1, %v1113_v41 }
 0x10d   : > { %2298 = vmatpush3.bf16.msra.mxu0 %v3537_v42  ;;  %2299 = vmatprep.mubr.msk.bf16.mxu0 %vm3123_vm0, %v3122_v1 }
 0x10e   : > { %2309 = vmatprep.subr.bf16.mxu0 %v3122_v1 }
 0x1c2   : > { %v1107_v11 = vpop.f32.mrf.mxu1 }
 0x1c3   : > { %v1108_v13 = vadd.f32 %v2193_v9, %v1107_v11 }
 0x1c4   : > { %v1040_v12 = vpop.f32.mrf.mxu0  ;;  %v2281_v15 = vpop.f32.mrf.mxu1 }
 0x1c5   : > { %v1041_v14 = vadd.f32 %v2189_v10, %v1040_v12  ;;  %v1181_v17 = vpack.c.bf16 %v1108_v13, %v1108_v13  ;;  %v1306_v13 = vstv %s1305_s12  ;;  %s2229_s12 = sshll.u32 %s3276_s6, 7 }
 0x1c6   : > { %v2273_v16 = vpop.f32.mrf.mxu0  ;;  %v1110_v18 = vpop.f32.mrf.mxu1  ;;  %s3645_s10 = scalar_lea.hbm %s3741_s24, %s2229_s12 }
 0x1c7   : > { %v1192_v20 = vsel %vm1187_vm2, %v1181_v17, 0  ;;  %v1180_v21 = vpack.c.bf16 %v1041_v14, %v1041_v14  ;;  %1377 = vrot.lane.b32.xlu1 %v1181_v17, %s3124_s2 }
 0x1c8   : > { %v1043_v19 = vpop.f32.mrf.mxu0  ;;  %v2282_v22 = vpop.f32.mrf.mxu1  ;;  %2292 = vmatpush3.bf16.xpose.msra.mxu1 %v1192_v20 }
 0x1c9   : > { %2303 = vmatprep.subr.bf16.mxu1 %v3122_v1 }
 0x1ca   : > { %v2274_v23 = vpop.f32.mrf.mxu0 }
 0x1cb   : > { %1374 = vrot.lane.b32.xlu1 %v1180_v21, %s3124_s2 }
 0x1cc   : > { %v1174_v51 = vpop.f32.mrf.mxu0 }
 0x1cd   : > { %v1175_v52 = vadd.f32 %v2197_v50, %v1174_v51 }
 0x1ce   : > { %v2289_v53 = vpop.f32.mrf.mxu0 }
 0x1cf   : > { %2294 = vmatmul.mubr.msk.bf16.vlgmr.msra.gmra.mxu1 %vm1187_vm2, %v1180_v21  ;;  %v3552_v54 = vpack.c.bf16 %v1175_v52, %v1175_v52 }
 0x1d0   : > { %2305 = vmatprep.mubr.msk.bf16.mxu1 %vm3123_vm0, %v3122_v1  ;;  %v1177_v55 = vpop.f32.mrf.mxu0 }
 0x1d1   : > { %v1331_v56 = vsel %vm1252_vm5, %v3552_v54, 0 }
 0x1d2   : > { %v2290_v57 = vpop.f32.mrf.mxu0  ;;  %2304 = vmatpush3.bf16.msra.mxu1 %v1331_v56  ;;  %v1492_v56 = vstv %s2206_s27 }
 0x1d3   : > { %2315 = vmatprep.subr.bf16.mxu1 %v3122_v1 }
 0x239   : > { %v1378_v46 = vpop.permute.xlu1 %1377 }
 0x23a   : > { %v1383_v48 = vsel %vm1187_vm2, %v1378_v46, 0 }
 0x23d   : > { %v1375_v49 = vpop.permute.xlu1 %1374 }
 0x28f   : > { %v1228_v25 = vpop.f32.mrf.mxu1 }
 0x290   : > { %v3523_v26 = vmul.f32 0.25, %v1228_v25 }
 0x291   : > { %v2295_v27 = vpop.f32.mrf.mxu1 }
 0x292   : > { %v1235_v28 = vsel %vm1184_vm3, %v3523_v26, -1e+32 }
 0x293   : > { %v1231_v29 = vpop.f32.mrf.mxu1  ;;  %v1237_v30 = vsel %vm1236_vm4, %v1235_v28, -inf }
 0x294   : > { %1238 = vmax.xlane.f32.xlu0 %v1237_v30 }
 0x295   : > { %v2296_v31 = vpop.f32.mrf.mxu1 }
 0x31d   : > { %v1239_v33 = vpop.xlane.xlu0 %1238 }
 0x31e   : > { %v1240_v34 = vsub.f32 %v1235_v28, %v1239_v33 }
 0x320   : > { %v1241_v35 = vmul.f32 1.442695, %v1240_v34 }
 0x322   : > { %2572 = vpow2.f32 %v1241_v35 }
 0x32f   : > { %v2573_v36 = vpop.eup %2572 }
 0x330   : > { %v1243_v37 = vsel %vm1236_vm4, %v2573_v36, 0.0 }
 0x331   : > { %1244 = vadd.xlane.f32.xlu0 %v1243_v37 }
 0x3ba   : > { %v1245_v43 = vpop.xlane.xlu0 %1244 }
 0x3bb   : > { %2574 = vrcp.f32 %v1245_v43 }
 0x3c8   : > { %v2575_v44 = vpop.eup %2574 }
 0x3c9   : > { %v1247_v45 = vmul.f32 %v2575_v44, %v2573_v36 }
 0x3cb   : > { %v1248_v47 = vpack.c.bf16 %v1247_v45, %v1247_v45 }
 0x3cd   : > { %2300 = vmatmul.mubr.msk.bf16.vlgmr.msra.gmra.mxu0 %vm1236_vm4, %v1248_v47 }
 0x3ce   : > { %2310 = vmatpush3.bf16.xpose.msra.mxu0 %v1383_v48  ;;  %2311 = vmatprep.mubr.msk.bf16.mxu0 %vm3123_vm0, %v3122_v1 }
 0x3cf   : > { %2321 = vmatprep.subr.bf16.mxu0 %v3122_v1 }
 0x3d5   : > { %2312 = vmatmul.mubr.msk.bf16.vlgmr.msra.gmra.mxu0 %vm1187_vm2, %v1375_v49 }
 0x3d6   : > { %2323 = vmatprep.mubr.msk.bf16.mxu0 %vm3123_vm0, %v3122_v1 }
 0x48d   : > { %v1290_v59 = vpop.f32.mrf.mxu0 }
 0x48e   : > { %v1296_v60 = vmul.f32 %v1290_v59, %v3557_v58 }
 0x48f   : > { %v2301_v61 = vpop.f32.mrf.mxu0 }
 0x490   : > { %v1297_v62 = vmax.f32 %v1296_v60, 0.0 }
 0x491   : > { %v1293_v63 = vpop.f32.mrf.mxu0 }
 0x492   : > { %2576 = vrsqrt.f32 %v1297_v62  ;;  %vm1300_vm6 = vcmp.eq.f32.partialorder %v1297_v62, inf  ;;  %v1303_v12 = vand.u32 2147483648, %v1297_v62  ;;  %vm1302_vm7 = vcmp.eq.f32.partialorder %v1297_v62, 0.0 }
 0x493   : > { %v2302_v0 = vpop.f32.mrf.mxu0 }
 0x495   : > { %v1419_v2 = vpop.f32.mrf.mxu0 }
 0x496   : > { %v3560_v3 = vmul.f32 0.25, %v1419_v2 }
 0x497   : > { %v2313_v4 = vpop.f32.mrf.mxu0 }
 0x498   : > { %v1426_v5 = vsel %vm1184_vm3, %v3560_v3, -1e+32 }
 0x499   : > { %v1422_v7 = vpop.f32.mrf.mxu0  ;;  %v1427_v8 = vsel %vm1236_vm4, %v1426_v5, -inf }
 0x49a   : > { %1428 = vmax.xlane.f32.xlu1 %v1427_v8 }
 0x49b   : > { %v2314_v9 = vpop.f32.mrf.mxu0 }
 0x49f   : > { %v2577_v10 = vpop.eup %2576 }
 0x4a0   : > { %v1299_v11 = vmul.f32 %v2577_v10, %v1297_v62 }
 0x4a2   : > { %v1301_v14 = vsel %vm1300_vm6, %v1297_v62, %v1299_v11 }
 0x4a3   : > { %v1304_v15 = vsel %vm1302_vm7, %v1303_v12, %v1301_v14  ;;  %v2564_v14 = vld [vmem:[#allocation18 + $0x8] sm:$0xff]  }
 0x4a4   : > { %v1307_v16 = vmul.f32 %v1306_v13, %v1304_v15 }
 0x4a6   : > { %v1308_v17 = vmul.f32 1.442695, %v1307_v16 }
 0x4a8   : > { %2578 = vpow2.f32 %v1308_v17 }
 0x4b5   : > { %v2579_v18 = vpop.eup %2578 }
 0x4b6   : > { %v1310_v19 = vmax.f32 %v2579_v18, 1e-05 }
 0x4b8   : > { %v1311_v20 = vmul.f32 %v1310_v19, %v3523_v26 }
 0x4ba   : > { %v1312_v21 = vsel %vm1184_vm3, %v1311_v20, -1e+32 }
 0x4bb   : > { %v1313_v22 = vsel %vm1236_vm4, %v1312_v21, -inf }
 0x4bc   : > { %1314 = vmax.xlane.f32.xlu0 %v1313_v22  ;;  %v2209_v22 = vld [vmem:[#allocation19] ss:$0 sm:$0xff] }
 0x523   : > { %v1429_v23 = vpop.xlane.xlu1 %1428 }
 0x524   : > { %v1430_v25 = vsub.f32 %v1426_v5, %v1429_v23 }
 0x526   : > { %v1431_v29 = vmul.f32 1.442695, %v1430_v25 }
 0x545   : > { %v1315_v27 = vpop.xlane.xlu0 %1314 }
 0x546   : > { %v1316_v28 = vsub.f32 %v1312_v21, %v1315_v27 }
 0x548   : > { %v1317_v30 = vmul.f32 1.442695, %v1316_v28 }
 0x54a   : > { %2580 = vpow2.f32 %v1317_v30 }
 0x54b   : > { %2582 = vpow2.f32 %v1431_v29 }
 0x557   : > { %v2581_v31 = vpop.eup %2580 }
 0x558   : > { %v1319_v32 = vsel %vm1236_vm4, %v2581_v31, 0.0  ;;  %v2583_v33 = vpop.eup %2582 }
 0x559   : > { %1320 = vadd.xlane.f32.xlu0 %v1319_v32  ;;  %v1433_v26 = vsel %vm1236_vm4, %v2583_v33, 0.0 }
 0x55d   : > { %1434 = vadd.xlane.f32.xlu0 %v1433_v26 }
 0x5e2   : > { %v1321_v34 = vpop.xlane.xlu0 %1320 }
 0x5e3   : > { %2584 = vrcp.f32 %v1321_v34 }
 0x5e6   : > { %v1435_v35 = vpop.xlane.xlu0 %1434 }
 0x5e7   : > { %2586 = vrcp.f32 %v1435_v35 }
 0x5f0   : > { %v2585_v36 = vpop.eup %2584 }
 0x5f1   : > { %v1323_v37 = vmul.f32 %v2585_v36, %v2581_v31  ;;  %v2566_v36 = vld [vmem:[#allocation24 + $0x8] sm:$0xff]  }
 0x5f3   : > { %v1324_v38 = vpack.c.bf16 %v1323_v37, %v1323_v37  ;;  %v2567_v37 = vld [vmem:[#allocation24] sm:$0xff]  }
 0x5f4   : > { %v2587_v39 = vpop.eup %2586 }
 0x5f5   : > { %2306 = vmatmul.mubr.msk.bf16.vlgmr.msra.gmra.mxu1 %vm1236_vm4, %v1324_v38  ;;  %1326 = vst.msk [vmem:[%s3579_s23] sm:$0xf] %vm1325_vm8, %v1324_v38  ;;  %v1437_v40 = vmul.f32 %v2587_v39, %v2583_v33 }
 0x5f6   : > { %2316 = vmatpush3.bf16.msra.mxu1 %v3537_v42  ;;  %2317 = vmatprep.mubr.msk.bf16.mxu1 %vm3123_vm0, %v3122_v1 }
 0x5f7   : > { %2327 = vmatprep.subr.bf16.mxu1 %v3122_v1  ;;  %v1438_v41 = vpack.c.bf16 %v1437_v40, %v1437_v40 }
 0x5fd   : > { %2318 = vmatmul.mubr.msk.bf16.vlgmr.msra.gmra.mxu1 %vm1236_vm4, %v1438_v41  ;;  %v2213_v41 = vld [vmem:[#allocation21] ss:$0 sm:$0xff] }
 0x5fe   : > { %2331 = vmatprep.mubr.msk.bf16.mxu1 %vm3123_vm0, %v3122_v1  ;;  %2328 = vmatpush3.bf16.msra.mxu1 %v2564_v14 }
 0x5ff   : > { %2329 = vmatprep.subr.bf16.mxu1 %v3122_v1 }
 0x6b5   : > { %v3590_v43 = vpop.f32.mrf.mxu1 }
 0x6b7   : > { %v2307_v44 = vpop.f32.mrf.mxu1 }
 0x6b8   : > { %v2214_v44 = vld [vmem:[#allocation22] ss:$0 sm:$0xff] }
 0x6b9   : > { %v1370_v45 = vpop.f32.mrf.mxu1 }
 0x6bb   : > { %v2308_v46 = vpop.f32.mrf.mxu1 }
 0x6bd   : > { %v1476_v47 = vpop.f32.mrf.mxu1 }
 0x6be   : > { %v1482_v42 = vmul.f32 %v1476_v47, %v3557_v58 }
 0x6bf   : > { %v2319_v48 = vpop.f32.mrf.mxu1 }
 0x6c0   : > { %v1483_v49 = vmax.f32 %v1482_v42, 0.0  ;;  %v2568_v42 = vld [vmem:[%s3736_s19 + $0x18] sm:$0xff]   ;;  %v2569_v48 = vld [vmem:[%s3736_s19 + $0x10] sm:$0xff]  }
 0x6c1   : > { %v1479_v50 = vpop.f32.mrf.mxu1 }
 0x6c2   : > { %2588 = vrsqrt.f32 %v1483_v49  ;;  %vm1486_vm9 = vcmp.eq.f32.partialorder %v1483_v49, inf  ;;  %v1489_v55 = vand.u32 2147483648, %v1483_v49  ;;  %vm1488_vm10 = vcmp.eq.f32.partialorder %v1483_v49, 0.0  ;;  %v2571_v50 = vld [vmem:[%s3736_s19] sm:$0xff]  }
 0x6c3   : > { %v2320_v51 = vpop.f32.mrf.mxu1 }
 0x6c4   : > { %v2215_v51 = vld [vmem:[#allocation25] ss:$0 sm:$0xff] }
 0x6cf   : > { %v2589_v52 = vpop.eup %2588 }
 0x6d0   : > { %v1485_v53 = vmul.f32 %v2589_v52, %v1483_v49 }
 0x6d2   : > { %v1487_v57 = vsel %vm1486_vm9, %v1483_v49, %v1485_v53  ;;  %v2570_v49 = vld [vmem:[%s3736_s19 + $0x8] sm:$0xff]  }
 0x6d3   : > { %v1490_v59 = vsel %vm1488_vm10, %v1489_v55, %v1487_v57 }
 0x6d4   : > { %v1493_v60 = vmul.f32 %v1492_v56, %v1490_v59 }
 0x6d6   : > { %v1494_v61 = vmul.f32 1.442695, %v1493_v60 }
 0x6d8   : > { %2590 = vpow2.f32 %v1494_v61 }
 0x6e5   : > { %v2591_v62 = vpop.eup %2590 }
 0x6e6   : > { %v1496_v63 = vmax.f32 %v2591_v62, 1e-05 }
 0x6e8   : > { %v1497_v58 = vmul.f32 %v1496_v63, %v3560_v3 }
 0x6ea   : > { %v1498_v0 = vsel %vm1184_vm3, %v1497_v58, -1e+32 }
 0x6eb   : > { %v1499_v2 = vsel %vm1236_vm4, %v1498_v0, -inf }
 0x6ec   : > { %1500 = vmax.xlane.f32.xlu0 %v1499_v2 }
 0x775   : > { %v1501_v4 = vpop.xlane.xlu0 %1500 }
 0x776   : > { %v1502_v5 = vsub.f32 %v1498_v0, %v1501_v4 }
 0x778   : > { %v1503_v7 = vmul.f32 1.442695, %v1502_v5 }
 0x77a   : > { %2592 = vpow2.f32 %v1503_v7 }
 0x787   : > { %v2593_v8 = vpop.eup %2592 }
 0x788   : > { %v1505_v9 = vsel %vm1236_vm4, %v2593_v8, 0.0 }
 0x789   : > { %1506 = vadd.xlane.f32.xlu0 %v1505_v9 }
 0x79f   : > { %1514 = vrot.lane.b32.xlu0 %v3552_v54, %s3124_s2  ;;  %v2565_v54 = vld [vmem:[#allocation18] sm:$0xff]   ;;  %s2981_s2 = sshll.u32 %s3126_s22, 4  ;;  %s2982_s2 = int_to_ptr.vmem [resolvable:$false] %s2981_s2 }
 0x7a0   : > { %2330 = vmatpush3.bf16.msra.mxu1 %v2565_v54  ;;  %s2983_s30 = scalar_lea.vmem %s2982_s2, 256  ;;  %p2984_p8 = scmp.lt.s32.totalorder %s3648_s5, %s2982_s2 }
 0x7a1   : > { %2343 = vmatprep.subr.bf16.mxu1 %v3122_v1  ;;  %p2985_p11 = scmp.lt.s32.totalorder %s2983_s30, %s2977_s4 }
 0x7a3   : > { %p2986_p0 = por %p2985_p11, %p2984_p8 }
 0x7a5   : > { %p2987_p1 = pnand %p2986_p0, %p2980_p7 }
 0x812   : > { %v1507_v10 = vpop.xlane.xlu0 %1506 }
 0x813   : > { %2594 = vrcp.f32 %v1507_v10 }
 0x816   : > { %v1515_v3 = vpop.permute.xlu0 %1514 }
 0x817   : > { %v1520_v24 = vsel %vm1252_vm5, %v1515_v3, 0 }
 0x818   : > { %2322 = vmatpush3.bf16.msra.mxu0 %v1520_v24 }
 0x819   : > { %2335 = vmatprep.subr.bf16.mxu0 %v3122_v1 }
 0x820   : > { %v2595_v11 = vpop.eup %2594 }
 0x821   : > { %v1509_v12 = vmul.f32 %v2595_v11, %v2593_v8 }
 0x823   : > { %v1510_v13 = vpack.c.bf16 %v1509_v12, %v1509_v12 }
 0x825   : > { %2324 = vmatmul.mubr.msk.bf16.vlgmr.msra.gmra.mxu0 %vm1236_vm4, %v1510_v13  ;;  %2207 = vst.msk [vmem:[%s3579_s23 + $0x4] sm:$0xf] %vm1325_vm8, %v1510_v13 }
 0x826   : > { %2339 = vmatprep.mubr.msk.bf16.mxu0 %vm3123_vm0, %v3122_v1  ;;  %2336 = vmatpush3.bf16.msra.mxu0 %v2566_v36 }
 0x827   : > { %2337 = vmatprep.subr.bf16.mxu0 %v3122_v1 }
 0x82a   : > { %2338 = vmatpush3.bf16.msra.mxu0 %v2567_v37 }
 0x8e5   : > { %v1556_v15 = vpop.f32.mrf.mxu0 }
 0x8e6   : > { %1563 = vrot.lane.b32.xlu1 %v1556_v15, %s3125_s25 }
 0x8e7   : > { %v2325_v16 = vpop.f32.mrf.mxu0 }
 0x8e9   : > { %v1559_v17 = vpop.f32.mrf.mxu0 }
 0x8eb   : > { %v2326_v18 = vpop.f32.mrf.mxu0 }
 0x958   : > { %v1564_v19 = vpop.permute.xlu1 %1563 }
 0x959   : > { %v1566_v20 = vsel %vm1187_vm2, %v3590_v43, %v1564_v19 }
 0x95a   : > { %v1567_v21 = vpack.c.bf16 %v1566_v20, %v1566_v20 }
 0x95c   : > { %2332 = vmatmul.mubr.msk.bf16.vlgmr.msra.gmra.mxu1 %vm1002_vm1, %v1567_v21 }
 0x95d   : > { %2351 = vmatprep.mubr.msk.bf16.mxu1 %vm3123_vm0, %v3122_v1  ;;  %2344 = vmatpush3.bf16.msra.mxu1 %v2568_v42 }
 0x95e   : > { %2345 = vmatprep.subr.bf16.mxu1 %v3122_v1 }
 0x961   : > { %2346 = vmatpush3.bf16.msra.mxu1 %v2569_v48 }
 0x962   : > { %2347 = vmatprep.subr.bf16.mxu1 %v3122_v1 }
 0x965   : > { %2348 = vmatpush3.bf16.msra.mxu1 %v2570_v49 }
 0x966   : > { %2349 = vmatprep.subr.bf16.mxu1 %v3122_v1  ;;  %v2219_v1 = vld [vmem:[%s3737_s20] ss:$0 sm:$0xff] }
 0x969   : > { %2350 = vmatpush3.bf16.msra.mxu1 %v2571_v50 }
 0xa1c   : > { %v1628_v23 = vpop.f32.mrf.mxu1 }
 0xa1d   : > { %v1629_v25 = vadd.f32 %v2209_v22, %v1628_v23 }
 0xa1e   : > { %v2333_v27 = vpop.f32.mrf.mxu1 }
 0xa1f   : > { %v1634_v28 = vadd.f32 %v1629_v25, %v3502_v6 }
 0xa20   : > { %v1631_v29 = vpop.f32.mrf.mxu1 }
 0xa21   : > { %v1637_v30 = vsel %vm1002_vm1, %v1634_v28, 0.0 }
 0xa22   : > { %1638 = vadd.xlane.f32.xlu0 %v1637_v30  ;;  %v2334_v31 = vpop.f32.mrf.mxu1 }
 0xaab   : > { %v1639_v32 = vpop.xlane.xlu0 %1638 }
 0xaac   : > { %v1641_v33 = vmul.f32 0.03125, %v1639_v32 }
 0xaae   : > { %v1642_v26 = vsub.f32 %v1634_v28, %v1641_v33 }
 0xab0   : > { %v1643_v34 = vmul.f32 %v1642_v26, %v1642_v26 }
 0xab2   : > { %v1644_v35 = vsel %vm1002_vm1, %v1643_v34, 0.0 }
 0xab3   : > { %1645 = vadd.xlane.f32.xlu1 %v1644_v35 }
 0xb3c   : > { %v1646_v38 = vpop.xlane.xlu1 %1645 }
 0xb3d   : > { %v1647_v6 = vmul.f32 0.03125, %v1646_v38 }
 0xb3f   : > { %v1648_v39 = vadd.f32 1e-05, %v1647_v6 }
 0xb41   : > { %2596 = vrsqrt.f32 %v1648_v39 }
 0xb4e   : > { %v2597_v40 = vpop.eup %2596 }
 0xb4f   : > { %v1650_v43 = vmul.f32 %v2597_v40, %v1642_v26 }
 0xb51   : > { %v1657_v45 = vmul.f32 %v2213_v41, %v1650_v43 }
 0xb53   : > { %v1664_v46 = vadd.f32 %v2214_v44, %v1657_v45 }
 0xb55   : > { %v1665_v47 = vpack.c.bf16 %v1664_v46, %v1664_v46 }
 0xb57   : > { %2340 = vmatmul.mubr.msk.bf16.vlgmr.msra.gmra.mxu0 %vm1002_vm1, %v1665_v47 }
 0xc17   : > { %v1726_v52 = vpop.f32.mrf.mxu0 }
 0xc18   : > { %v1727_v53 = vadd.f32 %v2215_v51, %v1726_v52 }
 0xc19   : > { %v2341_v55 = vpop.f32.mrf.mxu0 }
 0xc1a   : > { %v1733_v56 = vmul.f32 0.70710677, %v1727_v53  ;;  %v1732_v61 = vmul.f32 0.5, %v1727_v53 }
 0xc1b   : > { %v1729_v57 = vpop.f32.mrf.mxu0 }
 0xc1c   : > { %2598 = verf.f32 %v1733_v56 }
 0xc1d   : > { %v2342_v59 = vpop.f32.mrf.mxu0 }
 0xc29   : > { %v2599_v60 = vpop.eup %2598 }
 0xc2a   : > { %v1735_v62 = vadd.f32 1.0, %v2599_v60 }
 0xc2c   : > { %v1736_v63 = vmul.f32 %v1735_v62, %v1732_v61 }
 0xc2e   : > { %v1737_v58 = vpack.c.bf16 %v1736_v63, %v1736_v63 }
 0xc30   : > { %2352 = vmatmul.mubr.msk.bf16.vlgmr.msra.gmra.mxu1 %vm1777_vm11, %v1737_v58 }
 0xcf0   : > { %v1815_v0 = vpop.f32.mrf.mxu1 }
 0xcf1   : > { %v1816_v2 = vadd.f32 %v2219_v1, %v1815_v0 }
 0xcf2   : > { %v2353_v4 = vpop.f32.mrf.mxu1 }
 0xcf3   : > { %v1821_v5 = vadd.f32 %v1816_v2, %v1664_v46 }
 0xcf4   : > { %v1818_v7 = vpop.f32.mrf.mxu1 }
 0xcf5   : > { %v1824_v8 = vsel %vm1002_vm1, %v1821_v5, 0.0 }
 0xcf6   : > { %1825 = vadd.xlane.f32.xlu0 %v1824_v8  ;;  %v2354_v9 = vpop.f32.mrf.mxu1 }
 0xd7f   : > { %v1826_v10 = vpop.xlane.xlu0 %1825 }
 0xd80   : > { %v1827_v3 = vmul.f32 0.03125, %v1826_v10 }
 0xd82   : > { %v1828_v24 = vsub.f32 %v1821_v5, %v1827_v3 }
 0xd84   : > { %v1829_v11 = vmul.f32 %v1828_v24, %v1828_v24 }
 0xd86   : > { %v1830_v12 = vsel %vm1002_vm1, %v1829_v11, 0.0 }
 0xd87   : > { %1831 = vadd.xlane.f32.xlu0 %v1830_v12 }
 0xd88   : > { %2990 = shalt.err (!%p2987_p1)
}
 0xd89   : > { %s2991_s23 = scalar_lea.hbm %s3645_s10, 128  ;;  %s2995_s7 = scalar_lea.hbm %s3741_s24, 256 }
 0xd8a   : > { %p2992_p9 = scmp.ne.s32.totalorder %s3645_s10, %s2991_s23  ;;  %p2996_p5 = scmp.lt.s32.totalorder %s3645_s10, %s3741_s24 }
 0xd8b   : > { %p2997_p6 = scmp.lt.s32.totalorder %s2995_s7, %s2991_s23 }
 0xd8c   : > { %p2993_p2 = pnand %p2992_p9, %p3812_p3 }
 0xd8d   : > { %p2998_p10 = por %p2997_p6, %p2996_p5 }
 0xd8e   : > { %p2994_p13 = pneg %p2993_p2 }
 0xd90   : > { %p2999_p12 = pnand %p2998_p10, %p2994_p13 }
 0xd92   : > { %3002 = shalt.err (!%p2999_p12)
}
 0xd93   : > { %s3127_s4 = smov 64   ;;  %s3128_s22 = smov 4   ;;  %v2225_v16 = vld [vmem:[%s3738_s21] ss:$0 sm:$0xff] }
 0xd94   : > { %2416 = dma.vmem_to_hbm [thread:$0]  (%p3812_p3), %s3648_s5, 128, %s3645_s10, %s1858_s1, %s3127_s4, %s3127_s4, %s3128_s22  }
 0xd95   : > { %s3813_s8 = sld [smem:[#allocation58_spill]]  ;;  %s954_s7 = scalar_lea.vmem [#allocation27], %s2184_s28 }
 0xd96   : > { %s1871_s27 = sshll.u32 %s954_s7, 4  ;;  %s3814_s1 = sld [smem:[#allocation59_spill]]  ;;  %s1872_s27 = int_to_ptr.vmem [resolvable:$true] %s1871_s27 }
 0xd97   : > { %s1853_s4 = scalar_lea.sflag [#allocation4], %s3573_s0  ;;  %s3003_s22 = scalar_lea.vmem %s1872_s27, 128 }
 0xd98   : > { %p3004_p4 = scmp.ne.s32.totalorder %s1872_s27, %s3003_s22  ;;  %s3129_s2 = smov [#allocation27]  }
 0xd99   : > { %s3007_s30 = sshll.u32 %s3129_s2, 4  ;;  %s3008_s30 = int_to_ptr.vmem [resolvable:$false] %s3007_s30 }
 0xd9a   : > { %p3005_p7 = pnand %p3004_p4, %p3812_p3  ;;  %s3009_s28 = scalar_lea.vmem %s3008_s30, 256 }
 0xd9b   : > { %v2226_v18 = vld [vmem:[%s3813_s8] ss:$0 sm:$0xff]  ;;  %p3010_p11 = scmp.lt.s32.totalorder %s1872_s27, %s3008_s30  ;;  %p3011_p0 = scmp.lt.s32.totalorder %s3009_s28, %s3003_s22 }
 0xd9c   : > { %s1869_s25 = scalar_lea.hbm %s3814_s1, %s2229_s12  ;;  %p3006_p8 = pneg %p3005_p7 }
 0xd9d   : > { %p3012_p1 = por %p3011_p0, %p3010_p11 }
 0xd9f   : > { %p3013_p9 = pnand %p3012_p1, %p3006_p8 }
 0xe10   : > { %v1832_v13 = vpop.xlane.xlu0 %1831 }
 0xe11   : > { %v1833_v14 = vmul.f32 0.03125, %v1832_v13 }
 0xe13   : > { %v1834_v54 = vadd.f32 1e-05, %v1833_v14 }
 0xe15   : > { %2600 = vrsqrt.f32 %v1834_v54 }
 0xe22   : > { %v2601_v15 = vpop.eup %2600 }
 0xe23   : > { %v1836_v17 = vmul.f32 %v2601_v15, %v1828_v24 }
 0xe25   : > { %v1843_v19 = vmul.f32 %v2225_v16, %v1836_v17 }
 0xe27   : > { %v1850_v20 = vadd.f32 %v2226_v18, %v1843_v19 }
 0xe29   : > { %1851 = vst.msk [vmem:[%s954_s7] sm:$0xff] %vm1002_vm1, %v1850_v20 }
 0xe2a   : > { %3016 = shalt.err (!%p3013_p9)
}
 0xe2b   : > { %s3017_s6 = scalar_lea.hbm %s1869_s25, 128  ;;  %s3021_s23 = scalar_lea.hbm %s3814_s1, 256 }
 0xe2c   : > { %p3018_p2 = scmp.ne.s32.totalorder %s1869_s25, %s3017_s6  ;;  %p3022_p6 = scmp.lt.s32.totalorder %s1869_s25, %s3814_s1 }
 0xe2d   : > { %p3023_p10 = scmp.lt.s32.totalorder %s3021_s23, %s3017_s6 }
 0xe2e   : > { %p3019_p13 = pnand %p3018_p2, %p3812_p3 }
 0xe2f   : > { %p3024_p12 = por %p3023_p10, %p3022_p6 }
 0xe30   : > { %p3020_p5 = pneg %p3019_p13 }
 0xe32   : > { %p3025_p4 = pnand %p3024_p12, %p3020_p5 }
 0xe34   : > { %3028 = shalt.err (!%p3025_p4)
}
 0xe35   : > { %2415 = dma.vmem_to_hbm [thread:$0]  (%p3812_p3), %s1872_s27, 128, %s1869_s25, %s1853_s4  }
 0xe36 PF: > { %s3815_s7 = sld [smem:[#allocation43_spill]] }
 0xe37   : > { %s3816_s10 = sld [smem:[#allocation41_spill]] }
 0xe38   : > { %s3817_s5 = sld [smem:[#allocation46_spill]] }
 0xe3c   : > { %p2502_p7 = scmp.ge.s32.totalorder %s3815_s7, 2 }
 0xe3d   : > { %s1899_s22 = sand.u32 1, %s3816_s10  }
 0xe3e   : > { %p3818_p8 = scmp.ne.s32.totalorder %s3817_s5, 0  ;;  %s1900_s2 = scalar_lea.sflag [#allocation4], %s1899_s22 }
 0xe40   : > { %p2466_p11 = pnand %p2502_p7, %p3818_p8 }
 0xe42   : > { %p2467_p0 = pneg %p2466_p11 }
 0xe44   : > { %3082 = dma.done.wait (%p2467_p0), %s1900_s2, 128  }
 0xe45   : > { %3084 = vsyncadd (%p2467_p0), %s1900_s2, 4294967168  ;;  %s1909_s30 = scalar_lea.sflag [#allocation29], %s1899_s22 }
 0xe46   : > { %3086 = dma.done.wait (%p2467_p0), %s1909_s30, 128  }
 0xe47   : > { %3088 = vsyncadd (%p2467_p0), %s1909_s30, 4294967168  ;;  %s3819_s28 = sld [smem:[#allocation44_spill]]  ;;  %s3822_s5 = smov %s3095_s26 }
 0xe48   : > { %s3820_s6 = sld [smem:[#allocation42_spill]] }
 0xe49   : > { %s3821_s27 = sld [smem:[#allocation45_spill]] }
 0xe4d   : > { %p47_p3 = scmp.ge.s32.totalorder %s3819_s28, 4  }
 0xe4e   : > { %s3823_s26 = smov %s3820_s6 }
 0xe4f   :  { %49 = sbr.rel (!%p47_p3) target bundleno = 28 (0x1c), region = 233 }
 0xe54   :  { %1914 = vsyncpa [#allocation3], 1 }
 0xe55   :  { %1916 = vsyncpa [#allocation3 + $0x1], 1 }
 0xe56   :  { %1917 = vsyncpa [#allocation7], 1 }
 0xe57   :  { %1918 = vsyncpa [#allocation11], 1 }
 0xe58   :  { %1919 = vsyncpa [#allocation14], 1 }
 0xe59   :  { %1920 = vsyncpa [#allocation17], 1 }
 0xe5a   :  { %1921 = vsyncpa [#allocation20], 1 }
 0xe5b   :  { %1922 = vsyncpa [#allocation23], 1 }
 0xe5c   :  { %1923 = vsyncpa [#allocation26], 1 }
 0xe5d   :  { %1924 = vsyncpa [#allocation4], 1 }
 0xe5e   :  { %1926 = vsyncpa [#allocation4 + $0x1], 1 }
 0xe5f   :  { %1927 = vsyncpa [#allocation29], 1 }
 0xe60   :  { %1929 = vsyncpa [#allocation29 + $0x1], 1 }
 0xe61   :  { %1930 = vsyncpa [#allocation5], 1 }
 0xe62   :  { %1932 = vsyncpa [#allocation5 + $0x1], 1 }

// kernel: tpu_custom_call.1
= control target key start
LH: loop header
LB: loop body
LE: loop exit
PB: predicated region body
PF: predicated region fallthrough
CT: control target
= control target key end

     0   :  { %s3717_s0 = inlined_call_operand.hbm [shape: f32[8,8], index: 0, kind: input, shape index: {}]   ;;  %s3718_s1 = inlined_call_operand.hbm [shape: f32[8,8], index: 1, kind: input, shape index: {}]   ;;  %s3719_s2 = inlined_call_operand.hbm [shape: bf16[8,8], index: 2, kind: input, shape index: {}]   ;;  %s3720_s3 = inlined_call_operand.hbm [shape: f32[2], index: 3, kind: input, shape index: {}]   ;;  %s3721_s4 = inlined_call_operand.vmem [shape: f32[2,8,32], index: 4, kind: input, shape index: {}]   ;;  %s3722_s5 = inlined_call_operand.vmem [shape: f32[2,8,32], index: 5, kind: input, shape index: {}]   ;;  %s3723_s6 = inlined_call_operand.vmem [shape: f32[2,8,32], index: 6, kind: input, shape index: {}]   ;;  %s3724_s7 = inlined_call_operand.hbm [shape: bf16[32,32], index: 7, kind: input, shape index: {}]   ;;  %s3725_s8 = inlined_call_operand.hbm [shape: f32[1,32], index: 8, kind: input, shape index: {}]   ;;  %s3726_s9 = inlined_call_operand.vmem [shape: bf16[32,32], index: 9, kind: input, shape index: {}]   ;;  %s3727_s10 = inlined_call_operand.hbm [shape: f32[1,32], index: 10, kind: input, shape index: {}]   ;;  %s3728_s11 = inlined_call_operand.hbm [shape: bf16[32,32], index: 11, kind: input, shape index: {}]   ;;  %s3729_s12 = inlined_call_operand.hbm [shape: f32[1,32], index: 12, kind: input, shape index: {}]   ;;  %s3730_s13 = inlined_call_operand.hbm [shape: bf16[32,32], index: 13, kind: input, shape index: {}]   ;;  %s3731_s14 = inlined_call_operand.hbm [shape: f32[1,32], index: 14, kind: input, shape index: {}]   ;;  %s3732_s15 = inlined_call_operand.hbm [shape: f32[1,32], index: 15, kind: input, shape index: {}]   ;;  %s3733_s16 = inlined_call_operand.hbm [shape: f32[1,32], index: 16, kind: input, shape index: {}]   ;;  %s3734_s17 = inlined_call_operand.hbm [shape: bf16[32,64], index: 17, kind: input, shape index: {}]   ;;  %s3735_s18 = inlined_call_operand.hbm [shape: f32[1,64], index: 18, kind: input, shape index: {}]   ;;  %s3736_s19 = inlined_call_operand.vmem [shape: bf16[64,32], index: 19, kind: input, shape index: {}]   ;;  %s3737_s20 = inlined_call_operand.vmem [shape: f32[1,32], index: 20, kind: input, shape index: {}]   ;;  %s3738_s21 = inlined_call_operand.vmem [shape: f32[1,32], index: 21, kind: input, shape index: {}]   ;;  %s3739_s22 = inlined_call_operand.vmem [shape: f32[1,32], index: 22, kind: input, shape index: {}]   ;;  %s3740_s23 = inlined_call_operand.hbm [shape: f32[2,8,32], index: 23, kind: output, shape index: {0}]   ;;  %s3741_s24 = inlined_call_operand.hbm [shape: bf16[2,2,8,8], index: 24, kind: output, shape index: {1}]  }
   0x1   :  { %3756 = sst [smem:[#allocation47_spill]] %s3717_s0 }
   0x2   :  { %3757 = sst [smem:[#allocation48_spill]] %s3718_s1 }
   0x3   :  { %3758 = sst [smem:[#allocation49_spill]] %s3719_s2 }
   0x4   :  { %3759 = sst [smem:[#allocation50_spill]] %s3720_s3 }
   0x5   :  { %3760 = sst [smem:[#allocation51_spill]] %s3721_s4 }
   0x6   :  { %3761 = sst [smem:[#allocation52_spill]] %s3722_s5 }
   0x7   :  { %3762 = sst [smem:[#allocation53_spill]] %s3723_s6 }
   0x8   :  { %3763 = sst [smem:[#allocation54_spill]] %s3724_s7 }
   0x9   :  { %3764 = sst [smem:[#allocation55_spill]] %s3725_s8 }
   0xa   :  { %3765 = sst [smem:[#allocation56_spill]] %s3727_s10 }
   0xb   :  { %3766 = sst [smem:[#allocation57_spill]] %s3729_s12 }
   0xc   :  { %3767 = sst [smem:[#allocation58_spill]] %s3739_s22 }
   0xd   :  { %3768 = sst [smem:[#allocation59_spill]] %s3740_s23 }
   0xe   :  { %30 = vsyncpa [#allocation3], 0 }
   0xf   :  { %31 = vsyncpa [#allocation7], 0 }
  0x10   :  { %32 = vsyncpa [#allocation5], 0 }
  0x11   :  { %33 = vsyncpa [#allocation11], 0 }
  0x12   :  { %34 = vsyncpa [#allocation14], 0 }
  0x13   :  { %35 = vsyncpa [#allocation17], 0 }
  0x14   :  { %36 = vsyncpa [#allocation20], 0 }
  0x15   :  { %37 = vsyncpa [#allocation23], 0 }
  0x16   :  { %38 = vsyncpa [#allocation26], 0 }
  0x17   :  { %39 = vsyncpa [#allocation4], 0 }
  0x18   :  { %41 = vsyncpa [#allocation4 + $0x1], 0 }
  0x19   :  { %42 = vsyncpa [#allocation29], 0 }
  0x1a   :  { %44 = vsyncpa [#allocation29 + $0x1], 0  ;;  %s3255_s5 = smov 0   ;;  %s3257_s26 = smov 0  }
  0x1b   :  { %s3259_s27 = smov 0   ;;  %s3261_s28 = smov 0  }
  0x1c LB: > { %3769 = sst [smem:[#allocation41_spill]] %s3091_s5  ;;  %s3276_s6 = sadd.s32 4294967295, %s3103_s28   ;;  %s3103_s28 = sphi %s3261_s28, %s3819_s28   ;;  %s3099_s27 = sphi %s3259_s27, %s3821_s27   ;;  %s3095_s26 = sphi %s3257_s26, %s3823_s26   ;;  %s3091_s5 = sphi %s3255_s5, %s3822_s5  }
  0x1d   : > { %3770 = sst [smem:[#allocation42_spill]] %s3099_s27  ;;  %s2150_s2 = sadd.s32 4294967294, %s3103_s28  }
  0x1e   : > { %3771 = sst [smem:[#allocation43_spill]] %s3103_s28  ;;  %s3280_s29 = sadd.s32 1, %s3103_s28  }
  0x1f   : > { %3772 = sst [smem:[#allocation44_spill]] %s3280_s29  ;;  %s555_s0 = sadd.s32 1, %s3099_s27 }
  0x20   : > { %s552_s7 = ssub.s32 %s3103_s28, %s3280_s29  ;;  %p565_p0 = scmp.ne.s32.totalorder %s3099_s27, %s3095_s26 }
  0x21   : > { %p553_p1 = scmp.eq.s32.totalorder %s552_s7, 0  ;;  %p566_p2 = scmp.eq.s32.totalorder %s3276_s6, 1 }
  0x22   : > { %p571_p3 = scmp.ne.s32.totalorder %s3095_s26, %s3091_s5  ;;  %p572_p4 = scmp.eq.s32.totalorder %s2150_s2, 1 }
  0x23   : > { %s3291_s30 = scalar_select %p553_p1, %s3099_s27, %s555_s0  }
  0x24   : > { %p3293_p5 = por %p566_p2, %p565_p0  ;;  %p3297_p6 = por %p572_p4, %p571_p3 }
  0x25   : > { %3773 = sst [smem:[#allocation45_spill]] %s3291_s30  ;;  %p2151_p7 = scmp.ge.s32.totalorder %s3103_s28, 1 }
  0x26   : > { %s3774_s3 = scalar_select %p3293_p5, 1, 0 }
  0x27   : > { %s3775_s25 = scalar_select %p3297_p6, 1, 0 }
  0x28   : > { %p605_p8 = scmp.lt.s32.totalorder %s3103_s28, 3  ;;  %p3747_p9 = scmp.eq.s32.totalorder %s3276_s6, 0 }
  0x29   : > { %3776 = sst [smem:[#allocation46_spill]] %s3775_s25  ;;  %s3105_s4 = smov [#allocation6]  }
  0x2a   : > { %p3304_p10 = pnand %p2151_p7, %p605_p8  ;;  %s629_s1 = sshll.u32 %s3105_s4, 4  ;;  %s630_s1 = int_to_ptr.vmem [resolvable:$true] %s629_s1 }
  0x2b   : > { %s3106_s2 = smov [#allocation10]   ;;  %s3107_s30 = smov [#allocation13]  }
  0x2c   : > { %s3777_s8 = scalar_select %p3304_p10, 1, 0 }
  0x2d   : > { %p2419_p11 = pneg %p3304_p10  ;;  %s659_s0 = sshll.u32 %s3106_s2, 4  ;;  %s660_s0 = int_to_ptr.vmem [resolvable:$true] %s659_s0 }
  0x2e   : > { %s687_s27 = sshll.u32 %s3107_s30, 4  ;;  %s2613_s4 = scalar_lea.vmem %s630_s1, 128  ;;  %s688_s27 = int_to_ptr.vmem [resolvable:$true] %s687_s27 }
  0x2f   : > { %p3312_p12 = pnand %p3747_p9, %p2419_p11  ;;  %p2614_p0 = scmp.ne.s32.totalorder %s630_s1, %s2613_s4 }
  0x30   : > { %p2621_p3 = scmp.lt.s32.totalorder %s630_s1, %s630_s1  ;;  %p2622_p4 = scmp.lt.s32.totalorder %s2613_s4, %s2613_s4 }
  0x31   : > { %p3318_p13 = pneg %p3312_p12 }
  0x32   : > { %p2623_p7 = por %p2622_p4, %p2621_p3 }
  0x33   : > { %p2616_p1 = pnand %p2614_p0, %p3318_p13 }
  0x35   : > { %p2617_p2 = pneg %p2616_p1 }
  0x37   : > { %p2624_p8 = pnand %p2623_p7, %p2617_p2 }
  0x39   : > { %2627 = shalt.err (!%p2624_p8)
}
  0x3a   : > { %s3780_s25 = sld [smem:[#allocation48_spill]]  ;;  %s2639_s5 = scalar_lea.vmem %s660_s0, 256 }
  0x3b   : > { %p2640_p11 = scmp.ne.s32.totalorder %s660_s0, %s2639_s5  ;;  %p2647_p5 = scmp.lt.s32.totalorder %s660_s0, %s660_s0 }
  0x3c   : > { %p2648_p0 = scmp.lt.s32.totalorder %s2639_s5, %s2639_s5 }
  0x3d   : > { %p2642_p9 = pnand %p2640_p11, %p3318_p13 }
  0x3e   : > { %p2649_p1 = por %p2648_p0, %p2647_p5 }
  0x3f   : > { %p2643_p6 = pneg %p2642_p9 }
  0x40   : > { %2425 = dma.hbm_to_vmem [thread:$0]  (!%p3312_p12), %s3780_s25, 128, %s630_s1, [#allocation7]  }
  0x41   : > { %p2650_p10 = pnand %p2649_p1, %p2643_p6 }
  0x43   : > { %2653 = shalt.err (!%p2650_p10)
}
  0x44   : > { %s3752_s4 = smov 64   ;;  %s3754_s28 = smov 4  }
  0x45   : > { %s3781_s1 = sld [smem:[#allocation54_spill]]  ;;  %s2665_s30 = scalar_lea.vmem %s688_s27, 16 }
  0x46   : > { %p2666_p9 = scmp.ne.s32.totalorder %s688_s27, %s2665_s30  ;;  %s2672_s5 = scalar_lea.vmem %s688_s27, 32 }
  0x47   : > { %p2673_p6 = scmp.lt.s32.totalorder %s688_s27, %s688_s27  ;;  %p2674_p10 = scmp.lt.s32.totalorder %s2672_s5, %s2665_s30 }
  0x48   : > { %p2668_p2 = pnand %p2666_p9, %p3318_p13 }
  0x49   : > { %p2675_p3 = por %p2674_p10, %p2673_p6 }
  0x4a   : > { %p2669_p5 = pneg %p2668_p2 }
  0x4b   : > { %2434 = dma.hbm_to_vmem [thread:$0]  (!%p3312_p12), %s3781_s1, 256, %s660_s0, [#allocation11], %s3752_s4, %s3752_s4, %s3754_s28  }
  0x4c   : > { %p2676_p4 = pnand %p2675_p3, %p2669_p5 }
  0x4e   : > { %2679 = shalt.err (!%p2676_p4)
}
  0x4f   : > { %s3782_s10 = sld [smem:[#allocation56_spill]]  ;;  %s3110_s0 = smov [#allocation16]  }
  0x50   : > { %s711_s2 = sshll.u32 %s3110_s0, 4  ;;  %s3111_s25 = smov [#allocation19]   ;;  %s712_s2 = int_to_ptr.vmem [resolvable:$true] %s711_s2 }
  0x51   : > { %s735_s1 = sshll.u32 %s3111_s25, 4  ;;  %s2691_s4 = scalar_lea.vmem %s712_s2, 16  ;;  %s736_s1 = int_to_ptr.vmem [resolvable:$true] %s735_s1 }
  0x52   : > { %p2692_p7 = scmp.ne.s32.totalorder %s712_s2, %s2691_s4  ;;  %s2698_s30 = scalar_lea.vmem %s712_s2, 32 }
  0x53   : > { %p2699_p0 = scmp.lt.s32.totalorder %s712_s2, %s712_s2  ;;  %p2700_p1 = scmp.lt.s32.totalorder %s2698_s30, %s2691_s4 }
  0x54   : > { %p2694_p8 = pnand %p2692_p7, %p3318_p13 }
  0x55   : > { %2440 = dma.hbm_to_vmem [thread:$0]  (!%p3312_p12), %s3782_s10, 16, %s688_s27, [#allocation14]  }
  0x56   : > { %p2695_p11 = pneg %p2694_p8  ;;  %p2701_p9 = por %p2700_p1, %p2699_p0 }
  0x58   : > { %p2702_p2 = pnand %p2701_p9, %p2695_p11 }
  0x5a   : > { %2705 = shalt.err (!%p2702_p2)
}
  0x5b   : > { %s3783_s12 = sld [smem:[#allocation57_spill]]  ;;  %s2717_s27 = scalar_lea.vmem %s736_s1, 16 }
  0x5c   : > { %p2718_p5 = scmp.ne.s32.totalorder %s736_s1, %s2717_s27  ;;  %s2724_s5 = scalar_lea.vmem %s736_s1, 32 }
  0x5d   : > { %p2725_p3 = scmp.lt.s32.totalorder %s736_s1, %s736_s1  ;;  %p2726_p4 = scmp.lt.s32.totalorder %s2724_s5, %s2717_s27 }
  0x5e   : > { %p2720_p6 = pnand %p2718_p5, %p3318_p13 }
  0x5f   : > { %p2727_p7 = por %p2726_p4, %p2725_p3 }
  0x60   : > { %p2721_p10 = pneg %p2720_p6 }
  0x61   : > { %2446 = dma.hbm_to_vmem [thread:$0]  (!%p3312_p12), %s3783_s12, 16, %s712_s2, [#allocation17]  }
  0x62   : > { %p2728_p8 = pnand %p2727_p7, %p2721_p10 }
  0x64   : > { %2731 = shalt.err (!%p2728_p8)
}
  0x65   : > { %2452 = dma.hbm_to_vmem [thread:$0]  (!%p3312_p12), %s3731_s14, 16, %s736_s1, [#allocation20]  }
  0x66   : > { %s3112_s2 = smov [#allocation22]   ;;  %s3113_s30 = smov [#allocation2]  }
  0x67   : > { %s757_s25 = sshll.u32 %s3112_s2, 4  ;;  %s618_s22 = sshll.u32 %s3113_s30, 4  ;;  %s758_s25 = int_to_ptr.vmem [resolvable:$true] %s757_s25  ;;  %s619_s22 = int_to_ptr.vmem [resolvable:$true] %s618_s22 }
  0x68   : > { %s2743_s23 = scalar_lea.vmem %s758_s25, 16  ;;  %s2750_s27 = scalar_lea.vmem %s758_s25, 32 }
  0x69   : > { %p2744_p11 = scmp.ne.s32.totalorder %s758_s25, %s2743_s23  ;;  %p2751_p9 = scmp.lt.s32.totalorder %s758_s25, %s758_s25 }
  0x6a   : > { %p2752_p2 = scmp.lt.s32.totalorder %s2750_s27, %s2743_s23 }
  0x6b   : > { %p2746_p0 = pnand %p2744_p11, %p3318_p13 }
  0x6c   : > { %p2753_p5 = por %p2752_p2, %p2751_p9 }
  0x6d   : > { %p2747_p1 = pneg %p2746_p0 }
  0x6f   : > { %p2754_p6 = pnand %p2753_p5, %p2747_p1 }
  0x71   : > { %2757 = shalt.err (!%p2754_p6)
}
  0x72   : > { %2458 = dma.hbm_to_vmem [thread:$0]  (!%p3312_p12), %s3733_s16, 16, %s758_s25, [#allocation23]  }
  0x73   : > { %s2769_s4 = scalar_lea.vmem %s619_s22, 128  ;;  %p2777_p7 = scmp.lt.s32.totalorder %s619_s22, %s619_s22 }
  0x74   : > { %p2770_p10 = scmp.ne.s32.totalorder %s619_s22, %s2769_s4  ;;  %p2778_p8 = scmp.lt.s32.totalorder %s2769_s4, %s2769_s4 }
  0x76   : > { %p2772_p3 = pnand %p2770_p10, %p3318_p13  ;;  %p2779_p11 = por %p2778_p8, %p2777_p7 }
  0x78   : > { %p2773_p4 = pneg %p2772_p3 }
  0x7a   : > { %p2780_p0 = pnand %p2779_p11, %p2773_p4 }
  0x7c   : > { %2783 = shalt.err (!%p2780_p0)
}
  0x7d   : > { %s3784_s30 = sld [smem:[#allocation47_spill]]  ;;  %s3114_s23 = smov [#allocation8]  }
  0x7e   : > { %s640_s25 = sshll.u32 %s3114_s23, 4  ;;  %s641_s25 = int_to_ptr.vmem [resolvable:$true] %s640_s25 }
  0x7f   : > { %s2795_s27 = scalar_lea.vmem %s641_s25, 64  ;;  %p2803_p5 = scmp.lt.s32.totalorder %s641_s25, %s641_s25 }
  0x80   : > { %p2796_p1 = scmp.ne.s32.totalorder %s641_s25, %s2795_s27  ;;  %p2804_p6 = scmp.lt.s32.totalorder %s2795_s27, %s2795_s27 }
  0x82   : > { %p2798_p9 = pnand %p2796_p1, %p3318_p13  ;;  %p2805_p10 = por %p2804_p6, %p2803_p5 }
  0x83   : > { %2422 = dma.hbm_to_vmem [thread:$0]  (!%p3312_p12), %s3784_s30, 128, %s619_s22, [#allocation3]  }
  0x84   : > { %p2799_p2 = pneg %p2798_p9 }
  0x86   : > { %p2806_p3 = pnand %p2805_p10, %p2799_p2 }
  0x88   : > { %2809 = shalt.err (!%p2806_p3)
}
  0x89   : > { %s3785_s4 = sld [smem:[#allocation49_spill]]  ;;  %s3115_s22 = smov [#allocation9]  }
  0x8a   : > { %s3786_s30 = sld [smem:[#allocation50_spill]]  ;;  %s3116_s23 = smov [#allocation12]  }
  0x8b   : > { %s673_s28 = sshll.u32 %s3116_s23, 4  ;;  %s3117_s27 = smov [#allocation15]   ;;  %s674_s28 = int_to_ptr.vmem [resolvable:$true] %s673_s28 }
  0x8c   : > { %s697_s10 = sshll.u32 %s3117_s27, 4  ;;  %s2832_s12 = scalar_lea.vmem %s674_s28, 16  ;;  %s698_s10 = int_to_ptr.vmem [resolvable:$true] %s697_s10 }
  0x8d   : > { %p2833_p4 = scmp.ne.s32.totalorder %s674_s28, %s2832_s12  ;;  %s2839_s5 = scalar_lea.vmem %s674_s28, 32 }
  0x8e   : > { %p2840_p11 = scmp.lt.s32.totalorder %s674_s28, %s674_s28  ;;  %p2841_p0 = scmp.lt.s32.totalorder %s2839_s5, %s2832_s12 }
  0x8f   : > { %2428 = dma.hbm_to_vmem [thread:$0]  (!%p3312_p12), %s3785_s4, 64, %s641_s25, [#allocation7]  }
  0x90   : > { %2431 = dma.hbm_to_smem (!%p3312_p12), %s3786_s30, 16, %s3115_s22, [#allocation5]  }
  0x91   : > { %p2835_p7 = pnand %p2833_p4, %p3318_p13  ;;  %p2842_p1 = por %p2841_p0, %p2840_p11 }
  0x93   : > { %p2836_p8 = pneg %p2835_p7 }
  0x95   : > { %p2843_p9 = pnand %p2842_p1, %p2836_p8 }
  0x97   : > { %2846 = shalt.err (!%p2843_p9)
}
  0x98   : > { %s3787_s4 = sld [smem:[#allocation55_spill]]  ;;  %s2858_s22 = scalar_lea.vmem %s698_s10, 256 }
  0x99   : > { %p2859_p2 = scmp.ne.s32.totalorder %s698_s10, %s2858_s22  ;;  %p2866_p10 = scmp.lt.s32.totalorder %s698_s10, %s698_s10 }
  0x9a   : > { %p2867_p3 = scmp.lt.s32.totalorder %s2858_s22, %s2858_s22 }
  0x9b   : > { %p2861_p5 = pnand %p2859_p2, %p3318_p13 }
  0x9c   : > { %p2868_p4 = por %p2867_p3, %p2866_p10 }
  0x9d   : > { %p2862_p6 = pneg %p2861_p5 }
  0x9e   : > { %2437 = dma.hbm_to_vmem [thread:$0]  (!%p3312_p12), %s3787_s4, 16, %s674_s28, [#allocation11]  }
  0x9f   : > { %p2869_p7 = pnand %p2868_p4, %p2862_p6 }
  0xa1   : > { %2872 = shalt.err (!%p2869_p7)
}
  0xa2   : > { %s3788_s12 = smov 4   ;;  %s3789_s0 = smov 64  }
  0xa3   : > { %2443 = dma.hbm_to_vmem [thread:$0]  (!%p3312_p12), %s3728_s11, 256, %s698_s10, [#allocation14], %s3789_s0, %s3789_s0, %s3788_s12  }
  0xa4   : > { %s3118_s28 = smov [#allocation18]   ;;  %s3119_s27 = smov [#allocation21]  }
  0xa5   : > { %s721_s23 = sshll.u32 %s3118_s28, 4  ;;  %s746_s5 = sshll.u32 %s3119_s27, 4  ;;  %s722_s23 = int_to_ptr.vmem [resolvable:$true] %s721_s23  ;;  %s747_s5 = int_to_ptr.vmem [resolvable:$true] %s746_s5 }
  0xa6   : > { %s2884_s25 = scalar_lea.vmem %s722_s23, 256  ;;  %p2892_p1 = scmp.lt.s32.totalorder %s722_s23, %s722_s23 }
  0xa7   : > { %p2885_p8 = scmp.ne.s32.totalorder %s722_s23, %s2884_s25  ;;  %p2893_p9 = scmp.lt.s32.totalorder %s2884_s25, %s2884_s25 }
  0xa9   : > { %p2887_p11 = pnand %p2885_p8, %p3318_p13  ;;  %p2894_p2 = por %p2893_p9, %p2892_p1 }
  0xab   : > { %p2888_p0 = pneg %p2887_p11 }
  0xad   : > { %p2895_p5 = pnand %p2894_p2, %p2888_p0 }
  0xaf   : > { %2898 = shalt.err (!%p2895_p5)
}
  0xb0   : > { %2449 = dma.hbm_to_vmem [thread:$0]  (!%p3312_p12), %s3730_s13, 256, %s722_s23, [#allocation17], %s3789_s0, %s3789_s0, %s3788_s12  }
  0xb1   : > { %s2910_s4 = scalar_lea.vmem %s747_s5, 16  ;;  %s2917_s22 = scalar_lea.vmem %s747_s5, 32 }
  0xb2   : > { %p2911_p6 = scmp.ne.s32.totalorder %s747_s5, %s2910_s4  ;;  %p2918_p4 = scmp.lt.s32.totalorder %s747_s5, %s747_s5 }
  0xb3   : > { %p2919_p7 = scmp.lt.s32.totalorder %s2917_s22, %s2910_s4 }
  0xb4   : > { %p2913_p10 = pnand %p2911_p6, %p3318_p13 }
  0xb5   : > { %p2920_p8 = por %p2919_p7, %p2918_p4 }
  0xb6   : > { %p2914_p3 = pneg %p2913_p10 }
  0xb8   : > { %p2921_p11 = pnand %p2920_p8, %p2914_p3 }
  0xba   : > { %2924 = shalt.err (!%p2921_p11)
}
  0xbb   : > { %2455 = dma.hbm_to_vmem [thread:$0]  (!%p3312_p12), %s3732_s15, 16, %s747_s5, [#allocation20]  }
  0xbc   : > { %s3120_s28 = smov [#allocation24]   ;;  %s3121_s27 = smov [#allocation25]  }
  0xbd   : > { %s767_s23 = sshll.u32 %s3120_s28, 4  ;;  %s781_s25 = sshll.u32 %s3121_s27, 4  ;;  %s768_s23 = int_to_ptr.vmem [resolvable:$true] %s767_s23  ;;  %s782_s25 = int_to_ptr.vmem [resolvable:$true] %s781_s25 }
  0xbe   : > { %s2936_s10 = scalar_lea.vmem %s768_s23, 256  ;;  %p2944_p2 = scmp.lt.s32.totalorder %s768_s23, %s768_s23 }
  0xbf   : > { %p2937_p0 = scmp.ne.s32.totalorder %s768_s23, %s2936_s10  ;;  %p2945_p5 = scmp.lt.s32.totalorder %s2936_s10, %s2936_s10 }
  0xc1   : > { %p2939_p1 = pnand %p2937_p0, %p3318_p13  ;;  %p2946_p6 = por %p2945_p5, %p2944_p2 }
  0xc3   : > { %p2940_p9 = pneg %p2939_p1 }
  0xc5   : > { %p2947_p10 = pnand %p2946_p6, %p2940_p9 }
  0xc7   : > { %2950 = shalt.err (!%p2947_p10)
}
  0xc8   : > { %2461 = dma.hbm_to_vmem [thread:$0]  (!%p3312_p12), %s3734_s17, 256, %s768_s23, [#allocation23], %s3789_s0, %s3789_s0, %s3788_s12  }
  0xc9   : > { %s2962_s4 = scalar_lea.vmem %s782_s25, 16  ;;  %s2969_s22 = scalar_lea.vmem %s782_s25, 32 }
  0xca   : > { %p2963_p3 = scmp.ne.s32.totalorder %s782_s25, %s2962_s4  ;;  %p2970_p8 = scmp.lt.s32.totalorder %s782_s25, %s782_s25 }
  0xcb   : > { %p2971_p11 = scmp.lt.s32.totalorder %s2969_s22, %s2962_s4 }
  0xcc   : > { %p2965_p4 = pnand %p2963_p3, %p3318_p13 }
  0xcd   : > { %p2972_p0 = por %p2971_p11, %p2970_p8 }
  0xce   : > { %p2966_p7 = pneg %p2965_p4 }
  0xd0   : > { %p2973_p1 = pnand %p2972_p0, %p2966_p7 }
  0xd2   : > { %2976 = shalt.err (!%p2973_p1)
}
  0xd3   : > { %2464 = dma.hbm_to_vmem [thread:$0]  (!%p3312_p12), %s3735_s18, 16, %s782_s25, [#allocation26]  }
  0xd4   : > { %p3790_p9 = scmp.ne.s32.totalorder %s3777_s8, 0 }
  0xd5   : > { %p3791_p2 = scmp.eq.s32.totalorder (!%p3790_p9), %s3276_s6, 0 }
  0xd6   : > { %827 = sbr.rel (%p3790_p9) target bundleno = 3638 (0xe36), region = 112 }
  0xdb   : > { %3046 = dma.done.wait (%p3791_p2), [#allocation3], 128   ;;  %p3792_p13 = pmov %p3791_p2 }
  0xdc   : > { %p3793_p5 = pmov %p3791_p2 }
  0xdd   : > { %3048 = vsyncadd (%p3792_p13), [#allocation3], 4294967168 }
  0xde   : > { %3050 = dma.done.wait (%p3793_p5), [#allocation7], 192   ;;  %p3794_p6 = pmov %p3791_p2 }
  0xdf   : > { %p3795_p10 = pmov %p3791_p2 }
  0xe0   : > { %3052 = vsyncadd (%p3794_p6), [#allocation7], 4294967104 }
  0xe1   : > { %3054 = dma.done.wait (%p3795_p10), [#allocation5], 16   ;;  %p3796_p12 = pmov %p3791_p2 }
  0xe2   : > { %p3797_p3 = pmov %p3791_p2 }
  0xe3   : > { %3056 = vsyncadd (%p3796_p12), [#allocation5], 4294967280 }
  0xe4   : > { %3058 = dma.done.wait (%p3797_p3), [#allocation11], 272   ;;  %p3798_p4 = pmov %p3791_p2 }
  0xe5   : > { %p3799_p7 = pmov %p3791_p2 }
  0xe6   : > { %3060 = vsyncadd (%p3798_p4), [#allocation11], 4294967024 }
  0xe7   : > { %3062 = dma.done.wait (%p3799_p7), [#allocation14], 272   ;;  %p3800_p8 = pmov %p3791_p2 }
  0xe8   : > { %p3801_p11 = pmov %p3791_p2 }
  0xe9   : > { %3064 = vsyncadd (%p3800_p8), [#allocation14], 4294967024 }
  0xea   : > { %3066 = dma.done.wait (%p3801_p11), [#allocation17], 272   ;;  %p3802_p0 = pmov %p3791_p2 }
  0xec   : > { %3068 = vsyncadd (%p3802_p0), [#allocation17], 4294967024  ;;  %p3803_p1 = pmov %p3802_p0 }
  0xed   : > { %p3804_p9 = pmov %p3802_p0 }
  0xee   : > { %3070 = dma.done.wait (%p3803_p1), [#allocation20], 32  }
  0xef   : > { %3072 = vsyncadd (%p3804_p9), [#allocation20], 4294967264  ;;  %p3805_p2 = pmov %p3802_p0 }
  0xf0   : > { %p3806_p13 = pmov %p3802_p0 }
  0xf1   : > { %3074 = dma.done.wait (%p3805_p2), [#allocation23], 272  }
  0xf2   : > { %3076 = vsyncadd (%p3806_p13), [#allocation23], 4294967024  ;;  %p3807_p5 = pmov %p3802_p0 }
  0xf3   : > { %p3808_p6 = pmov %p3802_p0 }
  0xf4   : > { %3078 = dma.done.wait (%p3807_p5), [#allocation26], 16  }
  0xf5   : > { %3080 = vsyncadd (%p3808_p6), [#allocation26], 4294967280 }
  0xf6   : > { %889 = sfence }
  0xf7   : > { %v2558_v0 = vld [vmem:[%s3726_s9 + $0x8] sm:$0xff]   ;;  %v3122_v1 = vmov 0.0   ;;  %v2559_v2 = vld [vmem:[#allocation10 + $0x8] sm:$0xff]   ;;  %vm3123_vm0 = vmmov 0   ;;  %p962_p10 = scmp.lt.s32.totalorder %s3276_s6, 1  ;;  %v2561_v4 = vld [vmem:[#allocation10] sm:$0xff]  }
  0xf8   : > { %2275 = vmatprep.subr.bf16.mxu1 %v3122_v1  ;;  %2267 = vmatprep.subr.bf16.mxu0 %v3122_v1  ;;  %v2560_v3 = vld [vmem:[%s3726_s9] sm:$0xff]   ;;  %s3809_s25 = sld [smem:[#allocation52_spill]]  ;;  %vm1002_vm1 = vcmask 261120   ;;  %vm1187_vm2 = vcmask 130048   ;;  %s3124_s2 = smov 112   ;;  %vm1236_vm4 = vcmask 64512  }
  0xf9   : > { %2276 = vmatpush3.bf16.msra.mxu1 %v2558_v0  ;;  %2279 = vmatprep.mubr.msk.bf16.mxu1 %vm3123_vm0, %v3122_v1  ;;  %s963_s0 = scalar_select %p962_p10, %s3276_s6, 1  ;;  %v2193_v9 = vld [vmem:[#allocation13] ss:$0 sm:$0xff]  ;;  %v2189_v10 = vld [vmem:[#allocation12] ss:$0 sm:$0xff]  ;;  %v2562_v32 = vld [vmem:[#allocation15 + $0x8] sm:$0xff]  }
  0xfa   : > { %2268 = vmatpush3.bf16.msra.mxu0 %v2559_v2  ;;  %2277 = vmatprep.subr.bf16.mxu1 %v3122_v1  ;;  %s3810_s4 = sld [smem:[#allocation51_spill]]  ;;  %v3520_v24 = vld [vmem:[#allocation2] sm:$0xff]  ;;  %v2563_v38 = vld [vmem:[#allocation15] sm:$0xff]   ;;  %v1186_v39 = vld [vmem:[#allocation8] sm:$0xf]  ;;  %vm1252_vm5 = vcmask 1043456  }
  0xfb   : > { %2269 = vmatprep.subr.bf16.mxu0 %v3122_v1  ;;  %2271 = vmatprep.mubr.msk.bf16.mxu0 %vm3123_vm0, %v3122_v1  ;;  %s3491_s28 = sshll.u32 %s963_s0, 3  ;;  %vm1184_vm3 = vcmp.ne.f32.partialorder %v3520_v24, 0.0  ;;  %s3811_s8 = sld [smem:[#allocation53_spill]]  ;;  %v3537_v42 = vsel %vm1252_vm5, %v1186_v39, 0  ;;  %v2197_v50 = vld [vmem:[#allocation16] ss:$0 sm:$0xff] }
  0xfc   : > { %v3557_v58 = vld [vmem:[#allocation6] sm:$0xff]  ;;  %s1305_s12 = sld [smem:[#allocation9]]  ;;  %s3573_s0 = sand.u32 1, %s3095_s26   ;;  %vm1325_vm8 = vcmask 60416   ;;  %vm1777_vm11 = vcmask 523264  }
  0xfd   : > { %2278 = vmatpush3.bf16.msra.mxu1 %v2560_v3  ;;  %s2206_s27 = sld [smem:[#allocation9 + $0x1]]  ;;  %s1858_s1 = scalar_lea.sflag [#allocation29], %s3573_s0 }
  0xfe   : > { %2270 = vmatpush3.bf16.msra.mxu0 %v2561_v4  ;;  %s969_s10 = scalar_lea.vmem %s3809_s25, %s3491_s28  ;;  %2291 = vmatprep.subr.bf16.mxu1 %v3122_v1  ;;  %s3125_s25 = smov 16  }
  0xff   : > { %v976_v5 = vld [vmem:[%s969_s10] sm:$0xff]  ;;  %2283 = vmatprep.subr.bf16.mxu0 %v3122_v1  ;;  %p3812_p3 = scmp.ne.s32.totalorder %s3774_s3, 0 }
 0x100   : > { %s965_s22 = scalar_lea.vmem %s3810_s4, %s3491_s28  ;;  %v1046_v7 = vpack.c.bf16 %v976_v5, %v976_v5 }
 0x101   : > { %v3502_v6 = vld [vmem:[%s965_s22] sm:$0xff]  ;;  %s973_s7 = scalar_lea.vmem %s3811_s8, %s3491_s28  ;;  %s2184_s28 = sshll.u32 %s3573_s0, 3 }
 0x102   : > { %v978_v8 = vpack.c.bf16 %v3502_v6, %v3502_v6  ;;  %2280 = vmatmul.mubr.msk.bf16.vlgmr.msra.gmra.mxu1 %vm1002_vm1, %v1046_v7  ;;  %v977_v40 = vld [vmem:[%s973_s7] sm:$0xff]  ;;  %s3579_s23 = scalar_lea.vmem [#allocation28], %s2184_s28  ;;  %s3126_s22 = smov [#allocation28]  }
 0x103   : > { %2293 = vmatprep.mubr.msk.bf16.mxu1 %vm3123_vm0, %v3122_v1  ;;  %v1113_v41 = vpack.c.bf16 %v977_v40, %v977_v40  ;;  %s1884_s5 = sshll.u32 %s3579_s23, 4  ;;  %s3648_s5 = int_to_ptr.vmem [resolvable:$true] %s1884_s5 }
 0x104   : > { %2272 = vmatmul.mubr.msk.bf16.vlgmr.msra.gmra.mxu0 %vm1002_vm1, %v978_v8  ;;  %s2977_s4 = scalar_lea.vmem %s3648_s5, 128 }
 0x105   : > { %2287 = vmatprep.mubr.msk.bf16.mxu0 %vm3123_vm0, %v3122_v1  ;;  %2284 = vmatpush3.bf16.msra.mxu0 %v2562_v32  ;;  %p2978_p12 = scmp.ne.s32.totalorder %s3648_s5, %s2977_s4 }
 0x106   : > { %2285 = vmatprep.subr.bf16.mxu0 %v3122_v1 }
 0x107   : > { %p2979_p4 = pnand %p2978_p12, %p3812_p3 }
 0x109   : > { %2286 = vmatpush3.bf16.msra.mxu0 %v2563_v38  ;;  %p2980_p7 = pneg %p2979_p4 }
 0x10a   : > { %2297 = vmatprep.subr.bf16.mxu0 %v3122_v1 }
 0x10c   : > { %2288 = vmatmul.mubr.msk.bf16.vlgmr.msra.gmra.mxu0 %vm1002_vm1, %v1113_v41 }
 0x10d   : > { %2298 = vmatpush3.bf16.msra.mxu0 %v3537_v42  ;;  %2299 = vmatprep.mubr.msk.bf16.mxu0 %vm3123_vm0, %v3122_v1 }
 0x10e   : > { %2309 = vmatprep.subr.bf16.mxu0 %v3122_v1 }
 0x1c2   : > { %v1107_v11 = vpop.f32.mrf.mxu1 }
 0x1c3   : > { %v1108_v13 = vadd.f32 %v2193_v9, %v1107_v11 }
 0x1c4   : > { %v1040_v12 = vpop.f32.mrf.mxu0  ;;  %v2281_v15 = vpop.f32.mrf.mxu1 }
 0x1c5   : > { %v1041_v14 = vadd.f32 %v2189_v10, %v1040_v12  ;;  %v1181_v17 = vpack.c.bf16 %v1108_v13, %v1108_v13  ;;  %v1306_v13 = vstv %s1305_s12  ;;  %s2229_s12 = sshll.u32 %s3276_s6, 7 }
 0x1c6   : > { %v2273_v16 = vpop.f32.mrf.mxu0  ;;  %v1110_v18 = vpop.f32.mrf.mxu1  ;;  %s3645_s10 = scalar_lea.hbm %s3741_s24, %s2229_s12 }
 0x1c7   : > { %v1192_v20 = vsel %vm1187_vm2, %v1181_v17, 0  ;;  %v1180_v21 = vpack.c.bf16 %v1041_v14, %v1041_v14  ;;  %1377 = vrot.lane.b32.xlu1 %v1181_v17, %s3124_s2 }
 0x1c8   : > { %v1043_v19 = vpop.f32.mrf.mxu0  ;;  %v2282_v22 = vpop.f32.mrf.mxu1  ;;  %2292 = vmatpush3.bf16.xpose.msra.mxu1 %v1192_v20 }
 0x1c9   : > { %2303 = vmatprep.subr.bf16.mxu1 %v3122_v1 }
 0x1ca   : > { %v2274_v23 = vpop.f32.mrf.mxu0 }
 0x1cb   : > { %1374 = vrot.lane.b32.xlu1 %v1180_v21, %s3124_s2 }
 0x1cc   : > { %v1174_v51 = vpop.f32.mrf.mxu0 }
 0x1cd   : > { %v1175_v52 = vadd.f32 %v2197_v50, %v1174_v51 }
 0x1ce   : > { %v2289_v53 = vpop.f32.mrf.mxu0 }
 0x1cf   : > { %2294 = vmatmul.mubr.msk.bf16.vlgmr.msra.gmra.mxu1 %vm1187_vm2, %v1180_v21  ;;  %v3552_v54 = vpack.c.bf16 %v1175_v52, %v1175_v52 }
 0x1d0   : > { %2305 = vmatprep.mubr.msk.bf16.mxu1 %vm3123_vm0, %v3122_v1  ;;  %v1177_v55 = vpop.f32.mrf.mxu0 }
 0x1d1   : > { %v1331_v56 = vsel %vm1252_vm5, %v3552_v54, 0 }
 0x1d2   : > { %v2290_v57 = vpop.f32.mrf.mxu0  ;;  %2304 = vmatpush3.bf16.msra.mxu1 %v1331_v56  ;;  %v1492_v56 = vstv %s2206_s27 }
 0x1d3   : > { %2315 = vmatprep.subr.bf16.mxu1 %v3122_v1 }
 0x239   : > { %v1378_v46 = vpop.permute.xlu1 %1377 }
 0x23a   : > { %v1383_v48 = vsel %vm1187_vm2, %v1378_v46, 0 }
 0x23d   : > { %v1375_v49 = vpop.permute.xlu1 %1374 }
 0x28f   : > { %v1228_v25 = vpop.f32.mrf.mxu1 }
 0x290   : > { %v3523_v26 = vmul.f32 0.25, %v1228_v25 }
 0x291   : > { %v2295_v27 = vpop.f32.mrf.mxu1 }
 0x292   : > { %v1235_v28 = vsel %vm1184_vm3, %v3523_v26, -1e+32 }
 0x293   : > { %v1231_v29 = vpop.f32.mrf.mxu1  ;;  %v1237_v30 = vsel %vm1236_vm4, %v1235_v28, -inf }
 0x294   : > { %1238 = vmax.xlane.f32.xlu0 %v1237_v30 }
 0x295   : > { %v2296_v31 = vpop.f32.mrf.mxu1 }
 0x31d   : > { %v1239_v33 = vpop.xlane.xlu0 %1238 }
 0x31e   : > { %v1240_v34 = vsub.f32 %v1235_v28, %v1239_v33 }
 0x320   : > { %v1241_v35 = vmul.f32 1.442695, %v1240_v34 }
 0x322   : > { %2572 = vpow2.f32 %v1241_v35 }
 0x32f   : > { %v2573_v36 = vpop.eup %2572 }
 0x330   : > { %v1243_v37 = vsel %vm1236_vm4, %v2573_v36, 0.0 }
 0x331   : > { %1244 = vadd.xlane.f32.xlu0 %v1243_v37 }
 0x3ba   : > { %v1245_v43 = vpop.xlane.xlu0 %1244 }
 0x3bb   : > { %2574 = vrcp.f32 %v1245_v43 }
 0x3c8   : > { %v2575_v44 = vpop.eup %2574 }
 0x3c9   : > { %v1247_v45 = vmul.f32 %v2575_v44, %v2573_v36 }
 0x3cb   : > { %v1248_v47 = vpack.c.bf16 %v1247_v45, %v1247_v45 }
 0x3cd   : > { %2300 = vmatmul.mubr.msk.bf16.vlgmr.msra.gmra.mxu0 %vm1236_vm4, %v1248_v47 }
 0x3ce   : > { %2310 = vmatpush3.bf16.xpose.msra.mxu0 %v1383_v48  ;;  %2311 = vmatprep.mubr.msk.bf16.mxu0 %vm3123_vm0, %v3122_v1 }
 0x3cf   : > { %2321 = vmatprep.subr.bf16.mxu0 %v3122_v1 }
 0x3d5   : > { %2312 = vmatmul.mubr.msk.bf16.vlgmr.msra.gmra.mxu0 %vm1187_vm2, %v1375_v49 }
 0x3d6   : > { %2323 = vmatprep.mubr.msk.bf16.mxu0 %vm3123_vm0, %v3122_v1 }
 0x48d   : > { %v1290_v59 = vpop.f32.mrf.mxu0 }
 0x48e   : > { %v1296_v60 = vmul.f32 %v1290_v59, %v3557_v58 }
 0x48f   : > { %v2301_v61 = vpop.f32.mrf.mxu0 }
 0x490   : > { %v1297_v62 = vmax.f32 %v1296_v60, 0.0 }
 0x491   : > { %v1293_v63 = vpop.f32.mrf.mxu0 }
 0x492   : > { %2576 = vrsqrt.f32 %v1297_v62  ;;  %vm1300_vm6 = vcmp.eq.f32.partialorder %v1297_v62, inf  ;;  %v1303_v12 = vand.u32 2147483648, %v1297_v62  ;;  %vm1302_vm7 = vcmp.eq.f32.partialorder %v1297_v62, 0.0 }
 0x493   : > { %v2302_v0 = vpop.f32.mrf.mxu0 }
 0x495   : > { %v1419_v2 = vpop.f32.mrf.mxu0 }
 0x496   : > { %v3560_v3 = vmul.f32 0.25, %v1419_v2 }
 0x497   : > { %v2313_v4 = vpop.f32.mrf.mxu0 }
 0x498   : > { %v1426_v5 = vsel %vm1184_vm3, %v3560_v3, -1e+32 }
 0x499   : > { %v1422_v7 = vpop.f32.mrf.mxu0  ;;  %v1427_v8 = vsel %vm1236_vm4, %v1426_v5, -inf }
 0x49a   : > { %1428 = vmax.xlane.f32.xlu1 %v1427_v8 }
 0x49b   : > { %v2314_v9 = vpop.f32.mrf.mxu0 }
 0x49f   : > { %v2577_v10 = vpop.eup %2576 }
 0x4a0   : > { %v1299_v11 = vmul.f32 %v2577_v10, %v1297_v62 }
 0x4a2   : > { %v1301_v14 = vsel %vm1300_vm6, %v1297_v62, %v1299_v11 }
 0x4a3   : > { %v1304_v15 = vsel %vm1302_vm7, %v1303_v12, %v1301_v14  ;;  %v2564_v14 = vld [vmem:[#allocation18 + $0x8] sm:$0xff]  }
 0x4a4   : > { %v1307_v16 = vmul.f32 %v1306_v13, %v1304_v15 }
 0x4a6   : > { %v1308_v17 = vmul.f32 1.442695, %v1307_v16 }
 0x4a8   : > { %2578 = vpow2.f32 %v1308_v17 }
 0x4b5   : > { %v2579_v18 = vpop.eup %2578 }
 0x4b6   : > { %v1310_v19 = vmax.f32 %v2579_v18, 1e-05 }
 0x4b8   : > { %v1311_v20 = vmul.f32 %v1310_v19, %v3523_v26 }
 0x4ba   : > { %v1312_v21 = vsel %vm1184_vm3, %v1311_v20, -1e+32 }
 0x4bb   : > { %v1313_v22 = vsel %vm1236_vm4, %v1312_v21, -inf }
 0x4bc   : > { %1314 = vmax.xlane.f32.xlu0 %v1313_v22  ;;  %v2209_v22 = vld [vmem:[#allocation19] ss:$0 sm:$0xff] }
 0x523   : > { %v1429_v23 = vpop.xlane.xlu1 %1428 }
 0x524   : > { %v1430_v25 = vsub.f32 %v1426_v5, %v1429_v23 }
 0x526   : > { %v1431_v29 = vmul.f32 1.442695, %v1430_v25 }
 0x545   : > { %v1315_v27 = vpop.xlane.xlu0 %1314 }
 0x546   : > { %v1316_v28 = vsub.f32 %v1312_v21, %v1315_v27 }
 0x548   : > { %v1317_v30 = vmul.f32 1.442695, %v1316_v28 }
 0x54a   : > { %2580 = vpow2.f32 %v1317_v30 }
 0x54b   : > { %2582 = vpow2.f32 %v1431_v29 }
 0x557   : > { %v2581_v31 = vpop.eup %2580 }
 0x558   : > { %v1319_v32 = vsel %vm1236_vm4, %v2581_v31, 0.0  ;;  %v2583_v33 = vpop.eup %2582 }
 0x559   : > { %1320 = vadd.xlane.f32.xlu0 %v1319_v32  ;;  %v1433_v26 = vsel %vm1236_vm4, %v2583_v33, 0.0 }
 0x55d   : > { %1434 = vadd.xlane.f32.xlu0 %v1433_v26 }
 0x5e2   : > { %v1321_v34 = vpop.xlane.xlu0 %1320 }
 0x5e3   : > { %2584 = vrcp.f32 %v1321_v34 }
 0x5e6   : > { %v1435_v35 = vpop.xlane.xlu0 %1434 }
 0x5e7   : > { %2586 = vrcp.f32 %v1435_v35 }
 0x5f0   : > { %v2585_v36 = vpop.eup %2584 }
 0x5f1   : > { %v1323_v37 = vmul.f32 %v2585_v36, %v2581_v31  ;;  %v2566_v36 = vld [vmem:[#allocation24 + $0x8] sm:$0xff]  }
 0x5f3   : > { %v1324_v38 = vpack.c.bf16 %v1323_v37, %v1323_v37  ;;  %v2567_v37 = vld [vmem:[#allocation24] sm:$0xff]  }
 0x5f4   : > { %v2587_v39 = vpop.eup %2586 }
 0x5f5   : > { %2306 = vmatmul.mubr.msk.bf16.vlgmr.msra.gmra.mxu1 %vm1236_vm4, %v1324_v38  ;;  %1326 = vst.msk [vmem:[%s3579_s23] sm:$0xf] %vm1325_vm8, %v1324_v38  ;;  %v1437_v40 = vmul.f32 %v2587_v39, %v2583_v33 }
 0x5f6   : > { %2316 = vmatpush3.bf16.msra.mxu1 %v3537_v42  ;;  %2317 = vmatprep.mubr.msk.bf16.mxu1 %vm3123_vm0, %v3122_v1 }
 0x5f7   : > { %2327 = vmatprep.subr.bf16.mxu1 %v3122_v1  ;;  %v1438_v41 = vpack.c.bf16 %v1437_v40, %v1437_v40 }
 0x5fd   : > { %2318 = vmatmul.mubr.msk.bf16.vlgmr.msra.gmra.mxu1 %vm1236_vm4, %v1438_v41  ;;  %v2213_v41 = vld [vmem:[#allocation21] ss:$0 sm:$0xff] }
 0x5fe   : > { %2331 = vmatprep.mubr.msk.bf16.mxu1 %vm3123_vm0, %v3122_v1  ;;  %2328 = vmatpush3.bf16.msra.mxu1 %v2564_v14 }
 0x5ff   : > { %2329 = vmatprep.subr.bf16.mxu1 %v3122_v1 }
 0x6b5   : > { %v3590_v43 = vpop.f32.mrf.mxu1 }
 0x6b7   : > { %v2307_v44 = vpop.f32.mrf.mxu1 }
 0x6b8   : > { %v2214_v44 = vld [vmem:[#allocation22] ss:$0 sm:$0xff] }
 0x6b9   : > { %v1370_v45 = vpop.f32.mrf.mxu1 }
 0x6bb   : > { %v2308_v46 = vpop.f32.mrf.mxu1 }
 0x6bd   : > { %v1476_v47 = vpop.f32.mrf.mxu1 }
 0x6be   : > { %v1482_v42 = vmul.f32 %v1476_v47, %v3557_v58 }
 0x6bf   : > { %v2319_v48 = vpop.f32.mrf.mxu1 }
 0x6c0   : > { %v1483_v49 = vmax.f32 %v1482_v42, 0.0  ;;  %v2568_v42 = vld [vmem:[%s3736_s19 + $0x18] sm:$0xff]   ;;  %v2569_v48 = vld [vmem:[%s3736_s19 + $0x10] sm:$0xff]  }
 0x6c1   : > { %v1479_v50 = vpop.f32.mrf.mxu1 }
 0x6c2   : > { %2588 = vrsqrt.f32 %v1483_v49  ;;  %vm1486_vm9 = vcmp.eq.f32.partialorder %v1483_v49, inf  ;;  %v1489_v55 = vand.u32 2147483648, %v1483_v49  ;;  %vm1488_vm10 = vcmp.eq.f32.partialorder %v1483_v49, 0.0  ;;  %v2571_v50 = vld [vmem:[%s3736_s19] sm:$0xff]  }
 0x6c3   : > { %v2320_v51 = vpop.f32.mrf.mxu1 }
 0x6c4   : > { %v2215_v51 = vld [vmem:[#allocation25] ss:$0 sm:$0xff] }
 0x6cf   : > { %v2589_v52 = vpop.eup %2588 }
 0x6d0   : > { %v1485_v53 = vmul.f32 %v2589_v52, %v1483_v49 }
 0x6d2   : > { %v1487_v57 = vsel %vm1486_vm9, %v1483_v49, %v1485_v53  ;;  %v2570_v49 = vld [vmem:[%s3736_s19 + $0x8] sm:$0xff]  }
 0x6d3   : > { %v1490_v59 = vsel %vm1488_vm10, %v1489_v55, %v1487_v57 }
 0x6d4   : > { %v1493_v60 = vmul.f32 %v1492_v56, %v1490_v59 }
 0x6d6   : > { %v1494_v61 = vmul.f32 1.442695, %v1493_v60 }
 0x6d8   : > { %2590 = vpow2.f32 %v1494_v61 }
 0x6e5   : > { %v2591_v62 = vpop.eup %2590 }
 0x6e6   : > { %v1496_v63 = vmax.f32 %v2591_v62, 1e-05 }
 0x6e8   : > { %v1497_v58 = vmul.f32 %v1496_v63, %v3560_v3 }
 0x6ea   : > { %v1498_v0 = vsel %vm1184_vm3, %v1497_v58, -1e+32 }
 0x6eb   : > { %v1499_v2 = vsel %vm1236_vm4, %v1498_v0, -inf }
 0x6ec   : > { %1500 = vmax.xlane.f32.xlu0 %v1499_v2 }
 0x775   : > { %v1501_v4 = vpop.xlane.xlu0 %1500 }
 0x776   : > { %v1502_v5 = vsub.f32 %v1498_v0, %v1501_v4 }
 0x778   : > { %v1503_v7 = vmul.f32 1.442695, %v1502_v5 }
 0x77a   : > { %2592 = vpow2.f32 %v1503_v7 }
 0x787   : > { %v2593_v8 = vpop.eup %2592 }
 0x788   : > { %v1505_v9 = vsel %vm1236_vm4, %v2593_v8, 0.0 }
 0x789   : > { %1506 = vadd.xlane.f32.xlu0 %v1505_v9 }
 0x79f   : > { %1514 = vrot.lane.b32.xlu0 %v3552_v54, %s3124_s2  ;;  %v2565_v54 = vld [vmem:[#allocation18] sm:$0xff]   ;;  %s2981_s2 = sshll.u32 %s3126_s22, 4  ;;  %s2982_s2 = int_to_ptr.vmem [resolvable:$false] %s2981_s2 }
 0x7a0   : > { %2330 = vmatpush3.bf16.msra.mxu1 %v2565_v54  ;;  %s2983_s30 = scalar_lea.vmem %s2982_s2, 256  ;;  %p2984_p8 = scmp.lt.s32.totalorder %s3648_s5, %s2982_s2 }
 0x7a1   : > { %2343 = vmatprep.subr.bf16.mxu1 %v3122_v1  ;;  %p2985_p11 = scmp.lt.s32.totalorder %s2983_s30, %s2977_s4 }
 0x7a3   : > { %p2986_p0 = por %p2985_p11, %p2984_p8 }
 0x7a5   : > { %p2987_p1 = pnand %p2986_p0, %p2980_p7 }
 0x812   : > { %v1507_v10 = vpop.xlane.xlu0 %1506 }
 0x813   : > { %2594 = vrcp.f32 %v1507_v10 }
 0x816   : > { %v1515_v3 = vpop.permute.xlu0 %1514 }
 0x817   : > { %v1520_v24 = vsel %vm1252_vm5, %v1515_v3, 0 }
 0x818   : > { %2322 = vmatpush3.bf16.msra.mxu0 %v1520_v24 }
 0x819   : > { %2335 = vmatprep.subr.bf16.mxu0 %v3122_v1 }
 0x820   : > { %v2595_v11 = vpop.eup %2594 }
 0x821   : > { %v1509_v12 = vmul.f32 %v2595_v11, %v2593_v8 }
 0x823   : > { %v1510_v13 = vpack.c.bf16 %v1509_v12, %v1509_v12 }
 0x825   : > { %2324 = vmatmul.mubr.msk.bf16.vlgmr.msra.gmra.mxu0 %vm1236_vm4, %v1510_v13  ;;  %2207 = vst.msk [vmem:[%s3579_s23 + $0x4] sm:$0xf] %vm1325_vm8, %v1510_v13 }
 0x826   : > { %2339 = vmatprep.mubr.msk.bf16.mxu0 %vm3123_vm0, %v3122_v1  ;;  %2336 = vmatpush3.bf16.msra.mxu0 %v2566_v36 }
 0x827   : > { %2337 = vmatprep.subr.bf16.mxu0 %v3122_v1 }
 0x82a   : > { %2338 = vmatpush3.bf16.msra.mxu0 %v2567_v37 }
 0x8e5   : > { %v1556_v15 = vpop.f32.mrf.mxu0 }
 0x8e6   : > { %1563 = vrot.lane.b32.xlu1 %v1556_v15, %s3125_s25 }
 0x8e7   : > { %v2325_v16 = vpop.f32.mrf.mxu0 }
 0x8e9   : > { %v1559_v17 = vpop.f32.mrf.mxu0 }
 0x8eb   : > { %v2326_v18 = vpop.f32.mrf.mxu0 }
 0x958   : > { %v1564_v19 = vpop.permute.xlu1 %1563 }
 0x959   : > { %v1566_v20 = vsel %vm1187_vm2, %v3590_v43, %v1564_v19 }
 0x95a   : > { %v1567_v21 = vpack.c.bf16 %v1566_v20, %v1566_v20 }
 0x95c   : > { %2332 = vmatmul.mubr.msk.bf16.vlgmr.msra.gmra.mxu1 %vm1002_vm1, %v1567_v21 }
 0x95d   : > { %2351 = vmatprep.mubr.msk.bf16.mxu1 %vm3123_vm0, %v3122_v1  ;;  %2344 = vmatpush3.bf16.msra.mxu1 %v2568_v42 }
 0x95e   : > { %2345 = vmatprep.subr.bf16.mxu1 %v3122_v1 }
 0x961   : > { %2346 = vmatpush3.bf16.msra.mxu1 %v2569_v48 }
 0x962   : > { %2347 = vmatprep.subr.bf16.mxu1 %v3122_v1 }
 0x965   : > { %2348 = vmatpush3.bf16.msra.mxu1 %v2570_v49 }
 0x966   : > { %2349 = vmatprep.subr.bf16.mxu1 %v3122_v1  ;;  %v2219_v1 = vld [vmem:[%s3737_s20] ss:$0 sm:$0xff] }
 0x969   : > { %2350 = vmatpush3.bf16.msra.mxu1 %v2571_v50 }
 0xa1c   : > { %v1628_v23 = vpop.f32.mrf.mxu1 }
 0xa1d   : > { %v1629_v25 = vadd.f32 %v2209_v22, %v1628_v23 }
 0xa1e   : > { %v2333_v27 = vpop.f32.mrf.mxu1 }
 0xa1f   : > { %v1634_v28 = vadd.f32 %v1629_v25, %v3502_v6 }
 0xa20   : > { %v1631_v29 = vpop.f32.mrf.mxu1 }
 0xa21   : > { %v1637_v30 = vsel %vm1002_vm1, %v1634_v28, 0.0 }
 0xa22   : > { %1638 = vadd.xlane.f32.xlu0 %v1637_v30  ;;  %v2334_v31 = vpop.f32.mrf.mxu1 }
 0xaab   : > { %v1639_v32 = vpop.xlane.xlu0 %1638 }
 0xaac   : > { %v1641_v33 = vmul.f32 0.03125, %v1639_v32 }
 0xaae   : > { %v1642_v26 = vsub.f32 %v1634_v28, %v1641_v33 }
 0xab0   : > { %v1643_v34 = vmul.f32 %v1642_v26, %v1642_v26 }
 0xab2   : > { %v1644_v35 = vsel %vm1002_vm1, %v1643_v34, 0.0 }
 0xab3   : > { %1645 = vadd.xlane.f32.xlu1 %v1644_v35 }
 0xb3c   : > { %v1646_v38 = vpop.xlane.xlu1 %1645 }
 0xb3d   : > { %v1647_v6 = vmul.f32 0.03125, %v1646_v38 }
 0xb3f   : > { %v1648_v39 = vadd.f32 1e-05, %v1647_v6 }
 0xb41   : > { %2596 = vrsqrt.f32 %v1648_v39 }
 0xb4e   : > { %v2597_v40 = vpop.eup %2596 }
 0xb4f   : > { %v1650_v43 = vmul.f32 %v2597_v40, %v1642_v26 }
 0xb51   : > { %v1657_v45 = vmul.f32 %v2213_v41, %v1650_v43 }
 0xb53   : > { %v1664_v46 = vadd.f32 %v2214_v44, %v1657_v45 }
 0xb55   : > { %v1665_v47 = vpack.c.bf16 %v1664_v46, %v1664_v46 }
 0xb57   : > { %2340 = vmatmul.mubr.msk.bf16.vlgmr.msra.gmra.mxu0 %vm1002_vm1, %v1665_v47 }
 0xc17   : > { %v1726_v52 = vpop.f32.mrf.mxu0 }
 0xc18   : > { %v1727_v53 = vadd.f32 %v2215_v51, %v1726_v52 }
 0xc19   : > { %v2341_v55 = vpop.f32.mrf.mxu0 }
 0xc1a   : > { %v1733_v56 = vmul.f32 0.70710677, %v1727_v53  ;;  %v1732_v61 = vmul.f32 0.5, %v1727_v53 }
 0xc1b   : > { %v1729_v57 = vpop.f32.mrf.mxu0 }
 0xc1c   : > { %2598 = verf.f32 %v1733_v56 }
 0xc1d   : > { %v2342_v59 = vpop.f32.mrf.mxu0 }
 0xc29   : > { %v2599_v60 = vpop.eup %2598 }
 0xc2a   : > { %v1735_v62 = vadd.f32 1.0, %v2599_v60 }
 0xc2c   : > { %v1736_v63 = vmul.f32 %v1735_v62, %v1732_v61 }
 0xc2e   : > { %v1737_v58 = vpack.c.bf16 %v1736_v63, %v1736_v63 }
 0xc30   : > { %2352 = vmatmul.mubr.msk.bf16.vlgmr.msra.gmra.mxu1 %vm1777_vm11, %v1737_v58 }
 0xcf0   : > { %v1815_v0 = vpop.f32.mrf.mxu1 }
 0xcf1   : > { %v1816_v2 = vadd.f32 %v2219_v1, %v1815_v0 }
 0xcf2   : > { %v2353_v4 = vpop.f32.mrf.mxu1 }
 0xcf3   : > { %v1821_v5 = vadd.f32 %v1816_v2, %v1664_v46 }
 0xcf4   : > { %v1818_v7 = vpop.f32.mrf.mxu1 }
 0xcf5   : > { %v1824_v8 = vsel %vm1002_vm1, %v1821_v5, 0.0 }
 0xcf6   : > { %1825 = vadd.xlane.f32.xlu0 %v1824_v8  ;;  %v2354_v9 = vpop.f32.mrf.mxu1 }
 0xd7f   : > { %v1826_v10 = vpop.xlane.xlu0 %1825 }
 0xd80   : > { %v1827_v3 = vmul.f32 0.03125, %v1826_v10 }
 0xd82   : > { %v1828_v24 = vsub.f32 %v1821_v5, %v1827_v3 }
 0xd84   : > { %v1829_v11 = vmul.f32 %v1828_v24, %v1828_v24 }
 0xd86   : > { %v1830_v12 = vsel %vm1002_vm1, %v1829_v11, 0.0 }
 0xd87   : > { %1831 = vadd.xlane.f32.xlu0 %v1830_v12 }
 0xd88   : > { %2990 = shalt.err (!%p2987_p1)
}
 0xd89   : > { %s2991_s23 = scalar_lea.hbm %s3645_s10, 128  ;;  %s2995_s7 = scalar_lea.hbm %s3741_s24, 256 }
 0xd8a   : > { %p2992_p9 = scmp.ne.s32.totalorder %s3645_s10, %s2991_s23  ;;  %p2996_p5 = scmp.lt.s32.totalorder %s3645_s10, %s3741_s24 }
 0xd8b   : > { %p2997_p6 = scmp.lt.s32.totalorder %s2995_s7, %s2991_s23 }
 0xd8c   : > { %p2993_p2 = pnand %p2992_p9, %p3812_p3 }
 0xd8d   : > { %p2998_p10 = por %p2997_p6, %p2996_p5 }
 0xd8e   : > { %p2994_p13 = pneg %p2993_p2 }
 0xd90   : > { %p2999_p12 = pnand %p2998_p10, %p2994_p13 }
 0xd92   : > { %3002 = shalt.err (!%p2999_p12)
}
 0xd93   : > { %s3127_s4 = smov 64   ;;  %s3128_s22 = smov 4   ;;  %v2225_v16 = vld [vmem:[%s3738_s21] ss:$0 sm:$0xff] }
 0xd94   : > { %2416 = dma.vmem_to_hbm [thread:$0]  (%p3812_p3), %s3648_s5, 128, %s3645_s10, %s1858_s1, %s3127_s4, %s3127_s4, %s3128_s22  }
 0xd95   : > { %s3813_s8 = sld [smem:[#allocation58_spill]]  ;;  %s954_s7 = scalar_lea.vmem [#allocation27], %s2184_s28 }
 0xd96   : > { %s1871_s27 = sshll.u32 %s954_s7, 4  ;;  %s3814_s1 = sld [smem:[#allocation59_spill]]  ;;  %s1872_s27 = int_to_ptr.vmem [resolvable:$true] %s1871_s27 }
 0xd97   : > { %s1853_s4 = scalar_lea.sflag [#allocation4], %s3573_s0  ;;  %s3003_s22 = scalar_lea.vmem %s1872_s27, 128 }
 0xd98   : > { %p3004_p4 = scmp.ne.s32.totalorder %s1872_s27, %s3003_s22  ;;  %s3129_s2 = smov [#allocation27]  }
 0xd99   : > { %s3007_s30 = sshll.u32 %s3129_s2, 4  ;;  %s3008_s30 = int_to_ptr.vmem [resolvable:$false] %s3007_s30 }
 0xd9a   : > { %p3005_p7 = pnand %p3004_p4, %p3812_p3  ;;  %s3009_s28 = scalar_lea.vmem %s3008_s30, 256 }
 0xd9b   : > { %v2226_v18 = vld [vmem:[%s3813_s8] ss:$0 sm:$0xff]  ;;  %p3010_p11 = scmp.lt.s32.totalorder %s1872_s27, %s3008_s30  ;;  %p3011_p0 = scmp.lt.s32.totalorder %s3009_s28, %s3003_s22 }
 0xd9c   : > { %s1869_s25 = scalar_lea.hbm %s3814_s1, %s2229_s12  ;;  %p3006_p8 = pneg %p3005_p7 }
 0xd9d   : > { %p3012_p1 = por %p3011_p0, %p3010_p11 }
 0xd9f   : > { %p3013_p9 = pnand %p3012_p1, %p3006_p8 }
 0xe10   : > { %v1832_v13 = vpop.xlane.xlu0 %1831 }
 0xe11   : > { %v1833_v14 = vmul.f32 0.03125, %v1832_v13 }
 0xe13   : > { %v1834_v54 = vadd.f32 1e-05, %v1833_v14 }
 0xe15   : > { %2600 = vrsqrt.f32 %v1834_v54 }
 0xe22   : > { %v2601_v15 = vpop.eup %2600 }
 0xe23   : > { %v1836_v17 = vmul.f32 %v2601_v15, %v1828_v24 }
 0xe25   : > { %v1843_v19 = vmul.f32 %v2225_v16, %v1836_v17 }
 0xe27   : > { %v1850_v20 = vadd.f32 %v2226_v18, %v1843_v19 }
 0xe29   : > { %1851 = vst.msk [vmem:[%s954_s7] sm:$0xff] %vm1002_vm1, %v1850_v20 }
 0xe2a   : > { %3016 = shalt.err (!%p3013_p9)
}
 0xe2b   : > { %s3017_s6 = scalar_lea.hbm %s1869_s25, 128  ;;  %s3021_s23 = scalar_lea.hbm %s3814_s1, 256 }
 0xe2c   : > { %p3018_p2 = scmp.ne.s32.totalorder %s1869_s25, %s3017_s6  ;;  %p3022_p6 = scmp.lt.s32.totalorder %s1869_s25, %s3814_s1 }
 0xe2d   : > { %p3023_p10 = scmp.lt.s32.totalorder %s3021_s23, %s3017_s6 }
 0xe2e   : > { %p3019_p13 = pnand %p3018_p2, %p3812_p3 }
 0xe2f   : > { %p3024_p12 = por %p3023_p10, %p3022_p6 }
 0xe30   : > { %p3020_p5 = pneg %p3019_p13 }
 0xe32   : > { %p3025_p4 = pnand %p3024_p12, %p3020_p5 }
 0xe34   : > { %3028 = shalt.err (!%p3025_p4)
}
 0xe35   : > { %2415 = dma.vmem_to_hbm [thread:$0]  (%p3812_p3), %s1872_s27, 128, %s1869_s25, %s1853_s4  }
 0xe36 PF: > { %s3815_s7 = sld [smem:[#allocation43_spill]] }
 0xe37   : > { %s3816_s10 = sld [smem:[#allocation41_spill]] }
 0xe38   : > { %s3817_s5 = sld [smem:[#allocation46_spill]] }
 0xe3c   : > { %p2502_p7 = scmp.ge.s32.totalorder %s3815_s7, 2 }
 0xe3d   : > { %s1899_s22 = sand.u32 1, %s3816_s10  }
 0xe3e   : > { %p3818_p8 = scmp.ne.s32.totalorder %s3817_s5, 0  ;;  %s1900_s2 = scalar_lea.sflag [#allocation4], %s1899_s22 }
 0xe40   : > { %p2466_p11 = pnand %p2502_p7, %p3818_p8 }
 0xe42   : > { %p2467_p0 = pneg %p2466_p11 }
 0xe44   : > { %3082 = dma.done.wait (%p2467_p0), %s1900_s2, 128  }
 0xe45   : > { %3084 = vsyncadd (%p2467_p0), %s1900_s2, 4294967168  ;;  %s1909_s30 = scalar_lea.sflag [#allocation29], %s1899_s22 }
 0xe46   : > { %3086 = dma.done.wait (%p2467_p0), %s1909_s30, 128  }
 0xe47   : > { %3088 = vsyncadd (%p2467_p0), %s1909_s30, 4294967168  ;;  %s3819_s28 = sld [smem:[#allocation44_spill]]  ;;  %s3822_s5 = smov %s3095_s26 }
 0xe48   : > { %s3820_s6 = sld [smem:[#allocation42_spill]] }
 0xe49   : > { %s3821_s27 = sld [smem:[#allocation45_spill]] }
 0xe4d   : > { %p47_p3 = scmp.ge.s32.totalorder %s3819_s28, 4  }
 0xe4e   : > { %s3823_s26 = smov %s3820_s6 }
 0xe4f   :  { %49 = sbr.rel (!%p47_p3) target bundleno = 28 (0x1c), region = 233 }
 0xe54   :  { %1914 = vsyncpa [#allocation3], 1 }
 0xe55   :  { %1916 = vsyncpa [#allocation3 + $0x1], 1 }
 0xe56   :  { %1917 = vsyncpa [#allocation7], 1 }
 0xe57   :  { %1918 = vsyncpa [#allocation11], 1 }
 0xe58   :  { %1919 = vsyncpa [#allocation14], 1 }
 0xe59   :  { %1920 = vsyncpa [#allocation17], 1 }
 0xe5a   :  { %1921 = vsyncpa [#allocation20], 1 }
 0xe5b   :  { %1922 = vsyncpa [#allocation23], 1 }
 0xe5c   :  { %1923 = vsyncpa [#allocation26], 1 }
 0xe5d   :  { %1924 = vsyncpa [#allocation4], 1 }
 0xe5e   :  { %1926 = vsyncpa [#allocation4 + $0x1], 1 }
 0xe5f   :  { %1927 = vsyncpa [#allocation29], 1 }
 0xe60   :  { %1929 = vsyncpa [#allocation29 + $0x1], 1 }
 0xe61   :  { %1930 = vsyncpa [#allocation5], 1 }
 0xe62   :  { %1932 = vsyncpa [#allocation5 + $0x1], 1 }

</bundles_post_ra>
